<compile_context>
chip_gen: v6e
topology: v6e:2x2x1
jax: 0.10.0
libtpu: 0.0.40
codegen_flags: <defaults>
</compile_context>

<pallas_src>
import functools

import jax
import jax.numpy as jnp
from jax.experimental import pallas as pl
from jax.experimental.pallas import tpu as pltpu


def _round_up(x: int, m: int) -> int:
    return (x + m - 1) // m * m


def _vmem_budget_bytes() -> int:
    """Conservative per-TensorCore VMEM budget for the resident-X decision."""
    try:
        cap = int(pltpu.get_tpu_info().vmem_capacity_bytes)
    except Exception:
        cap = 64 << 20          # v7x per-TC size: the tightest generation
    return min(cap, 128 << 20) * 3 // 4


# ----------------------------------- kernel ------------------------------------


def _layer_kernel(a_ref, scale_ref, x_ref, sum_in_ref, y_ref, sum_out_ref, acc_ref,
                  *, tk: int, x_resident: bool):
    """One LightGCN propagation layer, row-tiled with a K reduction.

    a_ref      : (tm, tk)        int8  streamed tile of the quantized adjacency
    scale_ref  : (tm, 1)         f32   per-row dequantization scales
    x_ref      : (N_pad, D_pad) or (tk, D_pad)  bf16  previous-layer embeddings
    sum_in_ref : (tm, D_pad)     f32   running layer-sum rows for this row tile
    y_ref      : (tm, D_pad)     bf16  rows of the new layer embeddings
    sum_out_ref: (tm, D_pad)     f32   updated running layer-sum rows
    acc_ref    : (tm, D_pad)     f32   VMEM accumulator scratch
    """
    k = pl.program_id(1)
    nk = pl.num_programs(1)

    @pl.when(k == 0)
    def _():
        acc_ref[...] = jnp.zeros_like(acc_ref)

    # int8 -> bf16 is exact (|q| <= 127); the widen runs on the VPU and is hidden
    # under the memory-bound A stream. Works on v5e/v6e/v7x alike.
    a_tile = a_ref[...].astype(jnp.bfloat16)

    if x_resident:
        off = pl.multiple_of(k * tk, tk)
        x_chunk = x_ref[pl.ds(off, tk), :]           # (tk, D_pad) bf16, VMEM-resident X
    else:
        x_chunk = x_ref[...]                         # (tk, D_pad) bf16, streamed X block

    acc_ref[...] += jnp.dot(a_tile, x_chunk, preferred_element_type=jnp.float32)

    @pl.when(k == nk - 1)
    def _():
        new_rows = acc_ref[...] * scale_ref[...]     # apply per-row dequant scale
        y_ref[...] = new_rows.astype(y_ref.dtype)
        sum_out_ref[...] = sum_in_ref[...] + new_rows


# --------------------------------- pallas_call ----------------------------------

# Cached capability flag: whether pipeline_mode=pl.Buffered(1) lowers on this JAX build.
_SINGLE_BUFFER_OK = [True]


def _propagate_layer(a_q, a_scale, x_bf16, layer_sum_f32, *, tm: int, tk: int,
                     x_resident: bool):
    """new_E, new_sum = A @ E, layer_sum + A @ E  (padded / lane-dense, A int8 + row scale)."""
    n_pad, d_pad = x_bf16.shape
    grid = (n_pad // tm, n_pad // tk)
    kernel = functools.partial(_layer_kernel, tk=tk, x_resident=x_resident)

    cost = pl.CostEstimate(
        flops=2 * n_pad * n_pad * d_pad,
        transcendentals=0,
        bytes_accessed=(n_pad * n_pad            # A (int8)
                        + n_pad * 4              # row scales
                        + n_pad * d_pad * 2      # X in (bf16)
                        + n_pad * d_pad * 2      # Y out (bf16)
                        + 2 * n_pad * d_pad * 4  # sum in/out (f32)
                        ),
    )

    def build_and_call(single_buffer: bool):
        # --- X spec ---
        if x_resident:
            if single_buffer:
                x_spec = pl.BlockSpec((n_pad, d_pad), lambda i, k: (0, 0),
                                      pipeline_mode=pl.Buffered(1))
                x_bytes = n_pad * d_pad * 2
            else:
                x_spec = pl.BlockSpec((n_pad, d_pad), lambda i, k: (0, 0))
                x_bytes = 2 * n_pad * d_pad * 2          # default double-buffering
        else:
            # Resident X does not fit the per-TC budget: stream (tk, D) blocks instead.
            x_spec = pl.BlockSpec((tk, d_pad), lambda i, k: (k, 0))
            x_bytes = 2 * tk * d_pad * 2

        # --- running-sum input spec (block index constant across k) ---
        if single_buffer:
            sum_spec = pl.BlockSpec((tm, d_pad), lambda i, k: (i, 0),
                                    pipeline_mode=pl.Buffered(1))
            sum_in_bytes = tm * d_pad * 4
        else:
            sum_spec = pl.BlockSpec((tm, d_pad), lambda i, k: (i, 0))
            sum_in_bytes = 2 * tm * d_pad * 4

        # VMEM budget derived from the actual buffer counts of this configuration.
        vmem_bytes = (x_bytes
                      + 2 * tm * tk                 # A tile, int8, double-buffered
                      + 2 * tm * 4                  # row-scale blocks
                      + sum_in_bytes
                      + 2 * tm * d_pad * 2          # y out blocks (bf16)
                      + 2 * tm * d_pad * 4          # sum_out blocks (f32)
                      + tm * d_pad * 4)             # f32 accumulator scratch
        vmem_limit = min(max(int(1.25 * vmem_bytes) + (2 << 20), 16 << 20), 100 << 20)

        return pl.pallas_call(
            kernel,
            grid_spec=pltpu.PrefetchScalarGridSpec(
                num_scalar_prefetch=0,
                grid=grid,
                in_specs=[
                    pl.BlockSpec((tm, tk), lambda i, k: (i, k)),   # A tile (int8, streamed)
                    pl.BlockSpec((tm, 1), lambda i, k: (i, 0)),    # per-row dequant scales
                    x_spec,                                        # previous-layer embeddings
                    sum_spec,                                      # running layer-sum rows
                ],
                out_specs=[
                    pl.BlockSpec((tm, d_pad), lambda i, k: (i, 0)),  # new X rows
                    pl.BlockSpec((tm, d_pad), lambda i, k: (i, 0)),  # updated sum rows
                ],
                scratch_shapes=[pltpu.VMEM((tm, d_pad), jnp.float32)],
            ),
            out_shape=(
                jax.ShapeDtypeStruct((n_pad, d_pad), jnp.bfloat16),
                jax.ShapeDtypeStruct((n_pad, d_pad), jnp.float32),
            ),
            input_output_aliases={3: 1},   # update the layer-sum buffer in place
            compiler_params=pltpu.CompilerParams(
                dimension_semantics=("parallel", "arbitrary"),
                vmem_limit_bytes=vmem_limit,
            ),
            cost_estimate=cost,
        )(a_q, a_scale, x_bf16, layer_sum_f32)

    if _SINGLE_BUFFER_OK[0]:
        try:
            return build_and_call(True)
        except Exception:
            _SINGLE_BUFFER_OK[0] = False   # this JAX build rejects Buffered(1); fall back
    return build_and_call(False)


# ------------------------------------ wrapper ------------------------------------


def _quantize_rows_int8(a_f32):
    """Per-row symmetric int8 quantization: a ~= scale[:, None] * q."""
    row_max = jnp.max(jnp.abs(a_f32), axis=1, keepdims=True)
    scale = jnp.where(row_max > 0, row_max / 127.0, 1.0).astype(jnp.float32)
    q = jnp.clip(jnp.round(a_f32 / scale), -127, 127).astype(jnp.int8)
    return q, scale


def _lgcn_dense_chain(a_hat, ego, n_layers):
    """Fused XLA reference / small-graph fallback."""
    layers = [ego]
    cur = ego
    for _ in range(n_layers):
        cur = a_hat @ cur
        layers.append(cur)
    return sum(layers) / float(n_layers + 1)


def lgcn_encoder_forward(a_hat, user_emb, item_emb, users, items, n_layers,
                         use_pallas=None):
    """Full LGCN_Encoder.forward: tiled Pallas propagation + layer mean; gather as glue."""
    n_users, d = user_emb.shape
    n_items = item_emb.shape[0]
    n = n_users + n_items

    ego = jnp.concatenate([user_emb, item_emb], axis=0).astype(jnp.float32)   # (N, D)

    # Lane-dense layout: D padded to >=128 lanes; tile sizes picked to keep A DMAs large
    # (0.25-0.5 MiB int8) and the grid-step count small.
    d_pad = _round_up(max(d, 128), 128)
    n128 = _round_up(n, 128)
    if n128 >= 1024:
        tm, tk = 512, 1024
    elif n128 >= 512:
        tm, tk = 512, 512
    elif n128 >= 256:
        tm, tk = 256, 256
    else:
        tm, tk = 128, 128
    n_pad = _round_up(n, max(tm, tk))

    if use_pallas is None:
        # Tiny graphs degenerate to a (1,1)-ish grid: launch + pipeline warm-up dominates,
        # so let XLA's fused matmul chain handle them.
        use_pallas = n_pad >= 1024

    if not use_pallas:
        all_emb = _lgcn_dense_chain(a_hat.astype(jnp.float32), ego, n_layers)
    else:
        # A_hat -> int8 + per-row scale, quantized *before* padding so no padded f32 copy
        # of A is ever materialized.
        a_q, a_scale = _quantize_rows_int8(a_hat.astype(jnp.float32))
        a_q_pad = jnp.zeros((n_pad, n_pad), jnp.int8).at[:n, :n].set(a_q)
        scale_pad = jnp.ones((n_pad, 1), jnp.float32).at[:n].set(a_scale)

        e0 = jnp.zeros((n_pad, d_pad), jnp.float32).at[:n, :d].set(ego)
        # bf16 MXU carry; the f32 running sum keeps the layer mean accurate.
        # TODO(synk): for very deep stacks carry X in f32 and cast per-chunk at the dot.
        cur = e0.astype(jnp.bfloat16)
        layer_sum = e0

        # Per-TensorCore residency decision (v7x has only 64 MiB of VMEM per TC).
        budget = _vmem_budget_bytes()
        per_block = (2 * tm * tk + 2 * tm * 4 + tm * d_pad * 4
                     + 2 * tm * d_pad * 2 + 2 * tm * d_pad * 4 + tm * d_pad * 4)
        x_resident = (n_pad * d_pad * 2 + per_block) <= budget

        for _ in range(n_layers):
            cur, layer_sum = _propagate_layer(a_q_pad, scale_pad, cur, layer_sum,
                                              tm=tm, tk=tk, x_resident=x_resident)

        all_emb = (layer_sum * (1.0 / (n_layers + 1)))[:n, :d]

    user_all = all_emb[:n_users]
    item_all = all_emb[n_users:]
    # TODO(synk): the batch gather could be fused via PrefetchScalarGridSpec + pl.Element
    # row indexing; kept as cheap XLA indexing on the encoder output.
    return user_all[users], item_all[items]


# ----------------------------- parameter / graph setup (glue) -----------------------------


def xavier_uniform(key, shape, dtype=jnp.float32):
    fan_in, fan_out = shape[0], shape[1]
    bound = jnp.sqrt(6.0 / (fan_in + fan_out))
    return jax.random.uniform(key, shape, dtype, minval=-bound, maxval=bound)


def build_norm_adj(key, n_users, n_items, density=0.1):
    """Dense symmetric-normalized bipartite adjacency A_hat = D^-1/2 A D^-1/2."""
    n = n_users + n_items
    r = (jax.random.uniform(key, (n_users, n_items)) < density).astype(jnp.float32)
    a = jnp.zeros((n, n), jnp.float32)
    a = a.at[:n_users, n_users:].set(r)
    a = a.at[n_users:, :n_users].set(r.T)
    deg = jnp.sum(a, axis=1)
    d_inv_sqrt = jnp.where(deg > 0, 1.0 / jnp.sqrt(jnp.maximum(deg, 1e-12)), 0.0)
    return a * d_inv_sqrt[:, None] * d_inv_sqrt[None, :]


if __name__ == "__main__":
    # Small synthetic sizes consistent with the module's __init__ (big enough that the
    # kernel grid is non-degenerate: N = 640 -> N_pad = 1024, grid = (2, 2)).
    N_USERS, N_ITEMS, EMB, N_LAYERS = 300, 340, 32, 2
    BATCH = 8

    key = jax.random.PRNGKey(0)
    k_u, k_i, k_adj, k_bu, k_bi = jax.random.split(key, 5)

    user_emb = xavier_uniform(k_u, (N_USERS, EMB))
    item_emb = xavier_uniform(k_i, (N_ITEMS, EMB))
    a_hat = build_norm_adj(k_adj, N_USERS, N_ITEMS, density=0.15)

    users = jax.random.randint(k_bu, (BATCH,), 0, N_USERS)
    items = jax.random.randint(k_bi, (BATCH,), 0, N_ITEMS)

    # Force the Pallas path so the kernel is exercised at these test sizes (the auto
    # heuristic would route very small graphs to the fused XLA chain).
    u_out, i_out = lgcn_encoder_forward(a_hat, user_emb, item_emb, users, items,
                                        N_LAYERS, use_pallas=True)
    u_out = jax.block_until_ready(u_out)
    i_out = jax.block_until_ready(i_out)

    # Pure-JAX f32 reference check of the propagation semantics.
    ego = jnp.concatenate([user_emb, item_emb], axis=0)
    ref_all = _lgcn_dense_chain(a_hat, ego, N_LAYERS)
    ref_u = ref_all[:N_USERS][users]
    ref_i = ref_all[N_USERS:][items]

    assert u_out.shape == (BATCH, EMB) and i_out.shape == (BATCH, EMB)
    # int8 A (per-row scale) + bf16 MXU operands, f32 accumulation -> loosened tolerance
    # versus the pure-f32 reference.
    assert jnp.allclose(u_out, ref_u, atol=2e-2, rtol=2e-2), float(jnp.max(jnp.abs(u_out - ref_u)))
    assert jnp.allclose(i_out, ref_i, atol=2e-2, rtol=2e-2), float(jnp.max(jnp.abs(i_out - ref_i)))

    print("KERNEL_OK")
</pallas_src>

<mosaic_0001>
module attributes {stable_mosaic.version = 11 : i64} {
  func.func @_layer_kernel(%arg0: i32, %arg1: i32, %arg2: memref<512x512xi8, #tpu.memory_space<vmem>>, %arg3: memref<512x1xf32, #tpu.memory_space<vmem>>, %arg4: memref<1024x128xbf16, #tpu.memory_space<vmem>>, %arg5: memref<512x128xf32, #tpu.memory_space<vmem>>, %arg6: memref<512x128xbf16, #tpu.memory_space<vmem>>, %arg7: memref<512x128xf32, #tpu.memory_space<vmem>>, %arg8: memref<512x128xf32, #tpu.memory_space<vmem>>) attributes {dimension_semantics = [#tpu.dimension_semantics<parallel>, #tpu.dimension_semantics<arbitrary>], iteration_bounds = array<i64: 2, 2>, scalar_prefetch = 0 : i64, scratch_operands = 1 : i64, tpu.core_type = #tpu.core_type<tc>, window_params = [{transform_indices = @transform_0, window_bounds = array<i64: 512, 512>}, {transform_indices = @transform_1, window_bounds = array<i64: 512, 1>}, {pipeline_mode = #tpu.pipeline_mode<synchronous>, transform_indices = @transform_2, window_bounds = array<i64: 1024, 128>}, {pipeline_mode = #tpu.pipeline_mode<synchronous>, transform_indices = @transform_3, window_bounds = array<i64: 512, 128>}, {transform_indices = @transform_4, window_bounds = array<i64: 512, 128>}, {transform_indices = @transform_5, window_bounds = array<i64: 512, 128>}]} {
    %c0_i32 = arith.constant 0 : i32
    %0 = arith.cmpi eq, %arg1, %c0_i32 : i32
    %1 = arith.extui %0 : i1 to i32
    %c0_i32_0 = arith.constant 0 : i32
    %2 = arith.cmpi ne, %1, %c0_i32_0 : i32
    scf.if %2 {
      %cst_8 = arith.constant 0.000000e+00 : f32
      %16 = vector.broadcast %cst_8 : f32 to vector<512x128xf32>
      %c0_9 = arith.constant 0 : index
      %c0_10 = arith.constant 0 : index
      %17 = vector.load %arg8[%c0_9, %c0_10] : memref<512x128xf32, #tpu.memory_space<vmem>>, vector<512x128xf32>
      tpu.vector_store %arg8[%c0_9, %c0_10], %16 {strides = array<i32>} : memref<512x128xf32, #tpu.memory_space<vmem>>, vector<512x128xf32>,
    } else {
    }
    %c0 = arith.constant 0 : index
    %c0_1 = arith.constant 0 : index
    %3 = vector.load %arg2[%c0, %c0_1] : memref<512x512xi8, #tpu.memory_space<vmem>>, vector<512x512xi8>
    %4 = arith.sitofp %3 : vector<512x512xi8> to vector<512x512xbf16>
    %c512_i32 = arith.constant 512 : i32
    %5 = arith.muli %arg1, %c512_i32 : i32
    %6 = tpu.assume_multiple %5, 512 : i32
    %7 = arith.index_cast %6 : i32 to index
    %c0_2 = arith.constant 0 : index
    %8 = vector.load %arg4[%7, %c0_2] : memref<1024x128xbf16, #tpu.memory_space<vmem>>, vector<512x128xbf16>
    %c0_3 = arith.constant 0 : index
    %c0_4 = arith.constant 0 : index
    %9 = vector.load %arg8[%c0_3, %c0_4] : memref<512x128xf32, #tpu.memory_space<vmem>>, vector<512x128xf32>
    %cst = arith.constant dense<0.000000e+00> : vector<512x128xf32>
    %10 = tpu.matmul %4, %8, %cst {dimension_numbers = #tpu.dot_dimension_numbers<[1], [0], [0], [1], [0, 0, 1, 1], [], []>} : vector<512x512xbf16>, vector<512x128xbf16>, vector<512x128xf32> -> vector<512x128xf32>
    %11 = arith.addf %9, %10 : vector<512x128xf32>
    %c0_5 = arith.constant 0 : index
    %c0_6 = arith.constant 0 : index
    %12 = vector.load %arg8[%c0_5, %c0_6] : memref<512x128xf32, #tpu.memory_space<vmem>>, vector<512x128xf32>
    tpu.vector_store %arg8[%c0_5, %c0_6], %11 {strides = array<i32>} : memref<512x128xf32, #tpu.memory_space<vmem>>, vector<512x128xf32>,
    %c1_i32 = arith.constant 1 : i32
    %13 = arith.cmpi eq, %arg1, %c1_i32 : i32
    %14 = arith.extui %13 : i1 to i32
    %c0_i32_7 = arith.constant 0 : i32
    %15 = arith.cmpi ne, %14, %c0_i32_7 : i32
    scf.if %15 {
      %c0_8 = arith.constant 0 : index
      %c0_9 = arith.constant 0 : index
      %16 = vector.load %arg8[%c0_8, %c0_9] : memref<512x128xf32, #tpu.memory_space<vmem>>, vector<512x128xf32>
      %c0_10 = arith.constant 0 : index
      %c0_11 = arith.constant 0 : index
      %17 = vector.load %arg3[%c0_10, %c0_11] : memref<512x1xf32, #tpu.memory_space<vmem>>, vector<512x1xf32>
      %18 = vector.broadcast %17 : vector<512x1xf32> to vector<512x128xf32>
      %19 = arith.mulf %16, %18 : vector<512x128xf32>
      %20 = arith.truncf %19 : vector<512x128xf32> to vector<512x128xbf16>
      %c0_12 = arith.constant 0 : index
      %c0_13 = arith.constant 0 : index
      %21 = vector.load %arg6[%c0_12, %c0_13] : memref<512x128xbf16, #tpu.memory_space<vmem>>, vector<512x128xbf16>
      tpu.vector_store %arg6[%c0_12, %c0_13], %20 {strides = array<i32>} : memref<512x128xbf16, #tpu.memory_space<vmem>>, vector<512x128xbf16>,
      %c0_14 = arith.constant 0 : index
      %c0_15 = arith.constant 0 : index
      %22 = vector.load %arg5[%c0_14, %c0_15] : memref<512x128xf32, #tpu.memory_space<vmem>>, vector<512x128xf32>
      %23 = arith.addf %22, %19 : vector<512x128xf32>
      %c0_16 = arith.constant 0 : index
      %c0_17 = arith.constant 0 : index
      %24 = vector.load %arg7[%c0_16, %c0_17] : memref<512x128xf32, #tpu.memory_space<vmem>>, vector<512x128xf32>
      tpu.vector_store %arg7[%c0_16, %c0_17], %23 {strides = array<i32>} : memref<512x128xf32, #tpu.memory_space<vmem>>, vector<512x128xf32>,
    } else {
    }
    return
  }
  func.func @transform_0(%arg0: i32, %arg1: i32) -> (i32, i32) {
    %c0_i32 = arith.constant 0 : i32
    return %arg0, %arg1 : i32, i32
  }
  func.func @transform_1(%arg0: i32, %arg1: i32) -> (i32, i32) {
    %c0_i32 = arith.constant 0 : i32
    %c0_i32_0 = arith.constant 0 : i32
    return %arg0, %c0_i32 : i32, i32
  }
  func.func @transform_2(%arg0: i32, %arg1: i32) -> (i32, i32) {
    %c0_i32 = arith.constant 0 : i32
    %c0_i32_0 = arith.constant 0 : i32
    %c0_i32_1 = arith.constant 0 : i32
    return %c0_i32, %c0_i32_0 : i32, i32
  }
  func.func @transform_3(%arg0: i32, %arg1: i32) -> (i32, i32) {
    %c0_i32 = arith.constant 0 : i32
    %c0_i32_0 = arith.constant 0 : i32
    return %arg0, %c0_i32 : i32, i32
  }
  func.func @transform_4(%arg0: i32, %arg1: i32) -> (i32, i32) {
    %c0_i32 = arith.constant 0 : i32
    %c0_i32_0 = arith.constant 0 : i32
    return %arg0, %c0_i32 : i32, i32
  }
  func.func @transform_5(%arg0: i32, %arg1: i32) -> (i32, i32) {
    %c0_i32 = arith.constant 0 : i32
    %c0_i32_0 = arith.constant 0 : i32
    return %arg0, %c0_i32 : i32, i32
  }
}

module attributes {stable_mosaic.version = 11 : i64} {
  func.func @_layer_kernel(%arg0: i32, %arg1: i32, %arg2: memref<512x512xi8, #tpu.memory_space<vmem>>, %arg3: memref<512x1xf32, #tpu.memory_space<vmem>>, %arg4: memref<1024x128xbf16, #tpu.memory_space<vmem>>, %arg5: memref<512x128xf32, #tpu.memory_space<vmem>>, %arg6: memref<512x128xbf16, #tpu.memory_space<vmem>>, %arg7: memref<512x128xf32, #tpu.memory_space<vmem>>, %arg8: memref<512x128xf32, #tpu.memory_space<vmem>>) attributes {dimension_semantics = [#tpu.dimension_semantics<parallel>, #tpu.dimension_semantics<arbitrary>], iteration_bounds = array<i64: 2, 2>, scalar_prefetch = 0 : i64, scratch_operands = 1 : i64, tpu.core_type = #tpu.core_type<tc>, window_params = [{transform_indices = @transform_0, window_bounds = array<i64: 512, 512>}, {transform_indices = @transform_1, window_bounds = array<i64: 512, 1>}, {pipeline_mode = #tpu.pipeline_mode<synchronous>, transform_indices = @transform_2, window_bounds = array<i64: 1024, 128>}, {transform_indices = @transform_3, window_bounds = array<i64: 512, 128>}, {transform_indices = @transform_4, window_bounds = array<i64: 512, 128>}, {transform_indices = @transform_5, window_bounds = array<i64: 512, 128>}]} {
    %c0_i32 = arith.constant 0 : i32
    %0 = arith.cmpi eq, %arg1, %c0_i32 : i32
    %1 = arith.extui %0 : i1 to i32
    %c0_i32_0 = arith.constant 0 : i32
    %2 = arith.cmpi ne, %1, %c0_i32_0 : i32
    scf.if %2 {
      %cst_8 = arith.constant 0.000000e+00 : f32
      %16 = vector.broadcast %cst_8 : f32 to vector<512x128xf32>
      %c0_9 = arith.constant 0 : index
      %c0_10 = arith.constant 0 : index
      %17 = vector.load %arg8[%c0_9, %c0_10] : memref<512x128xf32, #tpu.memory_space<vmem>>, vector<512x128xf32>
      tpu.vector_store %arg8[%c0_9, %c0_10], %16 {strides = array<i32>} : memref<512x128xf32, #tpu.memory_space<vmem>>, vector<512x128xf32>,
    } else {
    }
    %c0 = arith.constant 0 : index
    %c0_1 = arith.constant 0 : index
    %3 = vector.load %arg2[%c0, %c0_1] : memref<512x512xi8, #tpu.memory_space<vmem>>, vector<512x512xi8>
    %4 = arith.sitofp %3 : vector<512x512xi8> to vector<512x512xbf16>
    %c512_i32 = arith.constant 512 : i32
    %5 = arith.muli %arg1, %c512_i32 : i32
    %6 = tpu.assume_multiple %5, 512 : i32
    %7 = arith.index_cast %6 : i32 to index
    %c0_2 = arith.constant 0 : index
    %8 = vector.load %arg4[%7, %c0_2] : memref<1024x128xbf16, #tpu.memory_space<vmem>>, vector<512x128xbf16>
    %c0_3 = arith.constant 0 : index
    %c0_4 = arith.constant 0 : index
    %9 = vector.load %arg8[%c0_3, %c0_4] : memref<512x128xf32, #tpu.memory_space<vmem>>, vector<512x128xf32>
    %cst = arith.constant dense<0.000000e+00> : vector<512x128xf32>
    %10 = tpu.matmul %4, %8, %cst {dimension_numbers = #tpu.dot_dimension_numbers<[1], [0], [0], [1], [0, 0, 1, 1], [], []>} : vector<512x512xbf16>, vector<512x128xbf16>, vector<512x128xf32> -> vector<512x128xf32>
    %11 = arith.addf %9, %10 : vector<512x128xf32>
    %c0_5 = arith.constant 0 : index
    %c0_6 = arith.constant 0 : index
    %12 = vector.load %arg8[%c0_5, %c0_6] : memref<512x128xf32, #tpu.memory_space<vmem>>, vector<512x128xf32>
    tpu.vector_store %arg8[%c0_5, %c0_6], %11 {strides = array<i32>} : memref<512x128xf32, #tpu.memory_space<vmem>>, vector<512x128xf32>,
    %c1_i32 = arith.constant 1 : i32
    %13 = arith.cmpi eq, %arg1, %c1_i32 : i32
    %14 = arith.extui %13 : i1 to i32
    %c0_i32_7 = arith.constant 0 : i32
    %15 = arith.cmpi ne, %14, %c0_i32_7 : i32
    scf.if %15 {
      %c0_8 = arith.constant 0 : index
      %c0_9 = arith.constant 0 : index
      %16 = vector.load %arg8[%c0_8, %c0_9] : memref<512x128xf32, #tpu.memory_space<vmem>>, vector<512x128xf32>
      %c0_10 = arith.constant 0 : index
      %c0_11 = arith.constant 0 : index
      %17 = vector.load %arg3[%c0_10, %c0_11] : memref<512x1xf32, #tpu.memory_space<vmem>>, vector<512x1xf32>
      %18 = vector.broadcast %17 : vector<512x1xf32> to vector<512x128xf32>
      %19 = arith.mulf %16, %18 : vector<512x128xf32>
      %20 = arith.truncf %19 : vector<512x128xf32> to vector<512x128xbf16>
      %c0_12 = arith.constant 0 : index
      %c0_13 = arith.constant 0 : index
      %21 = vector.load %arg6[%c0_12, %c0_13] : memref<512x128xbf16, #tpu.memory_space<vmem>>, vector<512x128xbf16>
      tpu.vector_store %arg6[%c0_12, %c0_13], %20 {strides = array<i32>} : memref<512x128xbf16, #tpu.memory_space<vmem>>, vector<512x128xbf16>,
      %c0_14 = arith.constant 0 : index
      %c0_15 = arith.constant 0 : index
      %22 = vector.load %arg5[%c0_14, %c0_15] : memref<512x128xf32, #tpu.memory_space<vmem>>, vector<512x128xf32>
      %23 = arith.addf %22, %19 : vector<512x128xf32>
      %c0_16 = arith.constant 0 : index
      %c0_17 = arith.constant 0 : index
      %24 = vector.load %arg7[%c0_16, %c0_17] : memref<512x128xf32, #tpu.memory_space<vmem>>, vector<512x128xf32>
      tpu.vector_store %arg7[%c0_16, %c0_17], %23 {strides = array<i32>} : memref<512x128xf32, #tpu.memory_space<vmem>>, vector<512x128xf32>,
    } else {
    }
    return
  }
  func.func @transform_0(%arg0: i32, %arg1: i32) -> (i32, i32) {
    %c0_i32 = arith.constant 0 : i32
    return %arg0, %arg1 : i32, i32
  }
  func.func @transform_1(%arg0: i32, %arg1: i32) -> (i32, i32) {
    %c0_i32 = arith.constant 0 : i32
    %c0_i32_0 = arith.constant 0 : i32
    return %arg0, %c0_i32 : i32, i32
  }
  func.func @transform_2(%arg0: i32, %arg1: i32) -> (i32, i32) {
    %c0_i32 = arith.constant 0 : i32
    %c0_i32_0 = arith.constant 0 : i32
    %c0_i32_1 = arith.constant 0 : i32
    return %c0_i32, %c0_i32_0 : i32, i32
  }
  func.func @transform_3(%arg0: i32, %arg1: i32) -> (i32, i32) {
    %c0_i32 = arith.constant 0 : i32
    %c0_i32_0 = arith.constant 0 : i32
    return %arg0, %c0_i32 : i32, i32
  }
  func.func @transform_4(%arg0: i32, %arg1: i32) -> (i32, i32) {
    %c0_i32 = arith.constant 0 : i32
    %c0_i32_0 = arith.constant 0 : i32
    return %arg0, %c0_i32 : i32, i32
  }
  func.func @transform_5(%arg0: i32, %arg1: i32) -> (i32, i32) {
    %c0_i32 = arith.constant 0 : i32
    %c0_i32_0 = arith.constant 0 : i32
    return %arg0, %c0_i32 : i32, i32
  }
}

</mosaic_0001>

<bundles_post_ra>
// kernel: tpu_custom_call.1
= control target key start
LH: loop header
LB: loop body
LE: loop exit
PB: predicated region body
PF: predicated region fallthrough
CT: control target
= control target key end

     0   :  { %s4446_s0 = inlined_call_operand.vmem [shape: s8[1024,1024], index: 0, kind: input, shape index: {}]   ;;  %s4447_s1 = inlined_call_operand.vmem [shape: f32[1024,1], index: 1, kind: input, shape index: {}]   ;;  %s4448_s2 = inlined_call_operand.vmem [shape: bf16[1024,128], index: 2, kind: input, shape index: {}]   ;;  %s4449_s3 = inlined_call_operand.hbm [shape: f32[1024,128], index: 3, kind: input, shape index: {}, may-alias: {3,5}]   ;;  %s4450_s4 = inlined_call_operand.hbm [shape: bf16[1024,128], index: 4, kind: output, shape index: {0}]   ;;  %s4451_s5 = inlined_call_operand.hbm [shape: f32[1024,128], index: 5, kind: output, shape index: {1}, may-alias: {3,5}]  }
   0x1   :  { %4461 = sst [smem:[#allocation19_spill]] %s4449_s3 }
   0x2   :  { %11 = vsyncpa [#allocation5], 0 }
   0x3   :  { %12 = vsyncpa [#allocation6], 0 }
   0x4   :  { %14 = vsyncpa [#allocation6 + $0x1], 0 }
   0x5   :  { %15 = vsyncpa [#allocation9], 0 }
   0x6   :  { %17 = vsyncpa [#allocation9 + $0x1], 0  ;;  %s3684_s18 = smov 0   ;;  %s3686_s19 = smov 0  }
   0x7   :  { %s3688_s20 = smov 0   ;;  %s3690_s21 = smov 0  }
   0x8   :  { %s3692_s22 = smov 0   ;;  %s3694_s23 = smov 0  }
   0x9   :  { %s3696_s24 = smov 0   ;;  %s3698_s25 = smov 0  }
   0xa   :  { %s3700_s26 = smov 0   ;;  %s3702_s27 = smov 0  }
   0xb LB: > { %4462 = sst [smem:[#allocation13_spill]] %s3612_s20  ;;  %s2944_s28 = sadd.s32 4294967295, %s3640_s27   ;;  %s3640_s27 = sphi %s3702_s27, %s23_s27   ;;  %s3636_s26 = sphi %s3700_s26, %s4494_s26   ;;  %s3632_s25 = sphi %s3698_s25, %s4493_s25   ;;  %s3628_s24 = sphi %s3696_s24, %s4492_s24   ;;  %s3624_s23 = sphi %s3694_s23, %s4491_s23   ;;  %s3620_s22 = sphi %s3692_s22, %s4490_s22   ;;  %s3616_s21 = sphi %s3690_s21, %s4489_s21   ;;  %s3612_s20 = sphi %s3688_s20, %s4483_s20   ;;  %s3608_s19 = sphi %s3686_s19, %s4488_s19   ;;  %s3604_s18 = sphi %s3684_s18, %s4487_s18  }
   0xc   : > { %s2945_s29 = sadd.s32 4294967294, %s3640_s27   ;;  %s32_s30 = sadd.s32 1, %s3632_s25 }
   0xd   : > { %p33_p0 = scmp.ge.s32.totalorder %s32_s30, 2  ;;  %s35_s6 = sadd.s32 1, %s3636_s26 }
   0xe   : > { %p51_p1 = scmp.ne.s32.totalorder %s3620_s22, %s3616_s21  ;;  %p52_p2 = scmp.eq.s32.totalorder %s3640_s27, 0 }
   0xf   : > { %s4496_s30 = smov (%p33_p0, %s32_s30), 0  ;;  %s4498_s6 = smov (!%p33_p0, %s35_s6), %s3636_s26 }
  0x10   : > { %4463 = sst [smem:[#allocation14_spill]] %s4496_s30  ;;  %s44_s7 = sadd.s32 1, %s3620_s22 }
  0x11   : > { %p3745_p3 = por %p52_p2, %p51_p1  ;;  %p37_p4 = scmp.ge.s32.totalorder %s4498_s6, 2 }
  0x12   : > { %s40_s9 = ssub.s32 %s3632_s25, %s4496_s30  ;;  %s117_s10 = sadd.s32 1, %s3612_s20 }
  0x13   : > { %s4464_s8 = scalar_select %p3745_p3, 1, 0 }
  0x14   : > { %p130_p5 = scmp.ne.s32.totalorder %s3608_s19, %s3604_s18  ;;  %s4500_s6 = smov (%p37_p4, %s4498_s6), 0 }
  0x15   : > { %4465 = sst [smem:[#allocation15_spill]] %s4500_s6  ;;  %p131_p6 = scmp.eq.s32.totalorder %s2944_s28, 0 }
  0x16   : > { %p153_p7 = scmp.ne.s32.totalorder %s3612_s20, %s3608_s19  ;;  %s39_s11 = ssub.s32 %s3636_s26, %s4500_s6 }
  0x17   : > { %p154_p8 = scmp.eq.s32.totalorder %s2944_s28, 3  ;;  %s41_s12 = sor.u32 %s40_s9, %s39_s11 }
  0x18   : > { %p115_p9 = scmp.eq.s32.totalorder %s39_s11, 0  ;;  %p42_p10 = scmp.eq.s32.totalorder %s41_s12, 0 }
  0x19   : > { %p3760_p11 = por %p154_p8, %p153_p7  ;;  %p160_p12 = scmp.eq.s32.totalorder %s2945_s29, 3 }
  0x1a   : > { %s3765_s14 = scalar_select %p115_p9, %s3612_s20, %s117_s10  }
  0x1b   : > { %s4466_s13 = scalar_select %p3760_p11, 1, 0 }
  0x1c   : > { %4467 = sst [smem:[#allocation16_spill]] %s3765_s14  ;;  %p2946_p13 = scmp.ge.s32.totalorder %s3640_s27, 1 }
  0x1d   : > { %s3768_s15 = scalar_select %p42_p10, %s3620_s22, %s44_s7  }
  0x1e   : > { %p3774_p0 = por %p131_p6, %p130_p5  ;;  %p193_p1 = scmp.lt.s32.totalorder %s3640_s27, 5 }
  0x1f   : > { %4468 = sst [smem:[#allocation17_spill]] %s3768_s15  ;;  %p3782_p2 = por %p160_p12, %p130_p5 }
  0x20   : > { %s4469_s16 = scalar_select %p3774_p0, 1, 0 }
  0x21   : > { %s4470_s17 = scalar_select %p3782_p2, 1, 0 }
  0x22   : > { %s4459_s28 = sshll.u32 %s3628_s24, 13  ;;  %p3787_p4 = pnand %p2946_p13, %p193_p1 }
  0x23   : > { %4471 = sst [smem:[#allocation18_spill]] %s4470_s17  ;;  %s3642_s29 = smov [#allocation4]  }
  0x24   : > { %s4472_s9 = scalar_select %p3787_p4, 1, 0 }
  0x25   : > { %s211_s7 = sshll.u32 %s3642_s29, 4  ;;  %p3334_p6 = pneg %p3787_p4  ;;  %s212_s7 = int_to_ptr.vmem [resolvable:$true] %s211_s7 }
  0x26   : > { %s4473_s3 = sld [smem:[#allocation19_spill]] }
  0x27   : > { %p3800_p5 = pnand %p3334_p6, %p3774_p0 }
  0x29   : > { %p3472_p8 = pneg %p3800_p5 }
  0x2c   : > { %s210_s12 = scalar_lea.hbm %s4473_s3, %s4459_s28  ;;  %s3475_s14 = scalar_lea.hbm %s4473_s3, 16384 }
  0x2d   : > { %s3470_s30 = scalar_lea.hbm %s210_s12, 8192  ;;  %p3476_p12 = scmp.lt.s32.totalorder %s210_s12, %s4473_s3 }
  0x2e   : > { %p3471_p7 = scmp.ne.s32.totalorder %s210_s12, %s3470_s30  ;;  %p3477_p13 = scmp.lt.s32.totalorder %s3475_s14, %s3470_s30 }
  0x30   : > { %p3473_p9 = pnand %p3472_p8, %p3471_p7  ;;  %p3478_p1 = por %p3477_p13, %p3476_p12 }
  0x32   : > { %p3474_p10 = pneg %p3473_p9 }
  0x34   : > { %p3479_p6 = pnand %p3478_p1, %p3474_p10 }
  0x36   : > { %3482 = shalt.err (!%p3479_p6)
}
  0x37   : > { %s3483_s11 = scalar_lea.vmem %s212_s7, 8192  ;;  %p3491_p4 = scmp.lt.s32.totalorder %s212_s7, %s212_s7 }
  0x38   : > { %p3484_p2 = scmp.ne.s32.totalorder %s212_s7, %s3483_s11  ;;  %p3492_p3 = scmp.lt.s32.totalorder %s3483_s11, %s3483_s11 }
  0x3a   : > { %p3486_p11 = pnand %p3484_p2, %p3472_p8  ;;  %p3493_p7 = por %p3492_p3, %p3491_p4 }
  0x3c   : > { %p3487_p0 = pneg %p3486_p11 }
  0x3e   : > { %p3494_p9 = pnand %p3493_p7, %p3487_p0 }
  0x40   : > { %3497 = shalt.err (!%p3494_p9)
}
  0x41   : > { %s3643_s28 = smov 128   ;;  %s3644_s15 = smov 8  }
  0x42   : > { %3337 = dma.hbm_to_vmem [thread:$0]  (!%p3800_p5), %s210_s12, 8192, %s212_s7, [#allocation5], %s3643_s28, %s3643_s28, %s3644_s15  }
  0x43   : > { %p2949_p12 = scmp.ge.s32.totalorder %s3640_s27, 4 }
  0x44   : > { %p4475_p10 = scmp.ne.s32.totalorder (!%p2949_p12), %s4464_s8, 0 }
  0x45   : > { %221 = sbr.rel (%p2949_p12) target bundleno = 113 (0x71), region = 24 }
  0x4a   : > { %224 = sbr.rel (!%p4475_p10) target bundleno = 113 (0x71), region = 28  ;;  %s226_s20 = sand.u32 (%p4475_p10), 1, %s3620_s22  }
  0x4b   : > { %s2952_s30 = sshll.u32 (%p4475_p10), %s3632_s25, 2  ;;  %s2950_s14 = sshll.u32 (%p4475_p10), %s226_s20, 9 }
  0x4c   : > { %s3070_s29 = sshll.u32 (%p4475_p10), %s3636_s26, 7  ;;  %s3828_s8 = scalar_lea.vmem (%p4475_p10), [#allocation3], %s2950_s14 }
  0x4d   : > { %s232_s10 = sadd.s32 (%p4475_p10), %s3070_s29, %s2952_s30 }
  0x4e   : > { %s2954_s11 = sshll.u32 (%p4475_p10), %s232_s10, 3 }
  0x4f   : > { %s3823_s6 = scalar_lea.vmem %s4446_s0, %s2954_s11 }
  0x50   : > { %v247_v0 = vld [vmem:[%s3823_s6] sm:$0xff]  ;;  %v249_v1 = vld [vmem:[%s3823_s6 + $0x8] sm:$0xff]  ;;  %v251_v2 = vld [vmem:[%s3823_s6 + $0x10] sm:$0xff] }
  0x51   : > { %248 = vst [vmem:[%s3828_s8] sm:$0xff] %v247_v0  ;;  %250 = vst [vmem:[%s3828_s8 + $0x8] sm:$0xff] %v249_v1  ;;  %v253_v3 = vld [vmem:[%s3823_s6 + $0x18] sm:$0xff]  ;;  %v255_v4 = vld [vmem:[%s3823_s6 + $0x40] sm:$0xff] }
  0x52   : > { %252 = vst [vmem:[%s3828_s8 + $0x10] sm:$0xff] %v251_v2  ;;  %v257_v5 = vld [vmem:[%s3823_s6 + $0x48] sm:$0xff]  ;;  %254 = vst [vmem:[%s3828_s8 + $0x18] sm:$0xff] %v253_v3  ;;  %v259_v6 = vld [vmem:[%s3823_s6 + $0x50] sm:$0xff] }
  0x53   : > { %256 = vst [vmem:[%s3828_s8 + $0x20] sm:$0xff] %v255_v4  ;;  %258 = vst [vmem:[%s3828_s8 + $0x28] sm:$0xff] %v257_v5  ;;  %v261_v7 = vld [vmem:[%s3823_s6 + $0x58] sm:$0xff]  ;;  %v263_v8 = vld [vmem:[%s3823_s6 + $0x80] sm:$0xff] }
  0x54   : > { %260 = vst [vmem:[%s3828_s8 + $0x30] sm:$0xff] %v259_v6  ;;  %262 = vst [vmem:[%s3828_s8 + $0x38] sm:$0xff] %v261_v7  ;;  %v265_v9 = vld [vmem:[%s3823_s6 + $0x88] sm:$0xff]  ;;  %v267_v10 = vld [vmem:[%s3823_s6 + $0x90] sm:$0xff] }
  0x55   : > { %264 = vst [vmem:[%s3828_s8 + $0x40] sm:$0xff] %v263_v8  ;;  %v269_v11 = vld [vmem:[%s3823_s6 + $0x98] sm:$0xff]  ;;  %266 = vst [vmem:[%s3828_s8 + $0x48] sm:$0xff] %v265_v9  ;;  %v271_v12 = vld [vmem:[%s3823_s6 + $0xc0] sm:$0xff] }
  0x56   : > { %268 = vst [vmem:[%s3828_s8 + $0x50] sm:$0xff] %v267_v10  ;;  %270 = vst [vmem:[%s3828_s8 + $0x58] sm:$0xff] %v269_v11  ;;  %v273_v13 = vld [vmem:[%s3823_s6 + $0xc8] sm:$0xff]  ;;  %v275_v14 = vld [vmem:[%s3823_s6 + $0xd0] sm:$0xff] }
  0x57   : > { %272 = vst [vmem:[%s3828_s8 + $0x60] sm:$0xff] %v271_v12  ;;  %274 = vst [vmem:[%s3828_s8 + $0x68] sm:$0xff] %v273_v13  ;;  %v277_v15 = vld [vmem:[%s3823_s6 + $0xd8] sm:$0xff]  ;;  %v279_v16 = vld [vmem:[%s3823_s6 + $0x100] sm:$0xff] }
  0x58   : > { %276 = vst [vmem:[%s3828_s8 + $0x70] sm:$0xff] %v275_v14  ;;  %v281_v17 = vld [vmem:[%s3823_s6 + $0x108] sm:$0xff]  ;;  %278 = vst [vmem:[%s3828_s8 + $0x78] sm:$0xff] %v277_v15  ;;  %v283_v18 = vld [vmem:[%s3823_s6 + $0x110] sm:$0xff] }
  0x59   : > { %280 = vst [vmem:[%s3828_s8 + $0x80] sm:$0xff] %v279_v16  ;;  %282 = vst [vmem:[%s3828_s8 + $0x88] sm:$0xff] %v281_v17  ;;  %v285_v19 = vld [vmem:[%s3823_s6 + $0x118] sm:$0xff]  ;;  %v287_v20 = vld [vmem:[%s3823_s6 + $0x140] sm:$0xff] }
  0x5a   : > { %284 = vst [vmem:[%s3828_s8 + $0x90] sm:$0xff] %v283_v18  ;;  %286 = vst [vmem:[%s3828_s8 + $0x98] sm:$0xff] %v285_v19  ;;  %v289_v21 = vld [vmem:[%s3823_s6 + $0x148] sm:$0xff]  ;;  %v291_v22 = vld [vmem:[%s3823_s6 + $0x150] sm:$0xff] }
  0x5b   : > { %288 = vst [vmem:[%s3828_s8 + $0xa0] sm:$0xff] %v287_v20  ;;  %v293_v23 = vld [vmem:[%s3823_s6 + $0x158] sm:$0xff]  ;;  %290 = vst [vmem:[%s3828_s8 + $0xa8] sm:$0xff] %v289_v21  ;;  %v295_v24 = vld [vmem:[%s3823_s6 + $0x180] sm:$0xff] }
  0x5c   : > { %292 = vst [vmem:[%s3828_s8 + $0xb0] sm:$0xff] %v291_v22  ;;  %294 = vst [vmem:[%s3828_s8 + $0xb8] sm:$0xff] %v293_v23  ;;  %v297_v25 = vld [vmem:[%s3823_s6 + $0x188] sm:$0xff]  ;;  %v299_v26 = vld [vmem:[%s3823_s6 + $0x190] sm:$0xff] }
  0x5d   : > { %296 = vst [vmem:[%s3828_s8 + $0xc0] sm:$0xff] %v295_v24  ;;  %298 = vst [vmem:[%s3828_s8 + $0xc8] sm:$0xff] %v297_v25  ;;  %v301_v27 = vld [vmem:[%s3823_s6 + $0x198] sm:$0xff]  ;;  %v303_v28 = vld [vmem:[%s3823_s6 + $0x1c0] sm:$0xff] }
  0x5e   : > { %300 = vst [vmem:[%s3828_s8 + $0xd0] sm:$0xff] %v299_v26  ;;  %v305_v29 = vld [vmem:[%s3823_s6 + $0x1c8] sm:$0xff]  ;;  %302 = vst [vmem:[%s3828_s8 + $0xd8] sm:$0xff] %v301_v27  ;;  %v307_v30 = vld [vmem:[%s3823_s6 + $0x1d0] sm:$0xff] }
  0x5f   : > { %304 = vst [vmem:[%s3828_s8 + $0xe0] sm:$0xff] %v303_v28  ;;  %306 = vst [vmem:[%s3828_s8 + $0xe8] sm:$0xff] %v305_v29  ;;  %v309_v31 = vld [vmem:[%s3823_s6 + $0x1d8] sm:$0xff]  ;;  %v311_v32 = vld [vmem:[%s3823_s6 + $0x200] sm:$0xff] }
  0x60   : > { %308 = vst [vmem:[%s3828_s8 + $0xf0] sm:$0xff] %v307_v30  ;;  %310 = vst [vmem:[%s3828_s8 + $0xf8] sm:$0xff] %v309_v31  ;;  %v313_v33 = vld [vmem:[%s3823_s6 + $0x208] sm:$0xff]  ;;  %v315_v34 = vld [vmem:[%s3823_s6 + $0x210] sm:$0xff] }
  0x61   : > { %312 = vst [vmem:[%s3828_s8 + $0x100] sm:$0xff] %v311_v32  ;;  %v317_v35 = vld [vmem:[%s3823_s6 + $0x218] sm:$0xff]  ;;  %314 = vst [vmem:[%s3828_s8 + $0x108] sm:$0xff] %v313_v33  ;;  %v319_v36 = vld [vmem:[%s3823_s6 + $0x240] sm:$0xff] }
  0x62   : > { %316 = vst [vmem:[%s3828_s8 + $0x110] sm:$0xff] %v315_v34  ;;  %318 = vst [vmem:[%s3828_s8 + $0x118] sm:$0xff] %v317_v35  ;;  %v321_v37 = vld [vmem:[%s3823_s6 + $0x248] sm:$0xff]  ;;  %v323_v38 = vld [vmem:[%s3823_s6 + $0x250] sm:$0xff] }
  0x63   : > { %320 = vst [vmem:[%s3828_s8 + $0x120] sm:$0xff] %v319_v36  ;;  %322 = vst [vmem:[%s3828_s8 + $0x128] sm:$0xff] %v321_v37  ;;  %v325_v39 = vld [vmem:[%s3823_s6 + $0x258] sm:$0xff]  ;;  %v327_v40 = vld [vmem:[%s3823_s6 + $0x280] sm:$0xff] }
  0x64   : > { %324 = vst [vmem:[%s3828_s8 + $0x130] sm:$0xff] %v323_v38  ;;  %v329_v41 = vld [vmem:[%s3823_s6 + $0x288] sm:$0xff]  ;;  %326 = vst [vmem:[%s3828_s8 + $0x138] sm:$0xff] %v325_v39  ;;  %v331_v42 = vld [vmem:[%s3823_s6 + $0x290] sm:$0xff] }
  0x65   : > { %328 = vst [vmem:[%s3828_s8 + $0x140] sm:$0xff] %v327_v40  ;;  %330 = vst [vmem:[%s3828_s8 + $0x148] sm:$0xff] %v329_v41  ;;  %v333_v43 = vld [vmem:[%s3823_s6 + $0x298] sm:$0xff]  ;;  %v335_v44 = vld [vmem:[%s3823_s6 + $0x2c0] sm:$0xff] }
  0x66   : > { %332 = vst [vmem:[%s3828_s8 + $0x150] sm:$0xff] %v331_v42  ;;  %334 = vst [vmem:[%s3828_s8 + $0x158] sm:$0xff] %v333_v43  ;;  %v337_v45 = vld [vmem:[%s3823_s6 + $0x2c8] sm:$0xff]  ;;  %v339_v46 = vld [vmem:[%s3823_s6 + $0x2d0] sm:$0xff] }
  0x67   : > { %336 = vst [vmem:[%s3828_s8 + $0x160] sm:$0xff] %v335_v44  ;;  %v341_v47 = vld [vmem:[%s3823_s6 + $0x2d8] sm:$0xff]  ;;  %338 = vst [vmem:[%s3828_s8 + $0x168] sm:$0xff] %v337_v45  ;;  %v343_v48 = vld [vmem:[%s3823_s6 + $0x300] sm:$0xff] }
  0x68   : > { %340 = vst [vmem:[%s3828_s8 + $0x170] sm:$0xff] %v339_v46  ;;  %342 = vst [vmem:[%s3828_s8 + $0x178] sm:$0xff] %v341_v47  ;;  %v345_v49 = vld [vmem:[%s3823_s6 + $0x308] sm:$0xff]  ;;  %v347_v50 = vld [vmem:[%s3823_s6 + $0x310] sm:$0xff] }
  0x69   : > { %344 = vst [vmem:[%s3828_s8 + $0x180] sm:$0xff] %v343_v48  ;;  %346 = vst [vmem:[%s3828_s8 + $0x188] sm:$0xff] %v345_v49  ;;  %v349_v51 = vld [vmem:[%s3823_s6 + $0x318] sm:$0xff]  ;;  %v351_v52 = vld [vmem:[%s3823_s6 + $0x340] sm:$0xff] }
  0x6a   : > { %348 = vst [vmem:[%s3828_s8 + $0x190] sm:$0xff] %v347_v50  ;;  %v353_v53 = vld [vmem:[%s3823_s6 + $0x348] sm:$0xff]  ;;  %350 = vst [vmem:[%s3828_s8 + $0x198] sm:$0xff] %v349_v51  ;;  %v355_v54 = vld [vmem:[%s3823_s6 + $0x350] sm:$0xff] }
  0x6b   : > { %352 = vst [vmem:[%s3828_s8 + $0x1a0] sm:$0xff] %v351_v52  ;;  %354 = vst [vmem:[%s3828_s8 + $0x1a8] sm:$0xff] %v353_v53  ;;  %v357_v55 = vld [vmem:[%s3823_s6 + $0x358] sm:$0xff]  ;;  %v359_v56 = vld [vmem:[%s3823_s6 + $0x380] sm:$0xff] }
  0x6c   : > { %356 = vst [vmem:[%s3828_s8 + $0x1b0] sm:$0xff] %v355_v54  ;;  %358 = vst [vmem:[%s3828_s8 + $0x1b8] sm:$0xff] %v357_v55  ;;  %v361_v57 = vld [vmem:[%s3823_s6 + $0x388] sm:$0xff]  ;;  %v363_v58 = vld [vmem:[%s3823_s6 + $0x390] sm:$0xff] }
  0x6d   : > { %360 = vst [vmem:[%s3828_s8 + $0x1c0] sm:$0xff] %v359_v56  ;;  %v365_v59 = vld [vmem:[%s3823_s6 + $0x398] sm:$0xff]  ;;  %362 = vst [vmem:[%s3828_s8 + $0x1c8] sm:$0xff] %v361_v57  ;;  %v367_v60 = vld [vmem:[%s3823_s6 + $0x3c0] sm:$0xff] }
  0x6e   : > { %364 = vst [vmem:[%s3828_s8 + $0x1d0] sm:$0xff] %v363_v58  ;;  %366 = vst [vmem:[%s3828_s8 + $0x1d8] sm:$0xff] %v365_v59  ;;  %v369_v61 = vld [vmem:[%s3823_s6 + $0x3c8] sm:$0xff]  ;;  %v371_v62 = vld [vmem:[%s3823_s6 + $0x3d0] sm:$0xff] }
  0x6f   : > { %368 = vst [vmem:[%s3828_s8 + $0x1e0] sm:$0xff] %v367_v60  ;;  %370 = vst [vmem:[%s3828_s8 + $0x1e8] sm:$0xff] %v369_v61  ;;  %v373_v63 = vld [vmem:[%s3823_s6 + $0x3d8] sm:$0xff] }
  0x70   : > { %372 = vst [vmem:[%s3828_s8 + $0x1f0] sm:$0xff] %v371_v62  ;;  %374 = vst [vmem:[%s3828_s8 + $0x1f8] sm:$0xff] %v373_v63 }
  0x71 PF: > { %p4476_p3 = scmp.ne.s32.totalorder %s4472_s9, 0 }
  0x72   : > { %s395_s3 = sand.u32 (!%p4476_p3), 1, %s3616_s21   ;;  %p4477_p11 = scmp.ne.s32.totalorder (!%p4476_p3), %s4469_s16, 0 }
  0x73   : > { %392 = sbr.rel (%p4476_p3) target bundleno = 988 (0x3dc), region = 55  ;;  %s2956_s17 = sshll.u32 (!%p4476_p3), %s395_s3, 9 }
  0x74   : > { %s3958_s28 = scalar_lea.vmem (!%p4476_p3), [#allocation3], %s2956_s17 }
  0x78   : > { %3591 = dma.done.wait (%p4477_p11), [#allocation5], 8192  }
  0x79   : > { %3593 = vsyncadd (%p4477_p11), [#allocation5], 4294959104  ;;  %s3965_s7 = sand.u32 1, %s3608_s19   ;;  %s2959_s12 = sshll.u32 %s3628_s24, 6 }
  0x7a   : > { %s2957_s9 = sshll.u32 %s3965_s7, 8  ;;  %s2958_s15 = sshll.u32 %s3965_s7, 9 }
  0x7b   : > { %p439_p0 = scmp.lt.s32.totalorder %s2959_s12, 127  ;;  %s3975_s29 = scalar_lea.vmem [#allocation7], %s2957_s9 }
  0x7c   : > { %s3977_s16 = scalar_lea.vmem [#allocation8], %s2958_s15  ;;  %p2961_p2 = scmp.ne.s32.totalorder %s3624_s23, 0 }
  0x7d   : > { %s4502_s12 = smov (!%p439_p0, %s2959_s12), 127 }
  0x7e   : > { %s2960_s21 = sshll.u32 %s4502_s12, 3  ;;  %451 = sbr.rel (%p2961_p2) target bundleno = 164 (0xa4), region = 67 }
  0x7f   : > { %s3973_s14 = scalar_lea.vmem %s4447_s1, %s2960_s21 }
  0x83   : > { %v3645_v0 = vmov 0.0  }
  0x84   : > { %452 = vst [vmem:[#allocation2 + $0xb0] sm:$0xff] %v3645_v0  ;;  %453 = vst [vmem:[#allocation2 + $0x1b0] sm:$0xff] %v3645_v0 }
  0x85   : > { %454 = vst [vmem:[#allocation2 + $0xd8] sm:$0xff] %v3645_v0  ;;  %455 = vst [vmem:[#allocation2 + $0x18] sm:$0xff] %v3645_v0 }
  0x86   : > { %456 = vst [vmem:[#allocation2 + $0x50] sm:$0xff] %v3645_v0  ;;  %457 = vst [vmem:[#allocation2 + $0x168] sm:$0xff] %v3645_v0 }
  0x87   : > { %458 = vst [vmem:[#allocation2 + $0x130] sm:$0xff] %v3645_v0  ;;  %459 = vst [vmem:[#allocation2 + $0x48] sm:$0xff] %v3645_v0 }
  0x88   : > { %460 = vst [vmem:[#allocation2 + $0x180] sm:$0xff] %v3645_v0  ;;  %461 = vst [vmem:[#allocation2 + $0x110] sm:$0xff] %v3645_v0 }
  0x89   : > { %462 = vst [vmem:[#allocation2 + $0x118] sm:$0xff] %v3645_v0  ;;  %463 = vst [vmem:[#allocation2 + $0x98] sm:$0xff] %v3645_v0 }
  0x8a   : > { %464 = vst [vmem:[#allocation2 + $0x120] sm:$0xff] %v3645_v0  ;;  %465 = vst [vmem:[#allocation2 + $0x150] sm:$0xff] %v3645_v0 }
  0x8b   : > { %466 = vst [vmem:[#allocation2 + $0x108] sm:$0xff] %v3645_v0  ;;  %467 = vst [vmem:[#allocation2 + $0x60] sm:$0xff] %v3645_v0 }
  0x8c   : > { %468 = vst [vmem:[#allocation2 + $0xe0] sm:$0xff] %v3645_v0  ;;  %469 = vst [vmem:[#allocation2 + $0x188] sm:$0xff] %v3645_v0 }
  0x8d   : > { %470 = vst [vmem:[#allocation2 + $0x138] sm:$0xff] %v3645_v0  ;;  %471 = vst [vmem:[#allocation2 + $0x140] sm:$0xff] %v3645_v0 }
  0x8e   : > { %472 = vst [vmem:[#allocation2 + $0x80] sm:$0xff] %v3645_v0  ;;  %473 = vst [vmem:[#allocation2 + $0x1a8] sm:$0xff] %v3645_v0 }
  0x8f   : > { %474 = vst [vmem:[#allocation2 + $0x1b8] sm:$0xff] %v3645_v0  ;;  %475 = vst [vmem:[#allocation2 + $0x28] sm:$0xff] %v3645_v0 }
  0x90   : > { %476 = vst [vmem:[#allocation2 + $0x1e8] sm:$0xff] %v3645_v0  ;;  %477 = vst [vmem:[#allocation2 + $0xf8] sm:$0xff] %v3645_v0 }
  0x91   : > { %478 = vst [vmem:[#allocation2 + $0x160] sm:$0xff] %v3645_v0  ;;  %479 = vst [vmem:[#allocation2 + $0x30] sm:$0xff] %v3645_v0 }
  0x92   : > { %480 = vst [vmem:[#allocation2 + $0x1e0] sm:$0xff] %v3645_v0  ;;  %481 = vst [vmem:[#allocation2] sm:$0xff] %v3645_v0 }
  0x93   : > { %482 = vst [vmem:[#allocation2 + $0xf0] sm:$0xff] %v3645_v0  ;;  %483 = vst [vmem:[#allocation2 + $0x8] sm:$0xff] %v3645_v0 }
  0x94   : > { %484 = vst [vmem:[#allocation2 + $0x148] sm:$0xff] %v3645_v0  ;;  %485 = vst [vmem:[#allocation2 + $0x1d0] sm:$0xff] %v3645_v0 }
  0x95   : > { %486 = vst [vmem:[#allocation2 + $0x100] sm:$0xff] %v3645_v0  ;;  %487 = vst [vmem:[#allocation2 + $0xc8] sm:$0xff] %v3645_v0 }
  0x96   : > { %488 = vst [vmem:[#allocation2 + $0x40] sm:$0xff] %v3645_v0  ;;  %489 = vst [vmem:[#allocation2 + $0x1f8] sm:$0xff] %v3645_v0 }
  0x97   : > { %490 = vst [vmem:[#allocation2 + $0x20] sm:$0xff] %v3645_v0  ;;  %491 = vst [vmem:[#allocation2 + $0x128] sm:$0xff] %v3645_v0 }
  0x98   : > { %492 = vst [vmem:[#allocation2 + $0x1a0] sm:$0xff] %v3645_v0  ;;  %493 = vst [vmem:[#allocation2 + $0x1f0] sm:$0xff] %v3645_v0 }
  0x99   : > { %494 = vst [vmem:[#allocation2 + $0xe8] sm:$0xff] %v3645_v0  ;;  %495 = vst [vmem:[#allocation2 + $0x78] sm:$0xff] %v3645_v0 }
  0x9a   : > { %496 = vst [vmem:[#allocation2 + $0x70] sm:$0xff] %v3645_v0  ;;  %497 = vst [vmem:[#allocation2 + $0x90] sm:$0xff] %v3645_v0 }
  0x9b   : > { %498 = vst [vmem:[#allocation2 + $0x1d8] sm:$0xff] %v3645_v0  ;;  %499 = vst [vmem:[#allocation2 + $0xd0] sm:$0xff] %v3645_v0 }
  0x9c   : > { %500 = vst [vmem:[#allocation2 + $0xb8] sm:$0xff] %v3645_v0  ;;  %501 = vst [vmem:[#allocation2 + $0x88] sm:$0xff] %v3645_v0 }
  0x9d   : > { %502 = vst [vmem:[#allocation2 + $0xa8] sm:$0xff] %v3645_v0  ;;  %503 = vst [vmem:[#allocation2 + $0x1c8] sm:$0xff] %v3645_v0 }
  0x9e   : > { %504 = vst [vmem:[#allocation2 + $0x170] sm:$0xff] %v3645_v0  ;;  %505 = vst [vmem:[#allocation2 + $0x178] sm:$0xff] %v3645_v0 }
  0x9f   : > { %506 = vst [vmem:[#allocation2 + $0x68] sm:$0xff] %v3645_v0  ;;  %507 = vst [vmem:[#allocation2 + $0x190] sm:$0xff] %v3645_v0 }
  0xa0   : > { %508 = vst [vmem:[#allocation2 + $0x198] sm:$0xff] %v3645_v0  ;;  %509 = vst [vmem:[#allocation2 + $0x38] sm:$0xff] %v3645_v0 }
  0xa1   : > { %510 = vst [vmem:[#allocation2 + $0xc0] sm:$0xff] %v3645_v0  ;;  %511 = vst [vmem:[#allocation2 + $0x1c0] sm:$0xff] %v3645_v0 }
  0xa2   : > { %512 = vst [vmem:[#allocation2 + $0x158] sm:$0xff] %v3645_v0  ;;  %513 = vst [vmem:[#allocation2 + $0x10] sm:$0xff] %v3645_v0 }
  0xa3   : > { %514 = vst [vmem:[#allocation2 + $0x58] sm:$0xff] %v3645_v0  ;;  %515 = vst [vmem:[#allocation2 + $0xa0] sm:$0xff] %v3645_v0 }
  0xa4 PF: > { %s2962_s10 = sshll.u32 %s3624_s23, 9  ;;  %v4046_v1 = vld [vmem:[%s3958_s28 + $0x8] sm:$0xff]  ;;  %v4049_v2 = vld [vmem:[%s3958_s28 + $0x18] sm:$0xff]  ;;  %v3646_v3 = vmov 0   ;;  %v516_v37 = vld [vmem:[%s3958_s28] sm:$0xff]  ;;  %p2996_p4 = scmp.ne.s32.totalorder %s3624_s23, 1 }
  0xa5   : > { %1033 = vmatprep.subr.bf16.mxu0 %v3646_v3  ;;  %1322 = vmatprep.subr.bf16.mxu1 %v3646_v3  ;;  %s709_s11 = sshra.s32 %s2962_s10, 3  ;;  %v581_v4 = vunpack.c.l.s8.bf16 %v4046_v1  ;;  %v583_v5 = vunpack.c.l.s8.bf16 %v4049_v2  ;;  %v518_v39 = vld [vmem:[%s3958_s28 + $0x10] sm:$0xff]  ;;  %v580_v40 = vunpack.c.l.s8.bf16 %v516_v37  ;;  %v585_v41 = vunpack.c.h.s8.bf16 %v4046_v1  ;;  %v521_v44 = vld [vmem:[%s3958_s28 + $0x28] sm:$0xff]  ;;  %v523_v45 = vld [vmem:[%s3958_s28 + $0x38] sm:$0xff] }
  0xa6   : > { %s2963_s6 = sshll.u32 %s709_s11, 2  ;;  %v582_v42 = vunpack.c.l.s8.bf16 %v518_v39  ;;  %v587_v43 = vunpack.c.h.s8.bf16 %v4049_v2  ;;  %v584_v46 = vunpack.c.h.s8.bf16 %v516_v37  ;;  %v586_v47 = vunpack.c.h.s8.bf16 %v518_v39  ;;  %v520_v50 = vld [vmem:[%s3958_s28 + $0x20] sm:$0xff]  ;;  %v522_v51 = vld [vmem:[%s3958_s28 + $0x30] sm:$0xff]  ;;  %v525_v56 = vld [vmem:[%s3958_s28 + $0x48] sm:$0xff] }
  0xa7   : > { %s4058_s17 = scalar_lea.vmem %s4448_s2, %s2963_s6  ;;  %1065 = vmatprep.mubr.bf16.mxu0 %v581_v4  ;;  %1354 = vmatprep.mubr.bf16.mxu1 %v583_v5  ;;  %v589_v48 = vunpack.c.l.s8.bf16 %v521_v44  ;;  %v591_v49 = vunpack.c.l.s8.bf16 %v523_v45  ;;  %v588_v52 = vunpack.c.l.s8.bf16 %v520_v50  ;;  %v590_v53 = vunpack.c.l.s8.bf16 %v522_v51  ;;  %v527_v57 = vld [vmem:[%s3958_s28 + $0x58] sm:$0xff]  ;;  %v524_v62 = vld [vmem:[%s3958_s28 + $0x40] sm:$0xff]  ;;  %v526_v63 = vld [vmem:[%s3958_s28 + $0x50] sm:$0xff] }
  0xa8   : > { %v3436_v6 = vld [vmem:[%s4058_s17 + $0x38] sm:$0xff]   ;;  %v3438_v8 = vld [vmem:[%s4058_s17 + $0x30] sm:$0xff]   ;;  %v3440_v10 = vld [vmem:[%s4058_s17 + $0x28] sm:$0xff]   ;;  %v593_v54 = vunpack.c.h.s8.bf16 %v521_v44  ;;  %v595_v55 = vunpack.c.h.s8.bf16 %v523_v45  ;;  %v592_v58 = vunpack.c.h.s8.bf16 %v520_v50  ;;  %v594_v59 = vunpack.c.h.s8.bf16 %v522_v51 }
  0xa9   : > { %v3437_v7 = vld [vmem:[%s4058_s17 + $0xb8] sm:$0xff]   ;;  %1034 = vmatpush1.bf16.msra.mxu0 %v3436_v6  ;;  %v3439_v9 = vld [vmem:[%s4058_s17 + $0xb0] sm:$0xff]   ;;  %v3441_v11 = vld [vmem:[%s4058_s17 + $0xa8] sm:$0xff]   ;;  %v597_v60 = vunpack.c.l.s8.bf16 %v525_v56  ;;  %v599_v61 = vunpack.c.l.s8.bf16 %v527_v57  ;;  %v596_v0 = vunpack.c.l.s8.bf16 %v524_v62  ;;  %v598_v1 = vunpack.c.l.s8.bf16 %v526_v63 }
  0xaa   : > { %1323 = vmatpush1.bf16.msra.mxu1 %v3437_v7  ;;  %1035 = vmatprep.subr.bf16.mxu0 %v3646_v3  ;;  %v3442_v12 = vld [vmem:[%s4058_s17 + $0x20] sm:$0xff]   ;;  %v3444_v14 = vld [vmem:[%s4058_s17 + $0x18] sm:$0xff]   ;;  %v3446_v16 = vld [vmem:[%s4058_s17 + $0x10] sm:$0xff]   ;;  %v601_v2 = vunpack.c.h.s8.bf16 %v525_v56  ;;  %v600_v6 = vunpack.c.h.s8.bf16 %v524_v62  ;;  %v602_v7 = vunpack.c.h.s8.bf16 %v526_v63 }
  0xab   : > { %1324 = vmatprep.subr.bf16.mxu1 %v3646_v3  ;;  %v3443_v13 = vld [vmem:[%s4058_s17 + $0xa0] sm:$0xff]   ;;  %v3445_v15 = vld [vmem:[%s4058_s17 + $0x98] sm:$0xff]   ;;  %v3447_v17 = vld [vmem:[%s4058_s17 + $0x90] sm:$0xff]  }
  0xac   : > { %v3448_v18 = vld [vmem:[%s4058_s17 + $0x8] sm:$0xff]   ;;  %v3450_v20 = vld [vmem:[%s4058_s17] sm:$0xff]   ;;  %v3452_v22 = vld [vmem:[%s4058_s17 + $0x78] sm:$0xff]  }
  0xad   : > { %1036 = vmatpush1.bf16.msra.mxu0 %v3438_v8  ;;  %v3449_v19 = vld [vmem:[%s4058_s17 + $0x88] sm:$0xff]   ;;  %v3451_v21 = vld [vmem:[%s4058_s17 + $0x80] sm:$0xff]   ;;  %v3453_v23 = vld [vmem:[%s4058_s17 + $0xf8] sm:$0xff]  }
  0xae   : > { %1325 = vmatpush1.bf16.msra.mxu1 %v3439_v9  ;;  %1037 = vmatprep.subr.bf16.mxu0 %v3646_v3  ;;  %v3454_v24 = vld [vmem:[%s4058_s17 + $0x70] sm:$0xff]   ;;  %v3456_v26 = vld [vmem:[%s4058_s17 + $0x68] sm:$0xff]   ;;  %v3458_v28 = vld [vmem:[%s4058_s17 + $0x60] sm:$0xff]  }
  0xaf   : > { %1326 = vmatprep.subr.bf16.mxu1 %v3646_v3  ;;  %v3455_v25 = vld [vmem:[%s4058_s17 + $0xf0] sm:$0xff]   ;;  %v3457_v27 = vld [vmem:[%s4058_s17 + $0xe8] sm:$0xff]   ;;  %v3459_v29 = vld [vmem:[%s4058_s17 + $0xe0] sm:$0xff]  }
  0xb0   : > { %v3460_v30 = vld [vmem:[%s4058_s17 + $0x58] sm:$0xff]   ;;  %v3462_v32 = vld [vmem:[%s4058_s17 + $0x50] sm:$0xff]   ;;  %v3464_v34 = vld [vmem:[%s4058_s17 + $0x48] sm:$0xff]  }
  0xb1   : > { %1038 = vmatpush1.bf16.msra.mxu0 %v3440_v10  ;;  %v3461_v31 = vld [vmem:[%s4058_s17 + $0xd8] sm:$0xff]   ;;  %v3463_v33 = vld [vmem:[%s4058_s17 + $0xd0] sm:$0xff]   ;;  %v3465_v35 = vld [vmem:[%s4058_s17 + $0xc8] sm:$0xff]  }
  0xb2   : > { %1327 = vmatpush1.bf16.msra.mxu1 %v3441_v11  ;;  %1039 = vmatprep.subr.bf16.mxu0 %v3646_v3  ;;  %v3466_v36 = vld [vmem:[%s4058_s17 + $0x40] sm:$0xff]   ;;  %v529_v4 = vld [vmem:[%s3958_s28 + $0x68] sm:$0xff]  ;;  %v531_v5 = vld [vmem:[%s3958_s28 + $0x78] sm:$0xff] }
  0xb3   : > { %1328 = vmatprep.subr.bf16.mxu1 %v3646_v3  ;;  %v3467_v38 = vld [vmem:[%s4058_s17 + $0xc0] sm:$0xff]   ;;  %v605_v8 = vunpack.c.l.s8.bf16 %v529_v4  ;;  %v607_v9 = vunpack.c.l.s8.bf16 %v531_v5  ;;  %v530_v11 = vld [vmem:[%s3958_s28 + $0x70] sm:$0xff] }
  0xb4   : > { %v528_v10 = vld [vmem:[%s3958_s28 + $0x60] sm:$0xff] }
  0xb5   : > { %1040 = vmatpush1.bf16.msra.mxu0 %v3442_v12  ;;  %v604_v12 = vunpack.c.l.s8.bf16 %v528_v10 }
  0xb6   : > { %1329 = vmatpush1.bf16.msra.mxu1 %v3443_v13  ;;  %1041 = vmatprep.subr.bf16.mxu0 %v3646_v3  ;;  %v606_v13 = vunpack.c.l.s8.bf16 %v530_v11 }
  0xb7   : > { %1330 = vmatprep.subr.bf16.mxu1 %v3646_v3 }
  0xb9   : > { %1042 = vmatpush1.bf16.msra.mxu0 %v3444_v14  ;;  %v609_v14 = vunpack.c.h.s8.bf16 %v529_v4 }
  0xba   : > { %1331 = vmatpush1.bf16.msra.mxu1 %v3445_v15  ;;  %1043 = vmatprep.subr.bf16.mxu0 %v3646_v3  ;;  %v611_v15 = vunpack.c.h.s8.bf16 %v531_v5 }
  0xbb   : > { %1332 = vmatprep.subr.bf16.mxu1 %v3646_v3 }
  0xbd   : > { %1044 = vmatpush1.bf16.msra.mxu0 %v3446_v16  ;;  %v533_v16 = vld [vmem:[%s3958_s28 + $0x88] sm:$0xff] }
  0xbe   : > { %1333 = vmatpush1.bf16.msra.mxu1 %v3447_v17  ;;  %1045 = vmatprep.subr.bf16.mxu0 %v3646_v3  ;;  %v535_v17 = vld [vmem:[%s3958_s28 + $0x98] sm:$0xff] }
  0xbf   : > { %1334 = vmatprep.subr.bf16.mxu1 %v3646_v3 }
  0xc1   : > { %1046 = vmatpush1.bf16.msra.mxu0 %v3448_v18  ;;  %v608_v18 = vunpack.c.h.s8.bf16 %v528_v10 }
  0xc2   : > { %1335 = vmatpush1.bf16.msra.mxu1 %v3449_v19  ;;  %1047 = vmatprep.subr.bf16.mxu0 %v3646_v3  ;;  %v610_v19 = vunpack.c.h.s8.bf16 %v530_v11 }
  0xc3   : > { %1336 = vmatprep.subr.bf16.mxu1 %v3646_v3 }
  0xc5   : > { %1048 = vmatpush1.bf16.msra.mxu0 %v3450_v20  ;;  %v613_v20 = vunpack.c.l.s8.bf16 %v533_v16 }
  0xc6   : > { %1337 = vmatpush1.bf16.msra.mxu1 %v3451_v21  ;;  %1049 = vmatprep.subr.bf16.mxu0 %v3646_v3  ;;  %v615_v21 = vunpack.c.l.s8.bf16 %v535_v17 }
  0xc7   : > { %1338 = vmatprep.subr.bf16.mxu1 %v3646_v3 }
  0xc9   : > { %1050 = vmatpush2.bf16.msra.mxu0 %v3452_v22  ;;  %v532_v22 = vld [vmem:[%s3958_s28 + $0x80] sm:$0xff] }
  0xca   : > { %1339 = vmatpush2.bf16.msra.mxu1 %v3453_v23  ;;  %1051 = vmatprep.subr.bf16.mxu0 %v3646_v3  ;;  %v534_v23 = vld [vmem:[%s3958_s28 + $0x90] sm:$0xff] }
  0xcb   : > { %1340 = vmatprep.subr.bf16.mxu1 %v3646_v3 }
  0xcd   : > { %1052 = vmatpush2.bf16.msra.mxu0 %v3454_v24  ;;  %v612_v24 = vunpack.c.l.s8.bf16 %v532_v22 }
  0xce   : > { %1341 = vmatpush2.bf16.msra.mxu1 %v3455_v25  ;;  %1053 = vmatprep.subr.bf16.mxu0 %v3646_v3  ;;  %v614_v25 = vunpack.c.l.s8.bf16 %v534_v23 }
  0xcf   : > { %1342 = vmatprep.subr.bf16.mxu1 %v3646_v3 }
  0xd1   : > { %1054 = vmatpush2.bf16.msra.mxu0 %v3456_v26  ;;  %v617_v26 = vunpack.c.h.s8.bf16 %v533_v16 }
  0xd2   : > { %1343 = vmatpush2.bf16.msra.mxu1 %v3457_v27  ;;  %1055 = vmatprep.subr.bf16.mxu0 %v3646_v3  ;;  %v619_v27 = vunpack.c.h.s8.bf16 %v535_v17 }
  0xd3   : > { %1344 = vmatprep.subr.bf16.mxu1 %v3646_v3 }
  0xd5   : > { %1056 = vmatpush2.bf16.msra.mxu0 %v3458_v28  ;;  %v537_v28 = vld [vmem:[%s3958_s28 + $0xa8] sm:$0xff] }
  0xd6   : > { %1345 = vmatpush2.bf16.msra.mxu1 %v3459_v29  ;;  %1057 = vmatprep.subr.bf16.mxu0 %v3646_v3  ;;  %v539_v29 = vld [vmem:[%s3958_s28 + $0xb8] sm:$0xff] }
  0xd7   : > { %1346 = vmatprep.subr.bf16.mxu1 %v3646_v3  ;;  %v627_v39 = vunpack.c.h.s8.bf16 %v539_v29 }
  0xd9   : > { %1058 = vmatpush2.bf16.msra.mxu0 %v3460_v30  ;;  %v616_v30 = vunpack.c.h.s8.bf16 %v532_v22 }
  0xda   : > { %1347 = vmatpush2.bf16.msra.mxu1 %v3461_v31  ;;  %1059 = vmatprep.subr.bf16.mxu0 %v3646_v3  ;;  %v618_v31 = vunpack.c.h.s8.bf16 %v534_v23 }
  0xdb   : > { %1348 = vmatprep.subr.bf16.mxu1 %v3646_v3 }
  0xdd   : > { %1060 = vmatpush2.bf16.msra.mxu0 %v3462_v32  ;;  %v621_v32 = vunpack.c.l.s8.bf16 %v537_v28 }
  0xde   : > { %1349 = vmatpush2.bf16.msra.mxu1 %v3463_v33  ;;  %1061 = vmatprep.subr.bf16.mxu0 %v3646_v3  ;;  %v623_v33 = vunpack.c.l.s8.bf16 %v539_v29 }
  0xdf   : > { %1350 = vmatprep.subr.bf16.mxu1 %v3646_v3 }
  0xe1   : > { %1062 = vmatpush2.bf16.msra.mxu0 %v3464_v34  ;;  %v536_v34 = vld [vmem:[%s3958_s28 + $0xa0] sm:$0xff] }
  0xe2   : > { %1351 = vmatpush2.bf16.msra.mxu1 %v3465_v35  ;;  %1063 = vmatprep.subr.bf16.mxu0 %v3646_v3  ;;  %v538_v35 = vld [vmem:[%s3958_s28 + $0xb0] sm:$0xff] }
  0xe3   : > { %1352 = vmatprep.subr.bf16.mxu1 %v3646_v3  ;;  %v603_v3 = vunpack.c.h.s8.bf16 %v527_v57  ;;  %v622_v37 = vunpack.c.l.s8.bf16 %v538_v35 }
  0xe5   : > { %1064 = vmatpush2.bf16.msra.mxu0 %v3466_v36  ;;  %v620_v36 = vunpack.c.l.s8.bf16 %v536_v34 }
  0xe6   : > { %1353 = vmatpush2.bf16.msra.mxu1 %v3467_v38  ;;  %v625_v38 = vunpack.c.h.s8.bf16 %v537_v28 }
  0xe8   : > { %1066 = vmatmul.mubr.bf16.vlgmr.msra.gmra.mxu0 %v580_v40  ;;  %v541_v40 = vld [vmem:[%s3958_s28 + $0xc8] sm:$0xff] }
  0xe9   : > { %1355 = vmatmul.mubr.bf16.vlgmr.msra.gmra.mxu1 %v582_v42  ;;  %1073 = vmatprep.mubr.bf16.mxu0 %v585_v41  ;;  %v543_v41 = vld [vmem:[%s3958_s28 + $0xd8] sm:$0xff]  ;;  %v624_v42 = vunpack.c.h.s8.bf16 %v536_v34  ;;  %v629_v44 = vunpack.c.l.s8.bf16 %v541_v40  ;;  %v633_v50 = vunpack.c.h.s8.bf16 %v541_v40 }
  0xea   : > { %1362 = vmatprep.mubr.bf16.mxu1 %v587_v43  ;;  %v626_v43 = vunpack.c.h.s8.bf16 %v538_v35  ;;  %v631_v45 = vunpack.c.l.s8.bf16 %v543_v41  ;;  %v635_v51 = vunpack.c.h.s8.bf16 %v543_v41 }
  0xf0   : > { %1074 = vmatmul.mubr.bf16.gmra.mxu0 %v584_v46  ;;  %v540_v46 = vld [vmem:[%s3958_s28 + $0xc0] sm:$0xff] }
  0xf1   : > { %1363 = vmatmul.mubr.bf16.gmra.mxu1 %v586_v47  ;;  %1081 = vmatprep.mubr.bf16.mxu0 %v589_v48  ;;  %v542_v47 = vld [vmem:[%s3958_s28 + $0xd0] sm:$0xff]  ;;  %v628_v48 = vunpack.c.l.s8.bf16 %v540_v46 }
  0xf2   : > { %1370 = vmatprep.mubr.bf16.mxu1 %v591_v49  ;;  %v630_v49 = vunpack.c.l.s8.bf16 %v542_v47 }
  0xf8   : > { %1082 = vmatmul.mubr.bf16.gmra.mxu0 %v588_v52  ;;  %v545_v52 = vld [vmem:[%s3958_s28 + $0xe8] sm:$0xff] }
  0xf9   : > { %1371 = vmatmul.mubr.bf16.gmra.mxu1 %v590_v53  ;;  %1089 = vmatprep.mubr.bf16.mxu0 %v593_v54  ;;  %v547_v53 = vld [vmem:[%s3958_s28 + $0xf8] sm:$0xff]  ;;  %v632_v54 = vunpack.c.h.s8.bf16 %v540_v46  ;;  %v637_v56 = vunpack.c.l.s8.bf16 %v545_v52  ;;  %v641_v62 = vunpack.c.h.s8.bf16 %v545_v52 }
  0xfa   : > { %1378 = vmatprep.mubr.bf16.mxu1 %v595_v55  ;;  %v634_v55 = vunpack.c.h.s8.bf16 %v542_v47  ;;  %v639_v57 = vunpack.c.l.s8.bf16 %v547_v53  ;;  %v643_v63 = vunpack.c.h.s8.bf16 %v547_v53 }
 0x100   : > { %1090 = vmatmul.mubr.bf16.gmra.mxu0 %v592_v58  ;;  %v544_v58 = vld [vmem:[%s3958_s28 + $0xe0] sm:$0xff] }
 0x101   : > { %1379 = vmatmul.mubr.bf16.gmra.mxu1 %v594_v59  ;;  %1097 = vmatprep.mubr.bf16.mxu0 %v597_v60  ;;  %v546_v59 = vld [vmem:[%s3958_s28 + $0xf0] sm:$0xff]  ;;  %v636_v60 = vunpack.c.l.s8.bf16 %v544_v58 }
 0x102   : > { %1386 = vmatprep.mubr.bf16.mxu1 %v599_v61  ;;  %v638_v61 = vunpack.c.l.s8.bf16 %v546_v59 }
 0x108   : > { %1098 = vmatmul.mubr.bf16.gmra.mxu0 %v596_v0  ;;  %v549_v0 = vld [vmem:[%s3958_s28 + $0x108] sm:$0xff] }
 0x109   : > { %1387 = vmatmul.mubr.bf16.gmra.mxu1 %v598_v1  ;;  %1105 = vmatprep.mubr.bf16.mxu0 %v601_v2  ;;  %v551_v1 = vld [vmem:[%s3958_s28 + $0x118] sm:$0xff]  ;;  %v640_v2 = vunpack.c.h.s8.bf16 %v544_v58  ;;  %v645_v4 = vunpack.c.l.s8.bf16 %v549_v0  ;;  %v649_v10 = vunpack.c.h.s8.bf16 %v549_v0 }
 0x10a   : > { %1394 = vmatprep.mubr.bf16.mxu1 %v603_v3  ;;  %v642_v3 = vunpack.c.h.s8.bf16 %v546_v59  ;;  %v647_v5 = vunpack.c.l.s8.bf16 %v551_v1  ;;  %v651_v11 = vunpack.c.h.s8.bf16 %v551_v1  ;;  %v569_v1 = vld [vmem:[%s3958_s28 + $0x1a8] sm:$0xff] }
 0x110   : > { %1106 = vmatmul.mubr.bf16.gmra.mxu0 %v600_v6  ;;  %v548_v6 = vld [vmem:[%s3958_s28 + $0x100] sm:$0xff] }
 0x111   : > { %1395 = vmatmul.mubr.bf16.gmra.mxu1 %v602_v7  ;;  %1113 = vmatprep.mubr.bf16.mxu0 %v605_v8  ;;  %v550_v7 = vld [vmem:[%s3958_s28 + $0x110] sm:$0xff]  ;;  %v644_v8 = vunpack.c.l.s8.bf16 %v548_v6 }
 0x112   : > { %1402 = vmatprep.mubr.bf16.mxu1 %v607_v9  ;;  %v646_v9 = vunpack.c.l.s8.bf16 %v550_v7 }
 0x118   : > { %1114 = vmatmul.mubr.bf16.gmra.mxu0 %v604_v12  ;;  %v553_v12 = vld [vmem:[%s3958_s28 + $0x128] sm:$0xff] }
 0x119   : > { %1403 = vmatmul.mubr.bf16.gmra.mxu1 %v606_v13  ;;  %1121 = vmatprep.mubr.bf16.mxu0 %v609_v14  ;;  %v555_v13 = vld [vmem:[%s3958_s28 + $0x138] sm:$0xff]  ;;  %v648_v14 = vunpack.c.h.s8.bf16 %v548_v6  ;;  %v653_v16 = vunpack.c.l.s8.bf16 %v553_v12  ;;  %v657_v22 = vunpack.c.h.s8.bf16 %v553_v12 }
 0x11a   : > { %1410 = vmatprep.mubr.bf16.mxu1 %v611_v15  ;;  %v650_v15 = vunpack.c.h.s8.bf16 %v550_v7  ;;  %v655_v17 = vunpack.c.l.s8.bf16 %v555_v13  ;;  %v659_v23 = vunpack.c.h.s8.bf16 %v555_v13  ;;  %v778_v7 = vld [vmem:[#allocation2 + $0x1b0] sm:$0xff] }
 0x120   : > { %1122 = vmatmul.mubr.bf16.gmra.mxu0 %v608_v18  ;;  %v552_v18 = vld [vmem:[%s3958_s28 + $0x120] sm:$0xff] }
 0x121   : > { %1411 = vmatmul.mubr.bf16.gmra.mxu1 %v610_v19  ;;  %1129 = vmatprep.mubr.bf16.mxu0 %v613_v20  ;;  %v554_v19 = vld [vmem:[%s3958_s28 + $0x130] sm:$0xff]  ;;  %v652_v20 = vunpack.c.l.s8.bf16 %v552_v18 }
 0x122   : > { %1418 = vmatprep.mubr.bf16.mxu1 %v615_v21  ;;  %v654_v21 = vunpack.c.l.s8.bf16 %v554_v19 }
 0x128   : > { %1130 = vmatmul.mubr.bf16.gmra.mxu0 %v612_v24  ;;  %v557_v24 = vld [vmem:[%s3958_s28 + $0x148] sm:$0xff] }
 0x129   : > { %1419 = vmatmul.mubr.bf16.gmra.mxu1 %v614_v25  ;;  %1137 = vmatprep.mubr.bf16.mxu0 %v617_v26  ;;  %v559_v25 = vld [vmem:[%s3958_s28 + $0x158] sm:$0xff]  ;;  %v656_v26 = vunpack.c.h.s8.bf16 %v552_v18  ;;  %v661_v28 = vunpack.c.l.s8.bf16 %v557_v24  ;;  %v665_v34 = vunpack.c.h.s8.bf16 %v557_v24 }
 0x12a   : > { %1426 = vmatprep.mubr.bf16.mxu1 %v619_v27  ;;  %v658_v27 = vunpack.c.h.s8.bf16 %v554_v19  ;;  %v663_v29 = vunpack.c.l.s8.bf16 %v559_v25  ;;  %v667_v35 = vunpack.c.h.s8.bf16 %v559_v25  ;;  %v568_v19 = vld [vmem:[%s3958_s28 + $0x1a0] sm:$0xff] }
 0x130   : > { %1138 = vmatmul.mubr.bf16.gmra.mxu0 %v616_v30  ;;  %v556_v30 = vld [vmem:[%s3958_s28 + $0x140] sm:$0xff] }
 0x131   : > { %1427 = vmatmul.mubr.bf16.gmra.mxu1 %v618_v31  ;;  %1145 = vmatprep.mubr.bf16.mxu0 %v621_v32  ;;  %v558_v31 = vld [vmem:[%s3958_s28 + $0x150] sm:$0xff]  ;;  %v660_v32 = vunpack.c.l.s8.bf16 %v556_v30 }
 0x132   : > { %1434 = vmatprep.mubr.bf16.mxu1 %v623_v33  ;;  %v662_v33 = vunpack.c.l.s8.bf16 %v558_v31 }
 0x138   : > { %1146 = vmatmul.mubr.bf16.gmra.mxu0 %v620_v36  ;;  %v561_v36 = vld [vmem:[%s3958_s28 + $0x168] sm:$0xff] }
 0x139   : > { %1435 = vmatmul.mubr.bf16.gmra.mxu1 %v622_v37  ;;  %1153 = vmatprep.mubr.bf16.mxu0 %v625_v38  ;;  %v563_v37 = vld [vmem:[%s3958_s28 + $0x178] sm:$0xff]  ;;  %v664_v38 = vunpack.c.h.s8.bf16 %v556_v30  ;;  %v669_v40 = vunpack.c.l.s8.bf16 %v561_v36  ;;  %v673_v46 = vunpack.c.h.s8.bf16 %v561_v36  ;;  %v689_v30 = vunpack.c.h.s8.bf16 %v569_v1 }
 0x13a   : > { %1442 = vmatprep.mubr.bf16.mxu1 %v627_v39  ;;  %v666_v39 = vunpack.c.h.s8.bf16 %v558_v31  ;;  %v671_v41 = vunpack.c.l.s8.bf16 %v563_v37  ;;  %v675_v47 = vunpack.c.h.s8.bf16 %v563_v37  ;;  %v781_v37 = vld [vmem:[#allocation2 + $0x50] sm:$0xff] }
 0x140   : > { %1154 = vmatmul.mubr.bf16.gmra.mxu0 %v624_v42  ;;  %v560_v42 = vld [vmem:[%s3958_s28 + $0x160] sm:$0xff] }
 0x141   : > { %1443 = vmatmul.mubr.bf16.gmra.mxu1 %v626_v43  ;;  %1161 = vmatprep.mubr.bf16.mxu0 %v629_v44  ;;  %v562_v43 = vld [vmem:[%s3958_s28 + $0x170] sm:$0xff]  ;;  %v668_v44 = vunpack.c.l.s8.bf16 %v560_v42 }
 0x142   : > { %1450 = vmatprep.mubr.bf16.mxu1 %v631_v45  ;;  %v670_v45 = vunpack.c.l.s8.bf16 %v562_v43 }
 0x148   : > { %1162 = vmatmul.mubr.bf16.gmra.mxu0 %v628_v48  ;;  %v565_v48 = vld [vmem:[%s3958_s28 + $0x188] sm:$0xff] }
 0x149   : > { %1451 = vmatmul.mubr.bf16.gmra.mxu1 %v630_v49  ;;  %1169 = vmatprep.mubr.bf16.mxu0 %v633_v50  ;;  %v567_v49 = vld [vmem:[%s3958_s28 + $0x198] sm:$0xff]  ;;  %v672_v50 = vunpack.c.h.s8.bf16 %v560_v42  ;;  %v677_v52 = vunpack.c.l.s8.bf16 %v565_v48  ;;  %v681_v58 = vunpack.c.h.s8.bf16 %v565_v48 }
 0x14a   : > { %1458 = vmatprep.mubr.bf16.mxu1 %v635_v51  ;;  %v674_v51 = vunpack.c.h.s8.bf16 %v562_v43  ;;  %v679_v53 = vunpack.c.l.s8.bf16 %v567_v49  ;;  %v683_v59 = vunpack.c.h.s8.bf16 %v567_v49  ;;  %v575_v43 = vld [vmem:[%s3958_s28 + $0x1d8] sm:$0xff] }
 0x150   : > { %1170 = vmatmul.mubr.bf16.gmra.mxu0 %v632_v54  ;;  %v564_v54 = vld [vmem:[%s3958_s28 + $0x180] sm:$0xff] }
 0x151   : > { %1459 = vmatmul.mubr.bf16.gmra.mxu1 %v634_v55  ;;  %1177 = vmatprep.mubr.bf16.mxu0 %v637_v56  ;;  %v566_v55 = vld [vmem:[%s3958_s28 + $0x190] sm:$0xff]  ;;  %v676_v56 = vunpack.c.l.s8.bf16 %v564_v54  ;;  %v680_v6 = vunpack.c.h.s8.bf16 %v564_v54 }
 0x152   : > { %1466 = vmatprep.mubr.bf16.mxu1 %v639_v57  ;;  %v678_v57 = vunpack.c.l.s8.bf16 %v566_v55 }
 0x158   : > { %1178 = vmatmul.mubr.bf16.gmra.mxu0 %v636_v60 }
 0x159   : > { %1467 = vmatmul.mubr.bf16.gmra.mxu1 %v638_v61  ;;  %1185 = vmatprep.mubr.bf16.mxu0 %v641_v62  ;;  %v777_v61 = vld [vmem:[#allocation2 + $0xb0] sm:$0xff] }
 0x15a   : > { %1474 = vmatprep.mubr.bf16.mxu1 %v643_v63 }
 0x160   : > { %1186 = vmatmul.mubr.bf16.gmra.mxu0 %v640_v2 }
 0x161   : > { %1475 = vmatmul.mubr.bf16.gmra.mxu1 %v642_v3  ;;  %1193 = vmatprep.mubr.bf16.mxu0 %v645_v4  ;;  %v571_v3 = vld [vmem:[%s3958_s28 + $0x1b8] sm:$0xff] }
 0x162   : > { %1482 = vmatprep.mubr.bf16.mxu1 %v647_v5  ;;  %v687_v13 = vunpack.c.l.s8.bf16 %v571_v3 }
 0x168   : > { %1194 = vmatmul.mubr.bf16.gmra.mxu0 %v644_v8 }
 0x169   : > { %1483 = vmatmul.mubr.bf16.gmra.mxu1 %v646_v9  ;;  %1201 = vmatprep.mubr.bf16.mxu0 %v649_v10  ;;  %v682_v9 = vunpack.c.h.s8.bf16 %v566_v55  ;;  %v685_v10 = vunpack.c.l.s8.bf16 %v569_v1 }
 0x16a   : > { %1490 = vmatprep.mubr.bf16.mxu1 %v651_v11 }
 0x170   : > { %1202 = vmatmul.mubr.bf16.gmra.mxu0 %v648_v14 }
 0x171   : > { %1491 = vmatmul.mubr.bf16.gmra.mxu1 %v650_v15  ;;  %1209 = vmatprep.mubr.bf16.mxu0 %v653_v16 }
 0x172   : > { %1498 = vmatprep.mubr.bf16.mxu1 %v655_v17  ;;  %v779_v17 = vld [vmem:[#allocation2 + $0xd8] sm:$0xff] }
 0x178   : > { %1210 = vmatmul.mubr.bf16.gmra.mxu0 %v652_v20 }
 0x179   : > { %1499 = vmatmul.mubr.bf16.gmra.mxu1 %v654_v21  ;;  %1217 = vmatprep.mubr.bf16.mxu0 %v657_v22  ;;  %v570_v22 = vld [vmem:[%s3958_s28 + $0x1b0] sm:$0xff] }
 0x17a   : > { %1506 = vmatprep.mubr.bf16.mxu1 %v659_v23  ;;  %v690_v49 = vunpack.c.h.s8.bf16 %v570_v22 }
 0x180   : > { %1218 = vmatmul.mubr.bf16.gmra.mxu0 %v656_v26  ;;  %v684_v26 = vunpack.c.l.s8.bf16 %v568_v19 }
 0x181   : > { %1507 = vmatmul.mubr.bf16.gmra.mxu1 %v658_v27  ;;  %1225 = vmatprep.mubr.bf16.mxu0 %v661_v28  ;;  %v780_v27 = vld [vmem:[#allocation2 + $0x18] sm:$0xff] }
 0x182   : > { %1514 = vmatprep.mubr.bf16.mxu1 %v663_v29  ;;  %v686_v29 = vunpack.c.l.s8.bf16 %v570_v22 }
 0x188   : > { %1226 = vmatmul.mubr.bf16.gmra.mxu0 %v660_v32 }
 0x189   : > { %1515 = vmatmul.mubr.bf16.gmra.mxu1 %v662_v33  ;;  %1233 = vmatprep.mubr.bf16.mxu0 %v665_v34  ;;  %v691_v33 = vunpack.c.h.s8.bf16 %v571_v3  ;;  %v784_v3 = vld [vmem:[#allocation2 + $0x48] sm:$0xff] }
 0x18a   : > { %1522 = vmatprep.mubr.bf16.mxu1 %v667_v35 }
 0x190   : > { %1234 = vmatmul.mubr.bf16.gmra.mxu0 %v664_v38 }
 0x191   : > { %1523 = vmatmul.mubr.bf16.gmra.mxu1 %v666_v39  ;;  %1241 = vmatprep.mubr.bf16.mxu0 %v669_v40 }
 0x192   : > { %1530 = vmatprep.mubr.bf16.mxu1 %v671_v41  ;;  %v573_v41 = vld [vmem:[%s3958_s28 + $0x1c8] sm:$0xff] }
 0x198   : > { %1242 = vmatmul.mubr.bf16.gmra.mxu0 %v668_v44 }
 0x199   : > { %1531 = vmatmul.mubr.bf16.gmra.mxu1 %v670_v45  ;;  %1249 = vmatprep.mubr.bf16.mxu0 %v673_v46  ;;  %v688_v46 = vunpack.c.h.s8.bf16 %v568_v19  ;;  %v579_v19 = vld [vmem:[%s3958_s28 + $0x1f8] sm:$0xff] }
 0x19a   : > { %1538 = vmatprep.mubr.bf16.mxu1 %v675_v47  ;;  %v782_v47 = vld [vmem:[#allocation2 + $0x168] sm:$0xff] }
 0x1a0   : > { %1250 = vmatmul.mubr.bf16.gmra.mxu0 %v672_v50  ;;  %v693_v50 = vunpack.c.l.s8.bf16 %v573_v41 }
 0x1a1   : > { %1539 = vmatmul.mubr.bf16.gmra.mxu1 %v674_v51  ;;  %1257 = vmatprep.mubr.bf16.mxu0 %v677_v52 }
 0x1a2   : > { %1546 = vmatprep.mubr.bf16.mxu1 %v679_v53  ;;  %v695_v53 = vunpack.c.l.s8.bf16 %v575_v43 }
 0x1a8   : > { %v1067_v60 = vpop.f32.mrf.mxu0  ;;  %1258 = vmatmul.mubr.bf16.gmra.mxu0 %v676_v56 }
 0x1a9   : > { %v1356_v62 = vpop.f32.mrf.mxu1  ;;  %1547 = vmatmul.mubr.bf16.gmra.mxu1 %v678_v57  ;;  %1265 = vmatprep.mubr.bf16.mxu0 %v681_v58  ;;  %v783_v57 = vld [vmem:[#allocation2 + $0x130] sm:$0xff] }
 0x1aa   : > { %v1357_v63 = vadd.f32 %v1356_v62, %v1067_v60  ;;  %v1069_v0 = vpop.f32.mrf.mxu0  ;;  %1554 = vmatprep.mubr.bf16.mxu1 %v683_v59  ;;  %v572_v59 = vld [vmem:[%s3958_s28 + $0x1c0] sm:$0xff]  ;;  %v574_v62 = vld [vmem:[%s3958_s28 + $0x1d0] sm:$0xff] }
 0x1ab   : > { %v1358_v2 = vpop.f32.mrf.mxu1  ;;  %v696_v22 = vunpack.c.h.s8.bf16 %v572_v59 }
 0x1ac   : > { %v1611_v4 = vadd.f32 %v1357_v63, %v777_v61  ;;  %v1070_v5 = vpop.f32.mrf.mxu0  ;;  %v692_v2 = vunpack.c.l.s8.bf16 %v572_v59 }
 0x1ad   : > { %v1359_v8 = vpop.f32.mrf.mxu1 }
 0x1ae   : > { %1675 = vst [vmem:[#allocation2 + $0xb0] sm:$0xff] %v1611_v4  ;;  %v1360_v11 = vadd.f32 %v1359_v8, %v1070_v5  ;;  %v1072_v12 = vpop.f32.mrf.mxu0  ;;  %v694_v5 = vunpack.c.l.s8.bf16 %v574_v62 }
 0x1af   : > { %v1361_v14 = vpop.f32.mrf.mxu1 }
 0x1b0   : > { %v1612_v15 = vadd.f32 %v1360_v11, %v778_v7  ;;  %v1075_v16 = vpop.f32.mrf.mxu0  ;;  %1266 = vmatmul.mubr.bf16.gmra.mxu0 %v680_v6  ;;  %v697_v6 = vunpack.c.h.s8.bf16 %v573_v41 }
 0x1b1   : > { %v1364_v18 = vpop.f32.mrf.mxu1  ;;  %1555 = vmatmul.mubr.bf16.gmra.mxu1 %v682_v9  ;;  %1273 = vmatprep.mubr.bf16.mxu0 %v685_v10  ;;  %v699_v9 = vunpack.c.h.s8.bf16 %v575_v43  ;;  %v788_v43 = vld [vmem:[#allocation2 + $0x98] sm:$0xff] }
 0x1b2   : > { %1676 = vst [vmem:[#allocation2 + $0x1b0] sm:$0xff] %v1612_v15  ;;  %v1365_v20 = vadd.f32 %v1364_v18, %v1075_v16  ;;  %v1077_v21 = vpop.f32.mrf.mxu0  ;;  %1562 = vmatprep.mubr.bf16.mxu1 %v687_v13  ;;  %v785_v13 = vld [vmem:[#allocation2 + $0x180] sm:$0xff] }
 0x1b3   : > { %v1366_v23 = vpop.f32.mrf.mxu1 }
 0x1b4   : > { %v1613_v24 = vadd.f32 %v1365_v20, %v779_v17  ;;  %v1078_v25 = vpop.f32.mrf.mxu0  ;;  %v577_v17 = vld [vmem:[%s3958_s28 + $0x1e8] sm:$0xff]  ;;  %v786_v23 = vld [vmem:[#allocation2 + $0x110] sm:$0xff] }
 0x1b5   : > { %v1367_v28 = vpop.f32.mrf.mxu1 }
 0x1b6   : > { %1677 = vst [vmem:[#allocation2 + $0xd8] sm:$0xff] %v1613_v24  ;;  %v1368_v31 = vadd.f32 %v1367_v28, %v1078_v25  ;;  %v1080_v32 = vpop.f32.mrf.mxu0  ;;  %v698_v25 = vunpack.c.h.s8.bf16 %v574_v62 }
 0x1b7   : > { %v1369_v34 = vpop.f32.mrf.mxu1 }
 0x1b8   : > { %v1614_v35 = vadd.f32 %v1368_v31, %v780_v27  ;;  %v1083_v36 = vpop.f32.mrf.mxu0  ;;  %1274 = vmatmul.mubr.bf16.gmra.mxu0 %v684_v26  ;;  %v701_v26 = vunpack.c.l.s8.bf16 %v577_v17 }
 0x1b9   : > { %v1372_v38 = vpop.f32.mrf.mxu1  ;;  %1563 = vmatmul.mubr.bf16.gmra.mxu1 %v686_v29  ;;  %1281 = vmatprep.mubr.bf16.mxu0 %v689_v30  ;;  %v703_v29 = vunpack.c.l.s8.bf16 %v579_v19 }
 0x1ba   : > { %1678 = vst [vmem:[#allocation2 + $0x18] sm:$0xff] %v1614_v35  ;;  %v1373_v39 = vadd.f32 %v1372_v38, %v1083_v36  ;;  %v1085_v40 = vpop.f32.mrf.mxu0  ;;  %1570 = vmatprep.mubr.bf16.mxu1 %v691_v33  ;;  %v787_v33 = vld [vmem:[#allocation2 + $0x118] sm:$0xff]  ;;  %v576_v35 = vld [vmem:[%s3958_s28 + $0x1e0] sm:$0xff]  ;;  %v578_v38 = vld [vmem:[%s3958_s28 + $0x1f0] sm:$0xff] }
 0x1bb   : > { %v1374_v42 = vpop.f32.mrf.mxu1 }
 0x1bc   : > { %v1615_v44 = vadd.f32 %v1373_v39, %v781_v37  ;;  %v1086_v45 = vpop.f32.mrf.mxu0  ;;  %v700_v42 = vunpack.c.l.s8.bf16 %v576_v35 }
 0x1bd   : > { %v1375_v48 = vpop.f32.mrf.mxu1 }
 0x1be   : > { %1679 = vst [vmem:[#allocation2 + $0x50] sm:$0xff] %v1615_v44  ;;  %v1376_v51 = vadd.f32 %v1375_v48, %v1086_v45  ;;  %v1088_v52 = vpop.f32.mrf.mxu0  ;;  %v702_v45 = vunpack.c.l.s8.bf16 %v578_v38 }
 0x1bf   : > { %v1377_v54 = vpop.f32.mrf.mxu1 }
 0x1c0   : > { %v1616_v55 = vadd.f32 %v1376_v51, %v782_v47  ;;  %v1091_v56 = vpop.f32.mrf.mxu0  ;;  %1282 = vmatmul.mubr.bf16.gmra.mxu0 %v688_v46  ;;  %v705_v46 = vunpack.c.h.s8.bf16 %v577_v17 }
 0x1c1   : > { %v1380_v58 = vpop.f32.mrf.mxu1  ;;  %1571 = vmatmul.mubr.bf16.gmra.mxu1 %v690_v49  ;;  %1289 = vmatprep.mubr.bf16.mxu0 %v693_v50  ;;  %v707_v49 = vunpack.c.h.s8.bf16 %v579_v19  ;;  %v793_v19 = vld [vmem:[#allocation2 + $0xe0] sm:$0xff] }
 0x1c2   : > { %1680 = vst [vmem:[#allocation2 + $0x168] sm:$0xff] %v1616_v55  ;;  %v1381_v60 = vadd.f32 %v1380_v58, %v1091_v56  ;;  %v1093_v61 = vpop.f32.mrf.mxu0  ;;  %1578 = vmatprep.mubr.bf16.mxu1 %v695_v53  ;;  %v789_v53 = vld [vmem:[#allocation2 + $0x120] sm:$0xff] }
 0x1c3   : > { %v1382_v63 = vpop.f32.mrf.mxu1  ;;  %v790_v61 = vld [vmem:[#allocation2 + $0x150] sm:$0xff] }
 0x1c4   : > { %v1617_v0 = vadd.f32 %v1381_v60, %v783_v57  ;;  %v1094_v1 = vpop.f32.mrf.mxu0  ;;  %v704_v60 = vunpack.c.h.s8.bf16 %v576_v35  ;;  %v706_v63 = vunpack.c.h.s8.bf16 %v578_v38 }
 0x1c5   : > { %v1383_v4 = vpop.f32.mrf.mxu1 }
 0x1c6   : > { %1681 = vst [vmem:[#allocation2 + $0x130] sm:$0xff] %v1617_v0  ;;  %v1384_v7 = vadd.f32 %v1383_v4, %v1094_v1  ;;  %v1096_v8 = vpop.f32.mrf.mxu0 }
 0x1c7   : > { %v1385_v10 = vpop.f32.mrf.mxu1 }
 0x1c8   : > { %v1618_v11 = vadd.f32 %v1384_v7, %v784_v3  ;;  %v1099_v12 = vpop.f32.mrf.mxu0  ;;  %1290 = vmatmul.mubr.bf16.gmra.mxu0 %v692_v2 }
 0x1c9   : > { %v1388_v14 = vpop.f32.mrf.mxu1  ;;  %1579 = vmatmul.mubr.bf16.gmra.mxu1 %v694_v5  ;;  %1297 = vmatprep.mubr.bf16.mxu0 %v697_v6  ;;  %v791_v5 = vld [vmem:[#allocation2 + $0x108] sm:$0xff] }
 0x1ca   : > { %1682 = vst [vmem:[#allocation2 + $0x48] sm:$0xff] %v1618_v11  ;;  %v1389_v15 = vadd.f32 %v1388_v14, %v1099_v12  ;;  %v1101_v16 = vpop.f32.mrf.mxu0  ;;  %1586 = vmatprep.mubr.bf16.mxu1 %v699_v9  ;;  %v792_v12 = vld [vmem:[#allocation2 + $0x60] sm:$0xff] }
 0x1cb   : > { %v1390_v18 = vpop.f32.mrf.mxu1 }
 0x1cc   : > { %v1619_v20 = vadd.f32 %v1389_v15, %v785_v13  ;;  %v1102_v21 = vpop.f32.mrf.mxu0 }
 0x1cd   : > { %v1391_v24 = vpop.f32.mrf.mxu1 }
 0x1ce   : > { %1683 = vst [vmem:[#allocation2 + $0x180] sm:$0xff] %v1619_v20  ;;  %v1392_v27 = vadd.f32 %v1391_v24, %v1102_v21  ;;  %v1104_v28 = vpop.f32.mrf.mxu0 }
 0x1cf   : > { %v1393_v30 = vpop.f32.mrf.mxu1 }
 0x1d0   : > { %v1620_v31 = vadd.f32 %v1392_v27, %v786_v23  ;;  %v1107_v32 = vpop.f32.mrf.mxu0  ;;  %1298 = vmatmul.mubr.bf16.gmra.mxu0 %v696_v22 }
 0x1d1   : > { %v1396_v34 = vpop.f32.mrf.mxu1  ;;  %1587 = vmatmul.mubr.bf16.gmra.mxu1 %v698_v25  ;;  %1305 = vmatprep.mubr.bf16.mxu0 %v701_v26  ;;  %v794_v26 = vld [vmem:[#allocation2 + $0x188] sm:$0xff] }
 0x1d2   : > { %1684 = vst [vmem:[#allocation2 + $0x110] sm:$0xff] %v1620_v31  ;;  %v1397_v36 = vadd.f32 %v1396_v34, %v1107_v32  ;;  %v1109_v37 = vpop.f32.mrf.mxu0  ;;  %1594 = vmatprep.mubr.bf16.mxu1 %v703_v29 }
 0x1d3   : > { %v1398_v39 = vpop.f32.mrf.mxu1 }
 0x1d4   : > { %v1621_v40 = vadd.f32 %v1397_v36, %v787_v33  ;;  %v1110_v41 = vpop.f32.mrf.mxu0  ;;  %v795_v33 = vld [vmem:[#allocation2 + $0x138] sm:$0xff] }
 0x1d5   : > { %v1399_v44 = vpop.f32.mrf.mxu1 }
 0x1d6   : > { %1685 = vst [vmem:[#allocation2 + $0x118] sm:$0xff] %v1621_v40  ;;  %v1400_v47 = vadd.f32 %v1399_v44, %v1110_v41  ;;  %v1112_v48 = vpop.f32.mrf.mxu0  ;;  %v796_v40 = vld [vmem:[#allocation2 + $0x140] sm:$0xff] }
 0x1d7   : > { %v1401_v50 = vpop.f32.mrf.mxu1 }
 0x1d8   : > { %v1622_v51 = vadd.f32 %v1400_v47, %v788_v43  ;;  %v1115_v52 = vpop.f32.mrf.mxu0  ;;  %1306 = vmatmul.mubr.bf16.gmra.mxu0 %v700_v42  ;;  %v797_v47 = vld [vmem:[#allocation2 + $0x80] sm:$0xff] }
 0x1d9   : > { %v1404_v54 = vpop.f32.mrf.mxu1  ;;  %1595 = vmatmul.mubr.bf16.gmra.mxu1 %v702_v45  ;;  %1313 = vmatprep.mubr.bf16.mxu0 %v705_v46 }
 0x1da   : > { %1686 = vst [vmem:[#allocation2 + $0x98] sm:$0xff] %v1622_v51  ;;  %v1405_v55 = vadd.f32 %v1404_v54, %v1115_v52  ;;  %v1117_v56 = vpop.f32.mrf.mxu0  ;;  %1602 = vmatprep.mubr.bf16.mxu1 %v707_v49  ;;  %v798_v54 = vld [vmem:[#allocation2 + $0x1a8] sm:$0xff] }
 0x1db   : > { %v1406_v57 = vpop.f32.mrf.mxu1 }
 0x1dc   : > { %v1623_v58 = vadd.f32 %v1405_v55, %v789_v53  ;;  %v1118_v59 = vpop.f32.mrf.mxu0 }
 0x1dd   : > { %v1407_v62 = vpop.f32.mrf.mxu1 }
 0x1de   : > { %1687 = vst [vmem:[#allocation2 + $0x120] sm:$0xff] %v1623_v58  ;;  %v1408_v0 = vadd.f32 %v1407_v62, %v1118_v59  ;;  %v1120_v1 = vpop.f32.mrf.mxu0 }
 0x1df   : > { %v1409_v2 = vpop.f32.mrf.mxu1 }
 0x1e0   : > { %v1624_v3 = vadd.f32 %v1408_v0, %v790_v61  ;;  %v1123_v4 = vpop.f32.mrf.mxu0  ;;  %1314 = vmatmul.mubr.bf16.gmra.mxu0 %v704_v60  ;;  %v799_v61 = vld [vmem:[#allocation2 + $0x1b8] sm:$0xff] }
 0x1e1   : > { %v1412_v6 = vpop.f32.mrf.mxu1  ;;  %1603 = vmatmul.mubr.bf16.gmra.mxu1 %v706_v63 }
 0x1e2   : > { %1688 = vst [vmem:[#allocation2 + $0x150] sm:$0xff] %v1624_v3  ;;  %v1413_v7 = vadd.f32 %v1412_v6, %v1123_v4  ;;  %v1125_v8 = vpop.f32.mrf.mxu0  ;;  %v800_v4 = vld [vmem:[#allocation2 + $0x28] sm:$0xff] }
 0x1e3   : > { %v1414_v9 = vpop.f32.mrf.mxu1 }
 0x1e4   : > { %v1625_v10 = vadd.f32 %v1413_v7, %v791_v5  ;;  %v1126_v11 = vpop.f32.mrf.mxu0 }
 0x1e5   : > { %v1415_v13 = vpop.f32.mrf.mxu1 }
 0x1e6   : > { %1689 = vst [vmem:[#allocation2 + $0x108] sm:$0xff] %v1625_v10  ;;  %v1416_v14 = vadd.f32 %v1415_v13, %v1126_v11  ;;  %v1128_v15 = vpop.f32.mrf.mxu0  ;;  %v801_v11 = vld [vmem:[#allocation2 + $0x1e8] sm:$0xff] }
 0x1e7   : > { %v1417_v16 = vpop.f32.mrf.mxu1 }
 0x1e8   : > { %v1626_v17 = vadd.f32 %v1416_v14, %v792_v12  ;;  %v1131_v18 = vpop.f32.mrf.mxu0 }
 0x1e9   : > { %v1420_v20 = vpop.f32.mrf.mxu1 }
 0x1ea   : > { %1690 = vst [vmem:[#allocation2 + $0x60] sm:$0xff] %v1626_v17  ;;  %v1421_v21 = vadd.f32 %v1420_v20, %v1131_v18  ;;  %v1133_v22 = vpop.f32.mrf.mxu0  ;;  %v802_v18 = vld [vmem:[#allocation2 + $0xf8] sm:$0xff] }
 0x1eb   : > { %v1422_v23 = vpop.f32.mrf.mxu1 }
 0x1ec   : > { %v1627_v24 = vadd.f32 %v1421_v21, %v793_v19  ;;  %v1134_v25 = vpop.f32.mrf.mxu0 }
 0x1ed   : > { %v1423_v27 = vpop.f32.mrf.mxu1 }
 0x1ee   : > { %1691 = vst [vmem:[#allocation2 + $0xe0] sm:$0xff] %v1627_v24  ;;  %v1424_v28 = vadd.f32 %v1423_v27, %v1134_v25  ;;  %v1136_v29 = vpop.f32.mrf.mxu0  ;;  %v803_v25 = vld [vmem:[#allocation2 + $0x160] sm:$0xff] }
 0x1ef   : > { %v1425_v30 = vpop.f32.mrf.mxu1 }
 0x1f0   : > { %v1628_v31 = vadd.f32 %v1424_v28, %v794_v26  ;;  %v1139_v32 = vpop.f32.mrf.mxu0 }
 0x1f1   : > { %v1428_v34 = vpop.f32.mrf.mxu1 }
 0x1f2   : > { %1692 = vst [vmem:[#allocation2 + $0x188] sm:$0xff] %v1628_v31  ;;  %v1429_v35 = vadd.f32 %v1428_v34, %v1139_v32  ;;  %v1141_v36 = vpop.f32.mrf.mxu0  ;;  %v804_v32 = vld [vmem:[#allocation2 + $0x30] sm:$0xff] }
 0x1f3   : > { %v1430_v37 = vpop.f32.mrf.mxu1 }
 0x1f4   : > { %v1629_v38 = vadd.f32 %v1429_v35, %v795_v33  ;;  %v1142_v39 = vpop.f32.mrf.mxu0 }
 0x1f5   : > { %v1431_v41 = vpop.f32.mrf.mxu1 }
 0x1f6   : > { %1693 = vst [vmem:[#allocation2 + $0x138] sm:$0xff] %v1629_v38  ;;  %v1432_v42 = vadd.f32 %v1431_v41, %v1142_v39  ;;  %v1144_v43 = vpop.f32.mrf.mxu0  ;;  %v805_v39 = vld [vmem:[#allocation2 + $0x1e0] sm:$0xff] }
 0x1f7   : > { %v1433_v44 = vpop.f32.mrf.mxu1 }
 0x1f8   : > { %v1630_v45 = vadd.f32 %v1432_v42, %v796_v40  ;;  %v1147_v46 = vpop.f32.mrf.mxu0 }
 0x1f9   : > { %v1436_v48 = vpop.f32.mrf.mxu1 }
 0x1fa   : > { %1694 = vst [vmem:[#allocation2 + $0x140] sm:$0xff] %v1630_v45  ;;  %v1437_v49 = vadd.f32 %v1436_v48, %v1147_v46  ;;  %v1149_v50 = vpop.f32.mrf.mxu0  ;;  %v806_v46 = vld [vmem:[#allocation2] sm:$0xff] }
 0x1fb   : > { %v1438_v51 = vpop.f32.mrf.mxu1 }
 0x1fc   : > { %v1631_v52 = vadd.f32 %v1437_v49, %v797_v47  ;;  %v1150_v53 = vpop.f32.mrf.mxu0 }
 0x1fd   : > { %v1439_v55 = vpop.f32.mrf.mxu1 }
 0x1fe   : > { %1695 = vst [vmem:[#allocation2 + $0x80] sm:$0xff] %v1631_v52  ;;  %v1440_v56 = vadd.f32 %v1439_v55, %v1150_v53  ;;  %v1152_v57 = vpop.f32.mrf.mxu0  ;;  %v807_v53 = vld [vmem:[#allocation2 + $0xf0] sm:$0xff] }
 0x1ff   : > { %v1441_v58 = vpop.f32.mrf.mxu1 }
 0x200   : > { %v1632_v59 = vadd.f32 %v1440_v56, %v798_v54  ;;  %v1155_v60 = vpop.f32.mrf.mxu0 }
 0x201   : > { %v1444_v62 = vpop.f32.mrf.mxu1 }
 0x202   : > { %1696 = vst [vmem:[#allocation2 + $0x1a8] sm:$0xff] %v1632_v59  ;;  %v1445_v63 = vadd.f32 %v1444_v62, %v1155_v60  ;;  %v1157_v0 = vpop.f32.mrf.mxu0  ;;  %v808_v60 = vld [vmem:[#allocation2 + $0x8] sm:$0xff] }
 0x203   : > { %v1446_v1 = vpop.f32.mrf.mxu1 }
 0x204   : > { %v1633_v2 = vadd.f32 %v1445_v63, %v799_v61  ;;  %v1158_v3 = vpop.f32.mrf.mxu0 }
 0x205   : > { %v1447_v5 = vpop.f32.mrf.mxu1 }
 0x206   : > { %1697 = vst [vmem:[#allocation2 + $0x1b8] sm:$0xff] %v1633_v2  ;;  %v1448_v6 = vadd.f32 %v1447_v5, %v1158_v3  ;;  %v1160_v7 = vpop.f32.mrf.mxu0  ;;  %v809_v3 = vld [vmem:[#allocation2 + $0x148] sm:$0xff] }
 0x207   : > { %v1449_v8 = vpop.f32.mrf.mxu1 }
 0x208   : > { %v1634_v9 = vadd.f32 %v1448_v6, %v800_v4  ;;  %v1163_v10 = vpop.f32.mrf.mxu0 }
 0x209   : > { %v1452_v12 = vpop.f32.mrf.mxu1 }
 0x20a   : > { %1698 = vst [vmem:[#allocation2 + $0x28] sm:$0xff] %v1634_v9  ;;  %v1453_v13 = vadd.f32 %v1452_v12, %v1163_v10  ;;  %v1165_v14 = vpop.f32.mrf.mxu0  ;;  %v810_v10 = vld [vmem:[#allocation2 + $0x1d0] sm:$0xff] }
 0x20b   : > { %v1454_v15 = vpop.f32.mrf.mxu1 }
 0x20c   : > { %v1635_v16 = vadd.f32 %v1453_v13, %v801_v11  ;;  %v1166_v17 = vpop.f32.mrf.mxu0 }
 0x20d   : > { %v1455_v19 = vpop.f32.mrf.mxu1 }
 0x20e   : > { %1699 = vst [vmem:[#allocation2 + $0x1e8] sm:$0xff] %v1635_v16  ;;  %v1456_v20 = vadd.f32 %v1455_v19, %v1166_v17  ;;  %v1168_v21 = vpop.f32.mrf.mxu0  ;;  %v811_v17 = vld [vmem:[#allocation2 + $0x100] sm:$0xff] }
 0x20f   : > { %v1457_v22 = vpop.f32.mrf.mxu1 }
 0x210   : > { %v1636_v23 = vadd.f32 %v1456_v20, %v802_v18  ;;  %v1171_v24 = vpop.f32.mrf.mxu0 }
 0x211   : > { %v1460_v26 = vpop.f32.mrf.mxu1 }
 0x212   : > { %1700 = vst [vmem:[#allocation2 + $0xf8] sm:$0xff] %v1636_v23  ;;  %v1461_v27 = vadd.f32 %v1460_v26, %v1171_v24  ;;  %v1173_v28 = vpop.f32.mrf.mxu0  ;;  %v812_v24 = vld [vmem:[#allocation2 + $0xc8] sm:$0xff] }
 0x213   : > { %v1462_v29 = vpop.f32.mrf.mxu1 }
 0x214   : > { %v1637_v30 = vadd.f32 %v1461_v27, %v803_v25  ;;  %v1174_v31 = vpop.f32.mrf.mxu0 }
 0x215   : > { %v1463_v33 = vpop.f32.mrf.mxu1 }
 0x216   : > { %1701 = vst [vmem:[#allocation2 + $0x160] sm:$0xff] %v1637_v30  ;;  %v1464_v34 = vadd.f32 %v1463_v33, %v1174_v31  ;;  %v1176_v35 = vpop.f32.mrf.mxu0  ;;  %v813_v31 = vld [vmem:[#allocation2 + $0x40] sm:$0xff] }
 0x217   : > { %v1465_v36 = vpop.f32.mrf.mxu1 }
 0x218   : > { %v1638_v37 = vadd.f32 %v1464_v34, %v804_v32  ;;  %v1179_v38 = vpop.f32.mrf.mxu0 }
 0x219   : > { %v1468_v40 = vpop.f32.mrf.mxu1 }
 0x21a   : > { %1702 = vst [vmem:[#allocation2 + $0x30] sm:$0xff] %v1638_v37  ;;  %v1469_v41 = vadd.f32 %v1468_v40, %v1179_v38  ;;  %v1181_v42 = vpop.f32.mrf.mxu0  ;;  %v814_v38 = vld [vmem:[#allocation2 + $0x1f8] sm:$0xff] }
 0x21b   : > { %v1470_v43 = vpop.f32.mrf.mxu1 }
 0x21c   : > { %v1639_v44 = vadd.f32 %v1469_v41, %v805_v39  ;;  %v1182_v45 = vpop.f32.mrf.mxu0 }
 0x21d   : > { %v1471_v47 = vpop.f32.mrf.mxu1 }
 0x21e   : > { %1703 = vst [vmem:[#allocation2 + $0x1e0] sm:$0xff] %v1639_v44  ;;  %v1472_v48 = vadd.f32 %v1471_v47, %v1182_v45  ;;  %v1184_v49 = vpop.f32.mrf.mxu0  ;;  %v815_v45 = vld [vmem:[#allocation2 + $0x20] sm:$0xff] }
 0x21f   : > { %v1473_v50 = vpop.f32.mrf.mxu1 }
 0x220   : > { %v1640_v51 = vadd.f32 %v1472_v48, %v806_v46  ;;  %v1187_v52 = vpop.f32.mrf.mxu0 }
 0x221   : > { %v1476_v54 = vpop.f32.mrf.mxu1 }
 0x222   : > { %1704 = vst [vmem:[#allocation2] sm:$0xff] %v1640_v51  ;;  %v1477_v55 = vadd.f32 %v1476_v54, %v1187_v52  ;;  %v1189_v56 = vpop.f32.mrf.mxu0  ;;  %v816_v52 = vld [vmem:[#allocation2 + $0x128] sm:$0xff] }
 0x223   : > { %v1478_v57 = vpop.f32.mrf.mxu1 }
 0x224   : > { %v1641_v58 = vadd.f32 %v1477_v55, %v807_v53  ;;  %v1190_v59 = vpop.f32.mrf.mxu0 }
 0x225   : > { %v1479_v61 = vpop.f32.mrf.mxu1 }
 0x226   : > { %1705 = vst [vmem:[#allocation2 + $0xf0] sm:$0xff] %v1641_v58  ;;  %v1480_v62 = vadd.f32 %v1479_v61, %v1190_v59  ;;  %v1192_v63 = vpop.f32.mrf.mxu0  ;;  %v817_v59 = vld [vmem:[#allocation2 + $0x1a0] sm:$0xff] }
 0x227   : > { %v1481_v0 = vpop.f32.mrf.mxu1 }
 0x228   : > { %v1642_v1 = vadd.f32 %v1480_v62, %v808_v60  ;;  %v1195_v2 = vpop.f32.mrf.mxu0 }
 0x229   : > { %v1484_v4 = vpop.f32.mrf.mxu1 }
 0x22a   : > { %1706 = vst [vmem:[#allocation2 + $0x8] sm:$0xff] %v1642_v1  ;;  %v1485_v5 = vadd.f32 %v1484_v4, %v1195_v2  ;;  %v1197_v6 = vpop.f32.mrf.mxu0  ;;  %v818_v2 = vld [vmem:[#allocation2 + $0x1f0] sm:$0xff] }
 0x22b   : > { %v1486_v7 = vpop.f32.mrf.mxu1 }
 0x22c   : > { %v1643_v8 = vadd.f32 %v1485_v5, %v809_v3  ;;  %v1198_v9 = vpop.f32.mrf.mxu0 }
 0x22d   : > { %v1487_v11 = vpop.f32.mrf.mxu1 }
 0x22e   : > { %1707 = vst [vmem:[#allocation2 + $0x148] sm:$0xff] %v1643_v8  ;;  %v1488_v12 = vadd.f32 %v1487_v11, %v1198_v9  ;;  %v1200_v13 = vpop.f32.mrf.mxu0  ;;  %v819_v9 = vld [vmem:[#allocation2 + $0xe8] sm:$0xff] }
 0x22f   : > { %v1489_v14 = vpop.f32.mrf.mxu1 }
 0x230   : > { %v1644_v15 = vadd.f32 %v1488_v12, %v810_v10  ;;  %v1203_v16 = vpop.f32.mrf.mxu0 }
 0x231   : > { %v1492_v18 = vpop.f32.mrf.mxu1 }
 0x232   : > { %1708 = vst [vmem:[#allocation2 + $0x1d0] sm:$0xff] %v1644_v15  ;;  %v1493_v19 = vadd.f32 %v1492_v18, %v1203_v16  ;;  %v1205_v20 = vpop.f32.mrf.mxu0  ;;  %v820_v16 = vld [vmem:[#allocation2 + $0x78] sm:$0xff] }
 0x233   : > { %v1494_v21 = vpop.f32.mrf.mxu1 }
 0x234   : > { %v1645_v22 = vadd.f32 %v1493_v19, %v811_v17  ;;  %v1206_v23 = vpop.f32.mrf.mxu0 }
 0x235   : > { %v1495_v25 = vpop.f32.mrf.mxu1 }
 0x236   : > { %1709 = vst [vmem:[#allocation2 + $0x100] sm:$0xff] %v1645_v22  ;;  %v1496_v26 = vadd.f32 %v1495_v25, %v1206_v23  ;;  %v1208_v27 = vpop.f32.mrf.mxu0  ;;  %v821_v23 = vld [vmem:[#allocation2 + $0x70] sm:$0xff] }
 0x237   : > { %v1497_v28 = vpop.f32.mrf.mxu1 }
 0x238   : > { %v1646_v29 = vadd.f32 %v1496_v26, %v812_v24  ;;  %v1211_v30 = vpop.f32.mrf.mxu0 }
 0x239   : > { %v1500_v32 = vpop.f32.mrf.mxu1 }
 0x23a   : > { %1710 = vst [vmem:[#allocation2 + $0xc8] sm:$0xff] %v1646_v29  ;;  %v1501_v33 = vadd.f32 %v1500_v32, %v1211_v30  ;;  %v1213_v34 = vpop.f32.mrf.mxu0  ;;  %v822_v30 = vld [vmem:[#allocation2 + $0x90] sm:$0xff] }
 0x23b   : > { %v1502_v35 = vpop.f32.mrf.mxu1 }
 0x23c   : > { %v1647_v36 = vadd.f32 %v1501_v33, %v813_v31  ;;  %v1214_v37 = vpop.f32.mrf.mxu0 }
 0x23d   : > { %v1503_v39 = vpop.f32.mrf.mxu1 }
 0x23e   : > { %1711 = vst [vmem:[#allocation2 + $0x40] sm:$0xff] %v1647_v36  ;;  %v1504_v40 = vadd.f32 %v1503_v39, %v1214_v37  ;;  %v1216_v41 = vpop.f32.mrf.mxu0  ;;  %v823_v37 = vld [vmem:[#allocation2 + $0x1d8] sm:$0xff] }
 0x23f   : > { %v1505_v42 = vpop.f32.mrf.mxu1 }
 0x240   : > { %v1648_v43 = vadd.f32 %v1504_v40, %v814_v38  ;;  %v1219_v44 = vpop.f32.mrf.mxu0 }
 0x241   : > { %v1508_v46 = vpop.f32.mrf.mxu1 }
 0x242   : > { %1712 = vst [vmem:[#allocation2 + $0x1f8] sm:$0xff] %v1648_v43  ;;  %v1509_v47 = vadd.f32 %v1508_v46, %v1219_v44  ;;  %v1221_v48 = vpop.f32.mrf.mxu0  ;;  %v824_v44 = vld [vmem:[#allocation2 + $0xd0] sm:$0xff] }
 0x243   : > { %v1510_v49 = vpop.f32.mrf.mxu1 }
 0x244   : > { %v1649_v50 = vadd.f32 %v1509_v47, %v815_v45  ;;  %v1222_v51 = vpop.f32.mrf.mxu0 }
 0x245   : > { %v1511_v53 = vpop.f32.mrf.mxu1 }
 0x246   : > { %1713 = vst [vmem:[#allocation2 + $0x20] sm:$0xff] %v1649_v50  ;;  %v1512_v54 = vadd.f32 %v1511_v53, %v1222_v51  ;;  %v1224_v55 = vpop.f32.mrf.mxu0  ;;  %v825_v51 = vld [vmem:[#allocation2 + $0xb8] sm:$0xff] }
 0x247   : > { %v1513_v56 = vpop.f32.mrf.mxu1 }
 0x248   : > { %v1650_v57 = vadd.f32 %v1512_v54, %v816_v52  ;;  %v1227_v58 = vpop.f32.mrf.mxu0 }
 0x249   : > { %v1516_v60 = vpop.f32.mrf.mxu1 }
 0x24a   : > { %1714 = vst [vmem:[#allocation2 + $0x128] sm:$0xff] %v1650_v57  ;;  %v1517_v61 = vadd.f32 %v1516_v60, %v1227_v58  ;;  %v1229_v62 = vpop.f32.mrf.mxu0  ;;  %v826_v58 = vld [vmem:[#allocation2 + $0x88] sm:$0xff] }
 0x24b   : > { %v1518_v63 = vpop.f32.mrf.mxu1 }
 0x24c   : > { %v1651_v0 = vadd.f32 %v1517_v61, %v817_v59  ;;  %v1230_v1 = vpop.f32.mrf.mxu0 }
 0x24d   : > { %v1519_v3 = vpop.f32.mrf.mxu1 }
 0x24e   : > { %1715 = vst [vmem:[#allocation2 + $0x1a0] sm:$0xff] %v1651_v0  ;;  %v1520_v4 = vadd.f32 %v1519_v3, %v1230_v1  ;;  %v1232_v5 = vpop.f32.mrf.mxu0  ;;  %v827_v1 = vld [vmem:[#allocation2 + $0xa8] sm:$0xff] }
 0x24f   : > { %v1521_v6 = vpop.f32.mrf.mxu1 }
 0x250   : > { %v1652_v7 = vadd.f32 %v1520_v4, %v818_v2  ;;  %v1235_v8 = vpop.f32.mrf.mxu0 }
 0x251   : > { %v1524_v10 = vpop.f32.mrf.mxu1 }
 0x252   : > { %1716 = vst [vmem:[#allocation2 + $0x1f0] sm:$0xff] %v1652_v7  ;;  %v1525_v11 = vadd.f32 %v1524_v10, %v1235_v8  ;;  %v1237_v12 = vpop.f32.mrf.mxu0  ;;  %v828_v8 = vld [vmem:[#allocation2 + $0x1c8] sm:$0xff] }
 0x253   : > { %v1526_v13 = vpop.f32.mrf.mxu1 }
 0x254   : > { %v1653_v14 = vadd.f32 %v1525_v11, %v819_v9  ;;  %v1238_v15 = vpop.f32.mrf.mxu0 }
 0x255   : > { %v1527_v17 = vpop.f32.mrf.mxu1 }
 0x256   : > { %1717 = vst [vmem:[#allocation2 + $0xe8] sm:$0xff] %v1653_v14  ;;  %v1528_v18 = vadd.f32 %v1527_v17, %v1238_v15  ;;  %v1240_v19 = vpop.f32.mrf.mxu0  ;;  %v829_v15 = vld [vmem:[#allocation2 + $0x170] sm:$0xff] }
 0x257   : > { %v1529_v20 = vpop.f32.mrf.mxu1 }
 0x258   : > { %v1654_v21 = vadd.f32 %v1528_v18, %v820_v16  ;;  %v1243_v22 = vpop.f32.mrf.mxu0 }
 0x259   : > { %v1532_v24 = vpop.f32.mrf.mxu1 }
 0x25a   : > { %1718 = vst [vmem:[#allocation2 + $0x78] sm:$0xff] %v1654_v21  ;;  %v1533_v25 = vadd.f32 %v1532_v24, %v1243_v22  ;;  %v1245_v26 = vpop.f32.mrf.mxu0  ;;  %v830_v22 = vld [vmem:[#allocation2 + $0x178] sm:$0xff] }
 0x25b   : > { %v1534_v27 = vpop.f32.mrf.mxu1 }
 0x25c   : > { %v1655_v28 = vadd.f32 %v1533_v25, %v821_v23  ;;  %v1246_v29 = vpop.f32.mrf.mxu0 }
 0x25d   : > { %v1535_v31 = vpop.f32.mrf.mxu1 }
 0x25e   : > { %1719 = vst [vmem:[#allocation2 + $0x70] sm:$0xff] %v1655_v28  ;;  %v1536_v32 = vadd.f32 %v1535_v31, %v1246_v29  ;;  %v1248_v33 = vpop.f32.mrf.mxu0  ;;  %v831_v29 = vld [vmem:[#allocation2 + $0x68] sm:$0xff] }
 0x25f   : > { %v1537_v34 = vpop.f32.mrf.mxu1 }
 0x260   : > { %v1656_v35 = vadd.f32 %v1536_v32, %v822_v30  ;;  %v1251_v36 = vpop.f32.mrf.mxu0 }
 0x261   : > { %v1540_v38 = vpop.f32.mrf.mxu1 }
 0x262   : > { %1720 = vst [vmem:[#allocation2 + $0x90] sm:$0xff] %v1656_v35  ;;  %v1541_v39 = vadd.f32 %v1540_v38, %v1251_v36  ;;  %v1253_v40 = vpop.f32.mrf.mxu0  ;;  %v832_v36 = vld [vmem:[#allocation2 + $0x190] sm:$0xff] }
 0x263   : > { %v1542_v41 = vpop.f32.mrf.mxu1 }
 0x264   : > { %v1657_v42 = vadd.f32 %v1541_v39, %v823_v37  ;;  %v1254_v43 = vpop.f32.mrf.mxu0 }
 0x265   : > { %v1543_v45 = vpop.f32.mrf.mxu1 }
 0x266   : > { %1721 = vst [vmem:[#allocation2 + $0x1d8] sm:$0xff] %v1657_v42  ;;  %v1544_v46 = vadd.f32 %v1543_v45, %v1254_v43  ;;  %v1256_v47 = vpop.f32.mrf.mxu0  ;;  %v833_v43 = vld [vmem:[#allocation2 + $0x198] sm:$0xff] }
 0x267   : > { %v1545_v48 = vpop.f32.mrf.mxu1 }
 0x268   : > { %v1658_v49 = vadd.f32 %v1544_v46, %v824_v44  ;;  %v1259_v50 = vpop.f32.mrf.mxu0 }
 0x269   : > { %v1548_v52 = vpop.f32.mrf.mxu1 }
 0x26a   : > { %1722 = vst [vmem:[#allocation2 + $0xd0] sm:$0xff] %v1658_v49  ;;  %v1549_v53 = vadd.f32 %v1548_v52, %v1259_v50  ;;  %v1261_v54 = vpop.f32.mrf.mxu0  ;;  %v834_v50 = vld [vmem:[#allocation2 + $0x38] sm:$0xff] }
 0x26b   : > { %v1550_v55 = vpop.f32.mrf.mxu1 }
 0x26c   : > { %v1659_v56 = vadd.f32 %v1549_v53, %v825_v51  ;;  %v1262_v57 = vpop.f32.mrf.mxu0 }
 0x26d   : > { %v1551_v59 = vpop.f32.mrf.mxu1 }
 0x26e   : > { %1723 = vst [vmem:[#allocation2 + $0xb8] sm:$0xff] %v1659_v56  ;;  %v1552_v60 = vadd.f32 %v1551_v59, %v1262_v57  ;;  %v1264_v61 = vpop.f32.mrf.mxu0  ;;  %v835_v57 = vld [vmem:[#allocation2 + $0xc0] sm:$0xff] }
 0x26f   : > { %v1553_v62 = vpop.f32.mrf.mxu1 }
 0x270   : > { %v1660_v63 = vadd.f32 %v1552_v60, %v826_v58  ;;  %v1267_v0 = vpop.f32.mrf.mxu0 }
 0x271   : > { %v1556_v2 = vpop.f32.mrf.mxu1 }
 0x272   : > { %1724 = vst [vmem:[#allocation2 + $0x88] sm:$0xff] %v1660_v63  ;;  %v1557_v3 = vadd.f32 %v1556_v2, %v1267_v0  ;;  %v1269_v4 = vpop.f32.mrf.mxu0  ;;  %v836_v0 = vld [vmem:[#allocation2 + $0x1c0] sm:$0xff] }
 0x273   : > { %v1558_v5 = vpop.f32.mrf.mxu1 }
 0x274   : > { %v1661_v6 = vadd.f32 %v1557_v3, %v827_v1  ;;  %v1270_v7 = vpop.f32.mrf.mxu0 }
 0x275   : > { %v1559_v9 = vpop.f32.mrf.mxu1 }
 0x276   : > { %1725 = vst [vmem:[#allocation2 + $0xa8] sm:$0xff] %v1661_v6  ;;  %v1560_v10 = vadd.f32 %v1559_v9, %v1270_v7  ;;  %v1272_v11 = vpop.f32.mrf.mxu0  ;;  %v837_v7 = vld [vmem:[#allocation2 + $0x158] sm:$0xff] }
 0x277   : > { %v1561_v12 = vpop.f32.mrf.mxu1 }
 0x278   : > { %v1662_v13 = vadd.f32 %v1560_v10, %v828_v8  ;;  %v1275_v14 = vpop.f32.mrf.mxu0 }
 0x279   : > { %v1564_v16 = vpop.f32.mrf.mxu1 }
 0x27a   : > { %1726 = vst [vmem:[#allocation2 + $0x1c8] sm:$0xff] %v1662_v13  ;;  %v1565_v17 = vadd.f32 %v1564_v16, %v1275_v14  ;;  %v1277_v18 = vpop.f32.mrf.mxu0  ;;  %v838_v14 = vld [vmem:[#allocation2 + $0x10] sm:$0xff] }
 0x27b   : > { %v1566_v19 = vpop.f32.mrf.mxu1 }
 0x27c   : > { %v1663_v20 = vadd.f32 %v1565_v17, %v829_v15  ;;  %v1278_v21 = vpop.f32.mrf.mxu0 }
 0x27d   : > { %v1567_v23 = vpop.f32.mrf.mxu1 }
 0x27e   : > { %1727 = vst [vmem:[#allocation2 + $0x170] sm:$0xff] %v1663_v20  ;;  %v1568_v24 = vadd.f32 %v1567_v23, %v1278_v21  ;;  %v1280_v25 = vpop.f32.mrf.mxu0  ;;  %v839_v21 = vld [vmem:[#allocation2 + $0x58] sm:$0xff] }
 0x27f   : > { %v1569_v26 = vpop.f32.mrf.mxu1 }
 0x280   : > { %v1664_v27 = vadd.f32 %v1568_v24, %v830_v22  ;;  %v1283_v28 = vpop.f32.mrf.mxu0 }
 0x281   : > { %v1572_v30 = vpop.f32.mrf.mxu1 }
 0x282   : > { %1728 = vst [vmem:[#allocation2 + $0x178] sm:$0xff] %v1664_v27  ;;  %v1573_v31 = vadd.f32 %v1572_v30, %v1283_v28  ;;  %v1285_v32 = vpop.f32.mrf.mxu0  ;;  %v840_v28 = vld [vmem:[#allocation2 + $0xa0] sm:$0xff] }
 0x283   : > { %v1574_v33 = vpop.f32.mrf.mxu1 }
 0x284   : > { %v1665_v34 = vadd.f32 %v1573_v31, %v831_v29  ;;  %v1286_v35 = vpop.f32.mrf.mxu0 }
 0x285   : > { %v1575_v37 = vpop.f32.mrf.mxu1 }
 0x286   : > { %1729 = vst [vmem:[#allocation2 + $0x68] sm:$0xff] %v1665_v34  ;;  %v1576_v38 = vadd.f32 %v1575_v37, %v1286_v35  ;;  %v1288_v39 = vpop.f32.mrf.mxu0 }
 0x287   : > { %v1577_v40 = vpop.f32.mrf.mxu1 }
 0x288   : > { %v1666_v41 = vadd.f32 %v1576_v38, %v832_v36  ;;  %v1291_v42 = vpop.f32.mrf.mxu0 }
 0x289   : > { %v1580_v44 = vpop.f32.mrf.mxu1 }
 0x28a   : > { %1730 = vst [vmem:[#allocation2 + $0x190] sm:$0xff] %v1666_v41  ;;  %v1581_v45 = vadd.f32 %v1580_v44, %v1291_v42  ;;  %v1293_v46 = vpop.f32.mrf.mxu0 }
 0x28b   : > { %v1582_v47 = vpop.f32.mrf.mxu1 }
 0x28c   : > { %v1667_v48 = vadd.f32 %v1581_v45, %v833_v43  ;;  %v1294_v49 = vpop.f32.mrf.mxu0 }
 0x28d   : > { %v1583_v51 = vpop.f32.mrf.mxu1 }
 0x28e   : > { %1731 = vst [vmem:[#allocation2 + $0x198] sm:$0xff] %v1667_v48  ;;  %v1584_v52 = vadd.f32 %v1583_v51, %v1294_v49  ;;  %v1296_v53 = vpop.f32.mrf.mxu0 }
 0x28f   : > { %v1585_v54 = vpop.f32.mrf.mxu1 }
 0x290   : > { %v1668_v55 = vadd.f32 %v1584_v52, %v834_v50  ;;  %v1299_v56 = vpop.f32.mrf.mxu0 }
 0x291   : > { %v1588_v58 = vpop.f32.mrf.mxu1 }
 0x292   : > { %1732 = vst [vmem:[#allocation2 + $0x38] sm:$0xff] %v1668_v55  ;;  %v1589_v59 = vadd.f32 %v1588_v58, %v1299_v56  ;;  %v1301_v60 = vpop.f32.mrf.mxu0 }
 0x293   : > { %v1590_v61 = vpop.f32.mrf.mxu1 }
 0x294   : > { %v1669_v62 = vadd.f32 %v1589_v59, %v835_v57  ;;  %v1302_v63 = vpop.f32.mrf.mxu0 }
 0x295   : > { %v1591_v1 = vpop.f32.mrf.mxu1 }
 0x296   : > { %1733 = vst [vmem:[#allocation2 + $0xc0] sm:$0xff] %v1669_v62  ;;  %v1592_v2 = vadd.f32 %v1591_v1, %v1302_v63  ;;  %v1304_v3 = vpop.f32.mrf.mxu0 }
 0x297   : > { %v1593_v4 = vpop.f32.mrf.mxu1 }
 0x298   : > { %v1670_v5 = vadd.f32 %v1592_v2, %v836_v0  ;;  %v1307_v6 = vpop.f32.mrf.mxu0 }
 0x299   : > { %v1596_v8 = vpop.f32.mrf.mxu1 }
 0x29a   : > { %1734 = vst [vmem:[#allocation2 + $0x1c0] sm:$0xff] %v1670_v5  ;;  %v1597_v9 = vadd.f32 %v1596_v8, %v1307_v6  ;;  %v1309_v10 = vpop.f32.mrf.mxu0 }
 0x29b   : > { %v1598_v11 = vpop.f32.mrf.mxu1 }
 0x29c   : > { %v1671_v12 = vadd.f32 %v1597_v9, %v837_v7  ;;  %v1310_v13 = vpop.f32.mrf.mxu0 }
 0x29d   : > { %v1599_v15 = vpop.f32.mrf.mxu1 }
 0x29e   : > { %1735 = vst [vmem:[#allocation2 + $0x158] sm:$0xff] %v1671_v12  ;;  %v1600_v16 = vadd.f32 %v1599_v15, %v1310_v13  ;;  %v1312_v17 = vpop.f32.mrf.mxu0 }
 0x29f   : > { %v1601_v18 = vpop.f32.mrf.mxu1 }
 0x2a0   : > { %v1672_v19 = vadd.f32 %v1600_v16, %v838_v14  ;;  %v1315_v20 = vpop.f32.mrf.mxu0 }
 0x2a1   : > { %v1604_v22 = vpop.f32.mrf.mxu1 }
 0x2a2   : > { %1736 = vst [vmem:[#allocation2 + $0x10] sm:$0xff] %v1672_v19  ;;  %v1605_v23 = vadd.f32 %v1604_v22, %v1315_v20  ;;  %v1317_v24 = vpop.f32.mrf.mxu0 }
 0x2a3   : > { %v1606_v25 = vpop.f32.mrf.mxu1 }
 0x2a4   : > { %v1673_v26 = vadd.f32 %v1605_v23, %v839_v21  ;;  %v1318_v27 = vpop.f32.mrf.mxu0 }
 0x2a5   : > { %v1607_v29 = vpop.f32.mrf.mxu1 }
 0x2a6   : > { %1737 = vst [vmem:[#allocation2 + $0x58] sm:$0xff] %v1673_v26  ;;  %v1608_v30 = vadd.f32 %v1607_v29, %v1318_v27  ;;  %v1320_v31 = vpop.f32.mrf.mxu0  ;;  %1742 = sbr.rel (%p2996_p4) target bundleno = 939 (0x3ab), region = 71 }
 0x2a7   : > { %v1609_v32 = vpop.f32.mrf.mxu1 }
 0x2a8   : > { %v1674_v33 = vadd.f32 %v1608_v30, %v840_v28 }
 0x2aa   : > { %1738 = vst [vmem:[#allocation2 + $0xa0] sm:$0xff] %v1674_v33 }
 0x2ab   : > { %v1809_v34 = vld [vmem:[%s3973_s14 + $0x10] sm:$0xff]  ;;  %v1807_v35 = vld [vmem:[%s3973_s14] sm:$0xff]  ;;  %v3647_v36 = vmov 0   ;;  %v1810_v37 = vld [vmem:[%s3973_s14 + $0x18] sm:$0xff] }
 0x2ac   : > { %3469 = vset.pattern.permute.xlu1 %v3647_v36  ;;  %3468 = vset.pattern.permute.xlu0 %v3647_v36  ;;  %v1808_v38 = vld [vmem:[%s3973_s14 + $0x8] sm:$0xff]  ;;  %v1811_v40 = vld [vmem:[%s3973_s14 + $0x20] sm:$0xff]  ;;  %v1814_v41 = vld [vmem:[%s3973_s14 + $0x38] sm:$0xff] }
 0x2ad   : > { %1883 = vperm.xlu1 %3469, %v1809_v34   ;;  %1873 = vperm.xlu0 %3468, %v1807_v35   ;;  %v1812_v39 = vld [vmem:[%s3973_s14 + $0x28] sm:$0xff]  ;;  %v1813_v42 = vld [vmem:[%s3973_s14 + $0x30] sm:$0xff]  ;;  %v1815_v44 = vld [vmem:[%s3973_s14 + $0x40] sm:$0xff] }
 0x2ae   : > { %v1816_v43 = vld [vmem:[%s3973_s14 + $0x48] sm:$0xff]  ;;  %v1818_v45 = vld [vmem:[%s3973_s14 + $0x58] sm:$0xff]  ;;  %v1817_v46 = vld [vmem:[%s3973_s14 + $0x50] sm:$0xff] }
 0x2af   : > { %v1820_v47 = vld [vmem:[%s3973_s14 + $0x68] sm:$0xff]  ;;  %v1819_v48 = vld [vmem:[%s3973_s14 + $0x60] sm:$0xff]  ;;  %v1822_v49 = vld [vmem:[%s3973_s14 + $0x78] sm:$0xff] }
 0x2b0   : > { %v1821_v50 = vld [vmem:[%s3973_s14 + $0x70] sm:$0xff]  ;;  %v1824_v51 = vld [vmem:[%s3973_s14 + $0x88] sm:$0xff]  ;;  %v1823_v52 = vld [vmem:[%s3973_s14 + $0x80] sm:$0xff] }
 0x2b1   : > { %1888 = vperm.xlu1 %3469, %v1810_v37   ;;  %1878 = vperm.xlu0 %3468, %v1808_v38   ;;  %v1826_v53 = vld [vmem:[%s3973_s14 + $0x98] sm:$0xff]  ;;  %v1825_v54 = vld [vmem:[%s3973_s14 + $0x90] sm:$0xff]  ;;  %v1828_v55 = vld [vmem:[%s3973_s14 + $0xa8] sm:$0xff] }
 0x2b2   : > { %v1827_v56 = vld [vmem:[%s3973_s14 + $0xa0] sm:$0xff]  ;;  %v1830_v57 = vld [vmem:[%s3973_s14 + $0xb8] sm:$0xff]  ;;  %v1829_v58 = vld [vmem:[%s3973_s14 + $0xb0] sm:$0xff] }
 0x2b3   : > { %v1832_v59 = vld [vmem:[%s3973_s14 + $0xc8] sm:$0xff]  ;;  %v1831_v60 = vld [vmem:[%s3973_s14 + $0xc0] sm:$0xff]  ;;  %v1834_v61 = vld [vmem:[%s3973_s14 + $0xd8] sm:$0xff] }
 0x2b4   : > { %v1833_v62 = vld [vmem:[%s3973_s14 + $0xd0] sm:$0xff]  ;;  %v1836_v63 = vld [vmem:[%s3973_s14 + $0xe8] sm:$0xff]  ;;  %v1835_v0 = vld [vmem:[%s3973_s14 + $0xe0] sm:$0xff] }
 0x2b5   : > { %1898 = vperm.xlu1 %3469, %v1812_v39   ;;  %1893 = vperm.xlu0 %3468, %v1811_v40   ;;  %v1838_v1 = vld [vmem:[%s3973_s14 + $0xf8] sm:$0xff]  ;;  %v1837_v2 = vld [vmem:[%s3973_s14 + $0xf0] sm:$0xff]  ;;  %v1840_v3 = vld [vmem:[%s3973_s14 + $0x108] sm:$0xff] }
 0x2b6   : > { %v1839_v4 = vld [vmem:[%s3973_s14 + $0x100] sm:$0xff]  ;;  %v1842_v5 = vld [vmem:[%s3973_s14 + $0x118] sm:$0xff]  ;;  %v1841_v6 = vld [vmem:[%s3973_s14 + $0x110] sm:$0xff] }
 0x2b7   : > { %v1844_v7 = vld [vmem:[%s3973_s14 + $0x128] sm:$0xff]  ;;  %v1843_v8 = vld [vmem:[%s3973_s14 + $0x120] sm:$0xff]  ;;  %v1846_v9 = vld [vmem:[%s3973_s14 + $0x138] sm:$0xff] }
 0x2b8   : > { %v1845_v10 = vld [vmem:[%s3973_s14 + $0x130] sm:$0xff]  ;;  %v1848_v11 = vld [vmem:[%s3973_s14 + $0x148] sm:$0xff]  ;;  %v1847_v12 = vld [vmem:[%s3973_s14 + $0x140] sm:$0xff] }
 0x2b9   : > { %1908 = vperm.xlu1 %3469, %v1814_v41   ;;  %1903 = vperm.xlu0 %3468, %v1813_v42   ;;  %v1850_v13 = vld [vmem:[%s3973_s14 + $0x158] sm:$0xff]  ;;  %v1849_v14 = vld [vmem:[%s3973_s14 + $0x150] sm:$0xff]  ;;  %v1852_v15 = vld [vmem:[%s3973_s14 + $0x168] sm:$0xff] }
 0x2ba   : > { %v1851_v16 = vld [vmem:[%s3973_s14 + $0x160] sm:$0xff]  ;;  %v1854_v17 = vld [vmem:[%s3973_s14 + $0x178] sm:$0xff]  ;;  %v1853_v18 = vld [vmem:[%s3973_s14 + $0x170] sm:$0xff] }
 0x2bb   : > { %v1856_v19 = vld [vmem:[%s3973_s14 + $0x188] sm:$0xff]  ;;  %v1855_v20 = vld [vmem:[%s3973_s14 + $0x180] sm:$0xff]  ;;  %v1858_v21 = vld [vmem:[%s3973_s14 + $0x198] sm:$0xff] }
 0x2bc   : > { %v1857_v22 = vld [vmem:[%s3973_s14 + $0x190] sm:$0xff]  ;;  %v1860_v23 = vld [vmem:[%s3973_s14 + $0x1a8] sm:$0xff]  ;;  %v1859_v24 = vld [vmem:[%s3973_s14 + $0x1a0] sm:$0xff] }
 0x2bd   : > { %1918 = vperm.xlu1 %3469, %v1816_v43   ;;  %1913 = vperm.xlu0 %3468, %v1815_v44   ;;  %v1862_v25 = vld [vmem:[%s3973_s14 + $0x1b8] sm:$0xff]  ;;  %v1861_v26 = vld [vmem:[%s3973_s14 + $0x1b0] sm:$0xff]  ;;  %v1864_v27 = vld [vmem:[%s3973_s14 + $0x1c8] sm:$0xff] }
 0x2be   : > { %v1863_v28 = vld [vmem:[%s3973_s14 + $0x1c0] sm:$0xff]  ;;  %v1866_v29 = vld [vmem:[%s3973_s14 + $0x1d8] sm:$0xff]  ;;  %v1865_v30 = vld [vmem:[%s3973_s14 + $0x1d0] sm:$0xff] }
 0x2bf   : > { %v1868_v31 = vld [vmem:[%s3973_s14 + $0x1e8] sm:$0xff]  ;;  %v1867_v32 = vld [vmem:[%s3973_s14 + $0x1e0] sm:$0xff]  ;;  %v1745_v33 = vld [vmem:[#allocation2 + $0xd8] sm:$0xff] }
 0x2c0   : > { %v1743_v34 = vld [vmem:[#allocation2 + $0xb0] sm:$0xff]  ;;  %v1870_v35 = vld [vmem:[%s3973_s14 + $0x1f8] sm:$0xff]  ;;  %v2575_v39 = vld [vmem:[#allocation4] sm:$0xff] }
 0x2c1   : > { %1928 = vperm.xlu1 %3469, %v1818_v45   ;;  %1923 = vperm.xlu0 %3468, %v1817_v46   ;;  %v1869_v36 = vld [vmem:[%s3973_s14 + $0x1f0] sm:$0xff]  ;;  %v1746_v43 = vld [vmem:[#allocation2 + $0x18] sm:$0xff] }
 0x2c2   : > { %v2577_v37 = vld [vmem:[#allocation4 + $0x10] sm:$0xff] }
 0x2c3   : > { %v1744_v44 = vld [vmem:[#allocation2 + $0x1b0] sm:$0xff] }
 0x2c5   : > { %1938 = vperm.xlu1 %3469, %v1820_v47   ;;  %1933 = vperm.xlu0 %3468, %v1819_v48   ;;  %v2578_v47 = vld [vmem:[#allocation4 + $0x18] sm:$0xff] }
 0x2c9   : > { %1948 = vperm.xlu1 %3469, %v1822_v49   ;;  %1943 = vperm.xlu0 %3468, %v1821_v50   ;;  %v2576_v49 = vld [vmem:[#allocation4 + $0x8] sm:$0xff] }
 0x2cd   : > { %1958 = vperm.xlu1 %3469, %v1824_v51   ;;  %1953 = vperm.xlu0 %3468, %v1823_v52  }
 0x2d1   : > { %1968 = vperm.xlu1 %3469, %v1826_v53   ;;  %1963 = vperm.xlu0 %3468, %v1825_v54   ;;  %v1748_v53 = vld [vmem:[#allocation2 + $0x168] sm:$0xff]  ;;  %v1747_v54 = vld [vmem:[#allocation2 + $0x50] sm:$0xff] }
 0x2d5   : > { %1978 = vperm.xlu1 %3469, %v1828_v55   ;;  %1973 = vperm.xlu0 %3468, %v1827_v56  }
 0x2d9   : > { %1988 = vperm.xlu1 %3469, %v1830_v57   ;;  %1983 = vperm.xlu0 %3468, %v1829_v58  }
 0x2dd   : > { %1998 = vperm.xlu1 %3469, %v1832_v59   ;;  %1993 = vperm.xlu0 %3468, %v1831_v60   ;;  %v2580_v59 = vld [vmem:[#allocation4 + $0x28] sm:$0xff] }
 0x2e1   : > { %2008 = vperm.xlu1 %3469, %v1834_v61   ;;  %2003 = vperm.xlu0 %3468, %v1833_v62   ;;  %v2579_v61 = vld [vmem:[#allocation4 + $0x20] sm:$0xff] }
 0x2e5   : > { %2018 = vperm.xlu1 %3469, %v1836_v63   ;;  %2013 = vperm.xlu0 %3468, %v1835_v0  }
 0x2e9   : > { %2028 = vperm.xlu1 %3469, %v1838_v1   ;;  %2023 = vperm.xlu0 %3468, %v1837_v2   ;;  %v1750_v1 = vld [vmem:[#allocation2 + $0x48] sm:$0xff]  ;;  %v1749_v2 = vld [vmem:[#allocation2 + $0x130] sm:$0xff] }
 0x2ed   : > { %2038 = vperm.xlu1 %3469, %v1840_v3   ;;  %2033 = vperm.xlu0 %3468, %v1839_v4  }
 0x2f1   : > { %2048 = vperm.xlu1 %3469, %v1842_v5   ;;  %2043 = vperm.xlu0 %3468, %v1841_v6   ;;  %v2582_v6 = vld [vmem:[#allocation4 + $0x38] sm:$0xff] }
 0x2f5   : > { %2058 = vperm.xlu1 %3469, %v1844_v7   ;;  %2053 = vperm.xlu0 %3468, %v1843_v8   ;;  %v2581_v8 = vld [vmem:[#allocation4 + $0x30] sm:$0xff] }
 0x2f9   : > { %2068 = vperm.xlu1 %3469, %v1846_v9   ;;  %2063 = vperm.xlu0 %3468, %v1845_v10  }
 0x2fd   : > { %2078 = vperm.xlu1 %3469, %v1848_v11   ;;  %2073 = vperm.xlu0 %3468, %v1847_v12   ;;  %v1752_v12 = vld [vmem:[#allocation2 + $0x110] sm:$0xff] }
 0x301   : > { %2088 = vperm.xlu1 %3469, %v1850_v13   ;;  %2083 = vperm.xlu0 %3468, %v1849_v14   ;;  %v1751_v13 = vld [vmem:[#allocation2 + $0x180] sm:$0xff] }
 0x305   : > { %2098 = vperm.xlu1 %3469, %v1852_v15   ;;  %2093 = vperm.xlu0 %3468, %v1851_v16  }
 0x309   : > { %2108 = vperm.xlu1 %3469, %v1854_v17   ;;  %2103 = vperm.xlu0 %3468, %v1853_v18   ;;  %v2584_v17 = vld [vmem:[#allocation4 + $0x48] sm:$0xff] }
 0x30d   : > { %2118 = vperm.xlu1 %3469, %v1856_v19   ;;  %2113 = vperm.xlu0 %3468, %v1855_v20   ;;  %v2583_v19 = vld [vmem:[#allocation4 + $0x40] sm:$0xff] }
 0x311   : > { %2128 = vperm.xlu1 %3469, %v1858_v21   ;;  %2123 = vperm.xlu0 %3468, %v1857_v22  }
 0x315   : > { %2138 = vperm.xlu1 %3469, %v1860_v23   ;;  %2133 = vperm.xlu0 %3468, %v1859_v24   ;;  %v1754_v23 = vld [vmem:[#allocation2 + $0x98] sm:$0xff] }
 0x316   : > { %v1753_v24 = vld [vmem:[#allocation2 + $0x118] sm:$0xff] }
 0x319   : > { %2148 = vperm.xlu1 %3469, %v1862_v25   ;;  %2143 = vperm.xlu0 %3468, %v1861_v26  }
 0x31d   : > { %2158 = vperm.xlu1 %3469, %v1864_v27   ;;  %2153 = vperm.xlu0 %3468, %v1863_v28   ;;  %v2586_v28 = vld [vmem:[#allocation4 + $0x58] sm:$0xff] }
 0x321   : > { %2168 = vperm.xlu1 %3469, %v1866_v29   ;;  %2163 = vperm.xlu0 %3468, %v1865_v30   ;;  %v2585_v30 = vld [vmem:[#allocation4 + $0x50] sm:$0xff] }
 0x325   : > { %2178 = vperm.xlu1 %3469, %v1868_v31   ;;  %2173 = vperm.xlu0 %3468, %v1867_v32  }
 0x328   : > { %v1884_v38 = vpop.permute.xlu1 %1883  ;;  %v1874_v40 = vpop.permute.xlu0 %1873 }
 0x329   : > { %v2193_v41 = vmul.f32 %v1884_v38, %v1745_v33  ;;  %v2191_v42 = vmul.f32 %v1874_v40, %v1743_v34  ;;  %2188 = vperm.xlu1 %3469, %v1870_v35   ;;  %2183 = vperm.xlu0 %3468, %v1869_v36   ;;  %v1756_v34 = vld [vmem:[#allocation2 + $0x150] sm:$0xff]  ;;  %v1755_v35 = vld [vmem:[#allocation2 + $0x120] sm:$0xff] }
 0x32b   : > { %v2641_v45 = vadd.f32 %v2577_v37, %v2193_v41  ;;  %v2639_v46 = vadd.f32 %v2575_v39, %v2191_v42  ;;  %v2588_v39 = vld [vmem:[#allocation4 + $0x68] sm:$0xff] }
 0x32c   : > { %v1889_v48 = vpop.permute.xlu1 %1888  ;;  %v1879_v50 = vpop.permute.xlu0 %1878 }
 0x32d   : > { %2705 = vst [vmem:[%s3977_s16 + $0x10] sm:$0xff] %v2641_v45  ;;  %2703 = vst [vmem:[%s3977_s16] sm:$0xff] %v2639_v46  ;;  %v2194_v51 = vmul.f32 %v1889_v48, %v1746_v43  ;;  %v2192_v52 = vmul.f32 %v1879_v50, %v1744_v44  ;;  %v1758_v45 = vld [vmem:[#allocation2 + $0x60] sm:$0xff]  ;;  %v1757_v46 = vld [vmem:[#allocation2 + $0x108] sm:$0xff] }
 0x32e   : > { %v2590_v50 = vld [vmem:[#allocation4 + $0x78] sm:$0xff] }
 0x32f   : > { %v3145_v55 = vpack.c.bf16 %v2194_v51, %v2193_v41  ;;  %v2642_v56 = vadd.f32 %v2578_v47, %v2194_v51  ;;  %v3140_v57 = vpack.c.bf16 %v2192_v52, %v2191_v42  ;;  %v2640_v58 = vadd.f32 %v2576_v49, %v2192_v52  ;;  %v2587_v41 = vld [vmem:[#allocation4 + $0x60] sm:$0xff]  ;;  %v2589_v52 = vld [vmem:[#allocation4 + $0x70] sm:$0xff] }
 0x330   : > { %v1899_v60 = vpop.permute.xlu1 %1898  ;;  %v1894_v62 = vpop.permute.xlu0 %1893 }
 0x331   : > { %3297 = vst [vmem:[%s3975_s29 + $0x8] sm:$0xff] %v3145_v55   ;;  %2706 = vst [vmem:[%s3977_s16 + $0x18] sm:$0xff] %v2642_v56  ;;  %v2196_v63 = vmul.f32 %v1899_v60, %v1748_v53  ;;  %v2195_v0 = vmul.f32 %v1894_v62, %v1747_v54  ;;  %v1760_v56 = vld [vmem:[#allocation2 + $0x188] sm:$0xff] }
 0x332   : > { %3141 = vst [vmem:[%s3975_s29] sm:$0xff] %v3140_v57   ;;  %2704 = vst [vmem:[%s3977_s16 + $0x8] sm:$0xff] %v2640_v58  ;;  %v1759_v57 = vld [vmem:[#allocation2 + $0xe0] sm:$0xff] }
 0x333   : > { %v2644_v3 = vadd.f32 %v2580_v59, %v2196_v63  ;;  %v3150_v4 = vpack.c.bf16 %v2196_v63, %v2195_v0  ;;  %v2643_v5 = vadd.f32 %v2579_v61, %v2195_v0  ;;  %v2592_v61 = vld [vmem:[#allocation4 + $0x88] sm:$0xff]  ;;  %v2591_v63 = vld [vmem:[#allocation4 + $0x80] sm:$0xff] }
 0x334   : > { %v1909_v7 = vpop.permute.xlu1 %1908  ;;  %v1904_v9 = vpop.permute.xlu0 %1903 }
 0x335   : > { %2708 = vst [vmem:[%s3977_s16 + $0x28] sm:$0xff] %v2644_v3  ;;  %3298 = vst [vmem:[%s3975_s29 + $0x10] sm:$0xff] %v3150_v4   ;;  %v2198_v10 = vmul.f32 %v1909_v7, %v1750_v1  ;;  %v2197_v11 = vmul.f32 %v1904_v9, %v1749_v2  ;;  %v1762_v3 = vld [vmem:[#allocation2 + $0x140] sm:$0xff]  ;;  %v1761_v4 = vld [vmem:[#allocation2 + $0x138] sm:$0xff] }
 0x336   : > { %2707 = vst [vmem:[%s3977_s16 + $0x20] sm:$0xff] %v2643_v5 }
 0x337   : > { %v2646_v14 = vadd.f32 %v2582_v6, %v2198_v10  ;;  %v3155_v15 = vpack.c.bf16 %v2198_v10, %v2197_v11  ;;  %v2645_v16 = vadd.f32 %v2581_v8, %v2197_v11  ;;  %v2594_v8 = vld [vmem:[#allocation4 + $0x98] sm:$0xff]  ;;  %v2593_v10 = vld [vmem:[#allocation4 + $0x90] sm:$0xff] }
 0x338   : > { %v1919_v18 = vpop.permute.xlu1 %1918  ;;  %v1914_v20 = vpop.permute.xlu0 %1913 }
 0x339   : > { %2710 = vst [vmem:[%s3977_s16 + $0x38] sm:$0xff] %v2646_v14  ;;  %3299 = vst [vmem:[%s3975_s29 + $0x18] sm:$0xff] %v3155_v15   ;;  %v2200_v21 = vmul.f32 %v1919_v18, %v1752_v12  ;;  %v2199_v22 = vmul.f32 %v1914_v20, %v1751_v13  ;;  %v1764_v14 = vld [vmem:[#allocation2 + $0x1a8] sm:$0xff]  ;;  %v1763_v15 = vld [vmem:[#allocation2 + $0x80] sm:$0xff] }
 0x33a   : > { %2709 = vst [vmem:[%s3977_s16 + $0x30] sm:$0xff] %v2645_v16 }
 0x33b   : > { %v2648_v25 = vadd.f32 %v2584_v17, %v2200_v21  ;;  %v3160_v26 = vpack.c.bf16 %v2200_v21, %v2199_v22  ;;  %v2647_v27 = vadd.f32 %v2583_v19, %v2199_v22  ;;  %v2596_v19 = vld [vmem:[#allocation4 + $0xa8] sm:$0xff]  ;;  %v2595_v21 = vld [vmem:[#allocation4 + $0xa0] sm:$0xff] }
 0x33c   : > { %v1929_v29 = vpop.permute.xlu1 %1928  ;;  %v1924_v31 = vpop.permute.xlu0 %1923 }
 0x33d   : > { %2712 = vst [vmem:[%s3977_s16 + $0x48] sm:$0xff] %v2648_v25  ;;  %3300 = vst [vmem:[%s3975_s29 + $0x20] sm:$0xff] %v3160_v26   ;;  %v2202_v32 = vmul.f32 %v1929_v29, %v1754_v23  ;;  %v2201_v33 = vmul.f32 %v1924_v31, %v1753_v24  ;;  %v1766_v25 = vld [vmem:[#allocation2 + $0x28] sm:$0xff]  ;;  %v1765_v26 = vld [vmem:[#allocation2 + $0x1b8] sm:$0xff] }
 0x33e   : > { %2711 = vst [vmem:[%s3977_s16 + $0x40] sm:$0xff] %v2647_v27 }
 0x33f   : > { %v2650_v36 = vadd.f32 %v2586_v28, %v2202_v32  ;;  %v3165_v37 = vpack.c.bf16 %v2202_v32, %v2201_v33  ;;  %v2649_v38 = vadd.f32 %v2585_v30, %v2201_v33  ;;  %v2598_v30 = vld [vmem:[#allocation4 + $0xb8] sm:$0xff]  ;;  %v2597_v32 = vld [vmem:[#allocation4 + $0xb0] sm:$0xff] }
 0x340   : > { %v1939_v40 = vpop.permute.xlu1 %1938  ;;  %v1934_v42 = vpop.permute.xlu0 %1933 }
 0x341   : > { %2714 = vst [vmem:[%s3977_s16 + $0x58] sm:$0xff] %v2650_v36  ;;  %3301 = vst [vmem:[%s3975_s29 + $0x28] sm:$0xff] %v3165_v37   ;;  %v2204_v43 = vmul.f32 %v1939_v40, %v1756_v34  ;;  %v2203_v44 = vmul.f32 %v1934_v42, %v1755_v35  ;;  %v1768_v36 = vld [vmem:[#allocation2 + $0xf8] sm:$0xff]  ;;  %v1767_v37 = vld [vmem:[#allocation2 + $0x1e8] sm:$0xff] }
 0x342   : > { %2713 = vst [vmem:[%s3977_s16 + $0x50] sm:$0xff] %v2649_v38 }
 0x343   : > { %v2652_v47 = vadd.f32 %v2588_v39, %v2204_v43  ;;  %v3170_v48 = vpack.c.bf16 %v2204_v43, %v2203_v44  ;;  %v2651_v49 = vadd.f32 %v2587_v41, %v2203_v44  ;;  %v2600_v41 = vld [vmem:[#allocation4 + $0xc8] sm:$0xff]  ;;  %v2599_v43 = vld [vmem:[#allocation4 + $0xc0] sm:$0xff] }
 0x344   : > { %v1949_v51 = vpop.permute.xlu1 %1948  ;;  %v1944_v53 = vpop.permute.xlu0 %1943 }
 0x345   : > { %2716 = vst [vmem:[%s3977_s16 + $0x68] sm:$0xff] %v2652_v47  ;;  %3302 = vst [vmem:[%s3975_s29 + $0x30] sm:$0xff] %v3170_v48   ;;  %v2206_v54 = vmul.f32 %v1949_v51, %v1758_v45  ;;  %v2205_v55 = vmul.f32 %v1944_v53, %v1757_v46  ;;  %v1770_v47 = vld [vmem:[#allocation2 + $0x30] sm:$0xff]  ;;  %v1769_v48 = vld [vmem:[#allocation2 + $0x160] sm:$0xff] }
 0x346   : > { %2715 = vst [vmem:[%s3977_s16 + $0x60] sm:$0xff] %v2651_v49 }
 0x347   : > { %v2654_v58 = vadd.f32 %v2590_v50, %v2206_v54  ;;  %v3175_v59 = vpack.c.bf16 %v2206_v54, %v2205_v55  ;;  %v2653_v60 = vadd.f32 %v2589_v52, %v2205_v55  ;;  %v2602_v52 = vld [vmem:[#allocation4 + $0xd8] sm:$0xff]  ;;  %v2601_v54 = vld [vmem:[#allocation4 + $0xd0] sm:$0xff] }
 0x348   : > { %v1959_v62 = vpop.permute.xlu1 %1958  ;;  %v1954_v0 = vpop.permute.xlu0 %1953 }
 0x349   : > { %2718 = vst [vmem:[%s3977_s16 + $0x78] sm:$0xff] %v2654_v58  ;;  %3303 = vst [vmem:[%s3975_s29 + $0x38] sm:$0xff] %v3175_v59   ;;  %v2208_v1 = vmul.f32 %v1959_v62, %v1760_v56  ;;  %v2207_v2 = vmul.f32 %v1954_v0, %v1759_v57  ;;  %v1772_v58 = vld [vmem:[#allocation2] sm:$0xff] }
 0x34a   : > { %2717 = vst [vmem:[%s3977_s16 + $0x70] sm:$0xff] %v2653_v60  ;;  %v1771_v59 = vld [vmem:[#allocation2 + $0x1e0] sm:$0xff] }
 0x34b   : > { %v2656_v5 = vadd.f32 %v2592_v61, %v2208_v1  ;;  %v3180_v6 = vpack.c.bf16 %v2208_v1, %v2207_v2  ;;  %v2655_v7 = vadd.f32 %v2591_v63, %v2207_v2  ;;  %v2604_v63 = vld [vmem:[#allocation4 + $0xe8] sm:$0xff]  ;;  %v2603_v1 = vld [vmem:[#allocation4 + $0xe0] sm:$0xff] }
 0x34c   : > { %v1969_v9 = vpop.permute.xlu1 %1968  ;;  %v1964_v11 = vpop.permute.xlu0 %1963 }
 0x34d   : > { %2720 = vst [vmem:[%s3977_s16 + $0x88] sm:$0xff] %v2656_v5  ;;  %3304 = vst [vmem:[%s3975_s29 + $0x40] sm:$0xff] %v3180_v6   ;;  %v2210_v12 = vmul.f32 %v1969_v9, %v1762_v3  ;;  %v2209_v13 = vmul.f32 %v1964_v11, %v1761_v4  ;;  %v1774_v5 = vld [vmem:[#allocation2 + $0x8] sm:$0xff]  ;;  %v1773_v6 = vld [vmem:[#allocation2 + $0xf0] sm:$0xff] }
 0x34e   : > { %2719 = vst [vmem:[%s3977_s16 + $0x80] sm:$0xff] %v2655_v7 }
 0x34f   : > { %v2658_v16 = vadd.f32 %v2594_v8, %v2210_v12  ;;  %v3185_v17 = vpack.c.bf16 %v2210_v12, %v2209_v13  ;;  %v2657_v18 = vadd.f32 %v2593_v10, %v2209_v13  ;;  %v2606_v10 = vld [vmem:[#allocation4 + $0xf8] sm:$0xff]  ;;  %v2605_v12 = vld [vmem:[#allocation4 + $0xf0] sm:$0xff] }
 0x350   : > { %v1979_v20 = vpop.permute.xlu1 %1978  ;;  %v1974_v22 = vpop.permute.xlu0 %1973 }
 0x351   : > { %2722 = vst [vmem:[%s3977_s16 + $0x98] sm:$0xff] %v2658_v16  ;;  %3305 = vst [vmem:[%s3975_s29 + $0x48] sm:$0xff] %v3185_v17   ;;  %v2212_v23 = vmul.f32 %v1979_v20, %v1764_v14  ;;  %v2211_v24 = vmul.f32 %v1974_v22, %v1763_v15  ;;  %v1776_v16 = vld [vmem:[#allocation2 + $0x1d0] sm:$0xff]  ;;  %v1775_v17 = vld [vmem:[#allocation2 + $0x148] sm:$0xff] }
 0x352   : > { %2721 = vst [vmem:[%s3977_s16 + $0x90] sm:$0xff] %v2657_v18 }
 0x353   : > { %v2660_v27 = vadd.f32 %v2596_v19, %v2212_v23  ;;  %v3190_v28 = vpack.c.bf16 %v2212_v23, %v2211_v24  ;;  %v2659_v29 = vadd.f32 %v2595_v21, %v2211_v24  ;;  %v2608_v21 = vld [vmem:[#allocation4 + $0x108] sm:$0xff]  ;;  %v2607_v23 = vld [vmem:[#allocation4 + $0x100] sm:$0xff] }
 0x354   : > { %v1989_v31 = vpop.permute.xlu1 %1988  ;;  %v1984_v33 = vpop.permute.xlu0 %1983 }
 0x355   : > { %2724 = vst [vmem:[%s3977_s16 + $0xa8] sm:$0xff] %v2660_v27  ;;  %3306 = vst [vmem:[%s3975_s29 + $0x50] sm:$0xff] %v3190_v28   ;;  %v2214_v34 = vmul.f32 %v1989_v31, %v1766_v25  ;;  %v2213_v35 = vmul.f32 %v1984_v33, %v1765_v26  ;;  %v1778_v27 = vld [vmem:[#allocation2 + $0xc8] sm:$0xff]  ;;  %v1777_v28 = vld [vmem:[#allocation2 + $0x100] sm:$0xff] }
 0x356   : > { %2723 = vst [vmem:[%s3977_s16 + $0xa0] sm:$0xff] %v2659_v29 }
 0x357   : > { %v2662_v38 = vadd.f32 %v2598_v30, %v2214_v34  ;;  %v3195_v39 = vpack.c.bf16 %v2214_v34, %v2213_v35  ;;  %v2661_v40 = vadd.f32 %v2597_v32, %v2213_v35  ;;  %v2610_v32 = vld [vmem:[#allocation4 + $0x118] sm:$0xff]  ;;  %v2609_v34 = vld [vmem:[#allocation4 + $0x110] sm:$0xff] }
 0x358   : > { %v1999_v42 = vpop.permute.xlu1 %1998  ;;  %v1994_v44 = vpop.permute.xlu0 %1993 }
 0x359   : > { %2726 = vst [vmem:[%s3977_s16 + $0xb8] sm:$0xff] %v2662_v38  ;;  %3307 = vst [vmem:[%s3975_s29 + $0x58] sm:$0xff] %v3195_v39   ;;  %v2216_v45 = vmul.f32 %v1999_v42, %v1768_v36  ;;  %v2215_v46 = vmul.f32 %v1994_v44, %v1767_v37  ;;  %v1780_v38 = vld [vmem:[#allocation2 + $0x1f8] sm:$0xff]  ;;  %v1779_v39 = vld [vmem:[#allocation2 + $0x40] sm:$0xff] }
 0x35a   : > { %2725 = vst [vmem:[%s3977_s16 + $0xb0] sm:$0xff] %v2661_v40 }
 0x35b   : > { %v2664_v49 = vadd.f32 %v2600_v41, %v2216_v45  ;;  %v3200_v50 = vpack.c.bf16 %v2216_v45, %v2215_v46  ;;  %v2663_v51 = vadd.f32 %v2599_v43, %v2215_v46  ;;  %v2612_v43 = vld [vmem:[#allocation4 + $0x128] sm:$0xff]  ;;  %v2611_v45 = vld [vmem:[#allocation4 + $0x120] sm:$0xff] }
 0x35c   : > { %v2009_v53 = vpop.permute.xlu1 %2008  ;;  %v2004_v55 = vpop.permute.xlu0 %2003 }
 0x35d   : > { %2728 = vst [vmem:[%s3977_s16 + $0xc8] sm:$0xff] %v2664_v49  ;;  %3308 = vst [vmem:[%s3975_s29 + $0x60] sm:$0xff] %v3200_v50   ;;  %v2218_v56 = vmul.f32 %v2009_v53, %v1770_v47  ;;  %v2217_v57 = vmul.f32 %v2004_v55, %v1769_v48  ;;  %v1782_v49 = vld [vmem:[#allocation2 + $0x128] sm:$0xff]  ;;  %v1781_v50 = vld [vmem:[#allocation2 + $0x20] sm:$0xff] }
 0x35e   : > { %2727 = vst [vmem:[%s3977_s16 + $0xc0] sm:$0xff] %v2663_v51 }
 0x35f   : > { %v2666_v60 = vadd.f32 %v2602_v52, %v2218_v56  ;;  %v3205_v61 = vpack.c.bf16 %v2218_v56, %v2217_v57  ;;  %v2665_v62 = vadd.f32 %v2601_v54, %v2217_v57  ;;  %v2614_v54 = vld [vmem:[#allocation4 + $0x138] sm:$0xff]  ;;  %v2613_v56 = vld [vmem:[#allocation4 + $0x130] sm:$0xff] }
 0x360   : > { %v2019_v0 = vpop.permute.xlu1 %2018  ;;  %v2014_v2 = vpop.permute.xlu0 %2013 }
 0x361   : > { %2730 = vst [vmem:[%s3977_s16 + $0xd8] sm:$0xff] %v2666_v60  ;;  %3309 = vst [vmem:[%s3975_s29 + $0x68] sm:$0xff] %v3205_v61   ;;  %v2220_v3 = vmul.f32 %v2019_v0, %v1772_v58  ;;  %v2219_v4 = vmul.f32 %v2014_v2, %v1771_v59  ;;  %v1784_v60 = vld [vmem:[#allocation2 + $0x1f0] sm:$0xff]  ;;  %v1783_v61 = vld [vmem:[#allocation2 + $0x1a0] sm:$0xff] }
 0x362   : > { %2729 = vst [vmem:[%s3977_s16 + $0xd0] sm:$0xff] %v2665_v62 }
 0x363   : > { %v2668_v7 = vadd.f32 %v2604_v63, %v2220_v3  ;;  %v3210_v8 = vpack.c.bf16 %v2220_v3, %v2219_v4  ;;  %v2667_v9 = vadd.f32 %v2603_v1, %v2219_v4  ;;  %v2616_v1 = vld [vmem:[#allocation4 + $0x148] sm:$0xff]  ;;  %v2615_v3 = vld [vmem:[#allocation4 + $0x140] sm:$0xff] }
 0x364   : > { %v2029_v11 = vpop.permute.xlu1 %2028  ;;  %v2024_v13 = vpop.permute.xlu0 %2023 }
 0x365   : > { %2732 = vst [vmem:[%s3977_s16 + $0xe8] sm:$0xff] %v2668_v7  ;;  %3310 = vst [vmem:[%s3975_s29 + $0x70] sm:$0xff] %v3210_v8   ;;  %v2222_v14 = vmul.f32 %v2029_v11, %v1774_v5  ;;  %v2221_v15 = vmul.f32 %v2024_v13, %v1773_v6  ;;  %v1786_v7 = vld [vmem:[#allocation2 + $0x78] sm:$0xff]  ;;  %v1785_v8 = vld [vmem:[#allocation2 + $0xe8] sm:$0xff] }
 0x366   : > { %2731 = vst [vmem:[%s3977_s16 + $0xe0] sm:$0xff] %v2667_v9 }
 0x367   : > { %v2670_v18 = vadd.f32 %v2606_v10, %v2222_v14  ;;  %v3215_v19 = vpack.c.bf16 %v2222_v14, %v2221_v15  ;;  %v2669_v20 = vadd.f32 %v2605_v12, %v2221_v15  ;;  %v2618_v12 = vld [vmem:[#allocation4 + $0x158] sm:$0xff]  ;;  %v2617_v14 = vld [vmem:[#allocation4 + $0x150] sm:$0xff] }
 0x368   : > { %v2039_v22 = vpop.permute.xlu1 %2038  ;;  %v2034_v24 = vpop.permute.xlu0 %2033 }
 0x369   : > { %2734 = vst [vmem:[%s3977_s16 + $0xf8] sm:$0xff] %v2670_v18  ;;  %3311 = vst [vmem:[%s3975_s29 + $0x78] sm:$0xff] %v3215_v19   ;;  %v2224_v25 = vmul.f32 %v2039_v22, %v1776_v16  ;;  %v2223_v26 = vmul.f32 %v2034_v24, %v1775_v17  ;;  %v1788_v18 = vld [vmem:[#allocation2 + $0x90] sm:$0xff] }
 0x36a   : > { %2733 = vst [vmem:[%s3977_s16 + $0xf0] sm:$0xff] %v2669_v20  ;;  %v1787_v19 = vld [vmem:[#allocation2 + $0x70] sm:$0xff] }
 0x36b   : > { %v2672_v29 = vadd.f32 %v2608_v21, %v2224_v25  ;;  %v3220_v30 = vpack.c.bf16 %v2224_v25, %v2223_v26  ;;  %v2671_v31 = vadd.f32 %v2607_v23, %v2223_v26  ;;  %v2620_v23 = vld [vmem:[#allocation4 + $0x168] sm:$0xff]  ;;  %v2619_v25 = vld [vmem:[#allocation4 + $0x160] sm:$0xff] }
 0x36c   : > { %v2049_v33 = vpop.permute.xlu1 %2048  ;;  %v2044_v35 = vpop.permute.xlu0 %2043 }
 0x36d   : > { %2736 = vst [vmem:[%s3977_s16 + $0x108] sm:$0xff] %v2672_v29  ;;  %3312 = vst [vmem:[%s3975_s29 + $0x80] sm:$0xff] %v3220_v30   ;;  %v2226_v36 = vmul.f32 %v2049_v33, %v1778_v27  ;;  %v2225_v37 = vmul.f32 %v2044_v35, %v1777_v28  ;;  %v1790_v29 = vld [vmem:[#allocation2 + $0xd0] sm:$0xff]  ;;  %v1789_v30 = vld [vmem:[#allocation2 + $0x1d8] sm:$0xff] }
 0x36e   : > { %2735 = vst [vmem:[%s3977_s16 + $0x100] sm:$0xff] %v2671_v31 }
 0x36f   : > { %v2674_v40 = vadd.f32 %v2610_v32, %v2226_v36  ;;  %v3225_v41 = vpack.c.bf16 %v2226_v36, %v2225_v37  ;;  %v2673_v42 = vadd.f32 %v2609_v34, %v2225_v37  ;;  %v2622_v34 = vld [vmem:[#allocation4 + $0x178] sm:$0xff]  ;;  %v2621_v36 = vld [vmem:[#allocation4 + $0x170] sm:$0xff] }
 0x370   : > { %v2059_v44 = vpop.permute.xlu1 %2058  ;;  %v2054_v46 = vpop.permute.xlu0 %2053 }
 0x371   : > { %2738 = vst [vmem:[%s3977_s16 + $0x118] sm:$0xff] %v2674_v40  ;;  %3313 = vst [vmem:[%s3975_s29 + $0x88] sm:$0xff] %v3225_v41   ;;  %v2228_v47 = vmul.f32 %v2059_v44, %v1780_v38  ;;  %v2227_v48 = vmul.f32 %v2054_v46, %v1779_v39  ;;  %v1792_v40 = vld [vmem:[#allocation2 + $0x88] sm:$0xff]  ;;  %v1791_v41 = vld [vmem:[#allocation2 + $0xb8] sm:$0xff] }
 0x372   : > { %2737 = vst [vmem:[%s3977_s16 + $0x110] sm:$0xff] %v2673_v42 }
 0x373   : > { %v2676_v51 = vadd.f32 %v2612_v43, %v2228_v47  ;;  %v3230_v52 = vpack.c.bf16 %v2228_v47, %v2227_v48  ;;  %v2675_v53 = vadd.f32 %v2611_v45, %v2227_v48  ;;  %v2624_v45 = vld [vmem:[#allocation4 + $0x188] sm:$0xff]  ;;  %v2623_v47 = vld [vmem:[#allocation4 + $0x180] sm:$0xff] }
 0x374   : > { %v2069_v55 = vpop.permute.xlu1 %2068  ;;  %v2064_v57 = vpop.permute.xlu0 %2063 }
 0x375   : > { %2740 = vst [vmem:[%s3977_s16 + $0x128] sm:$0xff] %v2676_v51  ;;  %3314 = vst [vmem:[%s3975_s29 + $0x90] sm:$0xff] %v3230_v52   ;;  %v2230_v58 = vmul.f32 %v2069_v55, %v1782_v49  ;;  %v2229_v59 = vmul.f32 %v2064_v57, %v1781_v50  ;;  %v1794_v51 = vld [vmem:[#allocation2 + $0x1c8] sm:$0xff] }
 0x376   : > { %2739 = vst [vmem:[%s3977_s16 + $0x120] sm:$0xff] %v2675_v53  ;;  %v1793_v52 = vld [vmem:[#allocation2 + $0xa8] sm:$0xff] }
 0x377   : > { %v2678_v62 = vadd.f32 %v2614_v54, %v2230_v58  ;;  %v3235_v63 = vpack.c.bf16 %v2230_v58, %v2229_v59  ;;  %v2677_v0 = vadd.f32 %v2613_v56, %v2229_v59  ;;  %v2626_v56 = vld [vmem:[#allocation4 + $0x198] sm:$0xff]  ;;  %v2625_v58 = vld [vmem:[#allocation4 + $0x190] sm:$0xff] }
 0x378   : > { %v2079_v2 = vpop.permute.xlu1 %2078  ;;  %v2074_v4 = vpop.permute.xlu0 %2073 }
 0x379   : > { %2742 = vst [vmem:[%s3977_s16 + $0x138] sm:$0xff] %v2678_v62  ;;  %3315 = vst [vmem:[%s3975_s29 + $0x98] sm:$0xff] %v3235_v63   ;;  %v2232_v5 = vmul.f32 %v2079_v2, %v1784_v60  ;;  %v2231_v6 = vmul.f32 %v2074_v4, %v1783_v61  ;;  %v1796_v62 = vld [vmem:[#allocation2 + $0x178] sm:$0xff]  ;;  %v1795_v63 = vld [vmem:[#allocation2 + $0x170] sm:$0xff] }
 0x37a   : > { %2741 = vst [vmem:[%s3977_s16 + $0x130] sm:$0xff] %v2677_v0 }
 0x37b   : > { %v2680_v9 = vadd.f32 %v2616_v1, %v2232_v5  ;;  %v3240_v10 = vpack.c.bf16 %v2232_v5, %v2231_v6  ;;  %v2679_v11 = vadd.f32 %v2615_v3, %v2231_v6  ;;  %v2628_v3 = vld [vmem:[#allocation4 + $0x1a8] sm:$0xff]  ;;  %v2627_v5 = vld [vmem:[#allocation4 + $0x1a0] sm:$0xff] }
 0x37c   : > { %v2089_v13 = vpop.permute.xlu1 %2088  ;;  %v2084_v15 = vpop.permute.xlu0 %2083 }
 0x37d   : > { %2744 = vst [vmem:[%s3977_s16 + $0x148] sm:$0xff] %v2680_v9  ;;  %3316 = vst [vmem:[%s3975_s29 + $0xa0] sm:$0xff] %v3240_v10   ;;  %v2234_v16 = vmul.f32 %v2089_v13, %v1786_v7  ;;  %v2233_v17 = vmul.f32 %v2084_v15, %v1785_v8  ;;  %v1798_v9 = vld [vmem:[#allocation2 + $0x190] sm:$0xff]  ;;  %v1797_v10 = vld [vmem:[#allocation2 + $0x68] sm:$0xff] }
 0x37e   : > { %2743 = vst [vmem:[%s3977_s16 + $0x140] sm:$0xff] %v2679_v11 }
 0x37f   : > { %v2682_v20 = vadd.f32 %v2618_v12, %v2234_v16  ;;  %v3245_v21 = vpack.c.bf16 %v2234_v16, %v2233_v17  ;;  %v2681_v22 = vadd.f32 %v2617_v14, %v2233_v17  ;;  %v2630_v14 = vld [vmem:[#allocation4 + $0x1b8] sm:$0xff]  ;;  %v2629_v16 = vld [vmem:[#allocation4 + $0x1b0] sm:$0xff] }
 0x380   : > { %v2099_v24 = vpop.permute.xlu1 %2098  ;;  %v2094_v26 = vpop.permute.xlu0 %2093 }
 0x381   : > { %2746 = vst [vmem:[%s3977_s16 + $0x158] sm:$0xff] %v2682_v20  ;;  %3317 = vst [vmem:[%s3975_s29 + $0xa8] sm:$0xff] %v3245_v21   ;;  %v2236_v27 = vmul.f32 %v2099_v24, %v1788_v18  ;;  %v2235_v28 = vmul.f32 %v2094_v26, %v1787_v19  ;;  %v1800_v20 = vld [vmem:[#allocation2 + $0x38] sm:$0xff] }
 0x382   : > { %2745 = vst [vmem:[%s3977_s16 + $0x150] sm:$0xff] %v2681_v22  ;;  %v1799_v21 = vld [vmem:[#allocation2 + $0x198] sm:$0xff] }
 0x383   : > { %v2684_v31 = vadd.f32 %v2620_v23, %v2236_v27  ;;  %v3250_v32 = vpack.c.bf16 %v2236_v27, %v2235_v28  ;;  %v2683_v33 = vadd.f32 %v2619_v25, %v2235_v28  ;;  %v2632_v25 = vld [vmem:[#allocation4 + $0x1c8] sm:$0xff]  ;;  %v2631_v27 = vld [vmem:[#allocation4 + $0x1c0] sm:$0xff] }
 0x384   : > { %v2109_v35 = vpop.permute.xlu1 %2108  ;;  %v2104_v37 = vpop.permute.xlu0 %2103 }
 0x385   : > { %2748 = vst [vmem:[%s3977_s16 + $0x168] sm:$0xff] %v2684_v31  ;;  %3318 = vst [vmem:[%s3975_s29 + $0xb0] sm:$0xff] %v3250_v32   ;;  %v2238_v38 = vmul.f32 %v2109_v35, %v1790_v29  ;;  %v2237_v39 = vmul.f32 %v2104_v37, %v1789_v30  ;;  %v1802_v31 = vld [vmem:[#allocation2 + $0x1c0] sm:$0xff] }
 0x386   : > { %2747 = vst [vmem:[%s3977_s16 + $0x160] sm:$0xff] %v2683_v33  ;;  %v1801_v32 = vld [vmem:[#allocation2 + $0xc0] sm:$0xff] }
 0x387   : > { %v2686_v42 = vadd.f32 %v2622_v34, %v2238_v38  ;;  %v3255_v43 = vpack.c.bf16 %v2238_v38, %v2237_v39  ;;  %v2685_v44 = vadd.f32 %v2621_v36, %v2237_v39  ;;  %v2634_v36 = vld [vmem:[#allocation4 + $0x1d8] sm:$0xff]  ;;  %v2633_v38 = vld [vmem:[#allocation4 + $0x1d0] sm:$0xff] }
 0x388   : > { %v2119_v46 = vpop.permute.xlu1 %2118  ;;  %v2114_v48 = vpop.permute.xlu0 %2113 }
 0x389   : > { %2750 = vst [vmem:[%s3977_s16 + $0x178] sm:$0xff] %v2686_v42  ;;  %3319 = vst [vmem:[%s3975_s29 + $0xb8] sm:$0xff] %v3255_v43   ;;  %v2240_v49 = vmul.f32 %v2119_v46, %v1792_v40  ;;  %v2239_v50 = vmul.f32 %v2114_v48, %v1791_v41  ;;  %v1804_v42 = vld [vmem:[#allocation2 + $0x10] sm:$0xff]  ;;  %v1803_v43 = vld [vmem:[#allocation2 + $0x158] sm:$0xff] }
 0x38a   : > { %2749 = vst [vmem:[%s3977_s16 + $0x170] sm:$0xff] %v2685_v44 }
 0x38b   : > { %v2688_v53 = vadd.f32 %v2624_v45, %v2240_v49  ;;  %v3260_v54 = vpack.c.bf16 %v2240_v49, %v2239_v50  ;;  %v2687_v55 = vadd.f32 %v2623_v47, %v2239_v50  ;;  %v2636_v47 = vld [vmem:[#allocation4 + $0x1e8] sm:$0xff]  ;;  %v2635_v49 = vld [vmem:[#allocation4 + $0x1e0] sm:$0xff] }
 0x38c   : > { %v2129_v57 = vpop.permute.xlu1 %2128  ;;  %v2124_v59 = vpop.permute.xlu0 %2123 }
 0x38d   : > { %2752 = vst [vmem:[%s3977_s16 + $0x188] sm:$0xff] %v2688_v53  ;;  %3320 = vst [vmem:[%s3975_s29 + $0xc0] sm:$0xff] %v3260_v54   ;;  %v2242_v60 = vmul.f32 %v2129_v57, %v1794_v51  ;;  %v2241_v61 = vmul.f32 %v2124_v59, %v1793_v52  ;;  %v1806_v53 = vld [vmem:[#allocation2 + $0xa0] sm:$0xff]  ;;  %v1805_v54 = vld [vmem:[#allocation2 + $0x58] sm:$0xff] }
 0x38e   : > { %2751 = vst [vmem:[%s3977_s16 + $0x180] sm:$0xff] %v2687_v55 }
 0x38f   : > { %v2690_v0 = vadd.f32 %v2626_v56, %v2242_v60  ;;  %v3265_v1 = vpack.c.bf16 %v2242_v60, %v2241_v61  ;;  %v2689_v2 = vadd.f32 %v2625_v58, %v2241_v61  ;;  %v2638_v58 = vld [vmem:[#allocation4 + $0x1f8] sm:$0xff]  ;;  %v2637_v60 = vld [vmem:[#allocation4 + $0x1f0] sm:$0xff] }
 0x390   : > { %v2139_v4 = vpop.permute.xlu1 %2138  ;;  %v2134_v6 = vpop.permute.xlu0 %2133 }
 0x391   : > { %2754 = vst [vmem:[%s3977_s16 + $0x198] sm:$0xff] %v2690_v0  ;;  %3321 = vst [vmem:[%s3975_s29 + $0xc8] sm:$0xff] %v3265_v1   ;;  %v2244_v7 = vmul.f32 %v2139_v4, %v1796_v62  ;;  %v2243_v8 = vmul.f32 %v2134_v6, %v1795_v63 }
 0x392   : > { %2753 = vst [vmem:[%s3977_s16 + $0x190] sm:$0xff] %v2689_v2 }
 0x393   : > { %v2692_v11 = vadd.f32 %v2628_v3, %v2244_v7  ;;  %v3270_v12 = vpack.c.bf16 %v2244_v7, %v2243_v8  ;;  %v2691_v13 = vadd.f32 %v2627_v5, %v2243_v8 }
 0x394   : > { %v2149_v15 = vpop.permute.xlu1 %2148  ;;  %v2144_v17 = vpop.permute.xlu0 %2143 }
 0x395   : > { %2756 = vst [vmem:[%s3977_s16 + $0x1a8] sm:$0xff] %v2692_v11  ;;  %3322 = vst [vmem:[%s3975_s29 + $0xd0] sm:$0xff] %v3270_v12   ;;  %v2246_v18 = vmul.f32 %v2149_v15, %v1798_v9  ;;  %v2245_v19 = vmul.f32 %v2144_v17, %v1797_v10 }
 0x396   : > { %2755 = vst [vmem:[%s3977_s16 + $0x1a0] sm:$0xff] %v2691_v13 }
 0x397   : > { %v2694_v22 = vadd.f32 %v2630_v14, %v2246_v18  ;;  %v3275_v23 = vpack.c.bf16 %v2246_v18, %v2245_v19  ;;  %v2693_v24 = vadd.f32 %v2629_v16, %v2245_v19 }
 0x398   : > { %v2159_v26 = vpop.permute.xlu1 %2158  ;;  %v2154_v28 = vpop.permute.xlu0 %2153 }
 0x399   : > { %2758 = vst [vmem:[%s3977_s16 + $0x1b8] sm:$0xff] %v2694_v22  ;;  %3323 = vst [vmem:[%s3975_s29 + $0xd8] sm:$0xff] %v3275_v23   ;;  %v2248_v29 = vmul.f32 %v2159_v26, %v1800_v20  ;;  %v2247_v30 = vmul.f32 %v2154_v28, %v1799_v21 }
 0x39a   : > { %2757 = vst [vmem:[%s3977_s16 + $0x1b0] sm:$0xff] %v2693_v24 }
 0x39b   : > { %v2696_v33 = vadd.f32 %v2632_v25, %v2248_v29  ;;  %v3280_v34 = vpack.c.bf16 %v2248_v29, %v2247_v30  ;;  %v2695_v35 = vadd.f32 %v2631_v27, %v2247_v30 }
 0x39c   : > { %v2169_v37 = vpop.permute.xlu1 %2168  ;;  %v2164_v39 = vpop.permute.xlu0 %2163 }
 0x39d   : > { %2760 = vst [vmem:[%s3977_s16 + $0x1c8] sm:$0xff] %v2696_v33  ;;  %3324 = vst [vmem:[%s3975_s29 + $0xe0] sm:$0xff] %v3280_v34   ;;  %v2250_v40 = vmul.f32 %v2169_v37, %v1802_v31  ;;  %v2249_v41 = vmul.f32 %v2164_v39, %v1801_v32 }
 0x39e   : > { %2759 = vst [vmem:[%s3977_s16 + $0x1c0] sm:$0xff] %v2695_v35 }
 0x39f   : > { %v2698_v44 = vadd.f32 %v2634_v36, %v2250_v40  ;;  %v3285_v45 = vpack.c.bf16 %v2250_v40, %v2249_v41  ;;  %v2697_v46 = vadd.f32 %v2633_v38, %v2249_v41 }
 0x3a0   : > { %v2179_v48 = vpop.permute.xlu1 %2178  ;;  %v2174_v50 = vpop.permute.xlu0 %2173 }
 0x3a1   : > { %2762 = vst [vmem:[%s3977_s16 + $0x1d8] sm:$0xff] %v2698_v44  ;;  %3325 = vst [vmem:[%s3975_s29 + $0xe8] sm:$0xff] %v3285_v45   ;;  %v2252_v51 = vmul.f32 %v2179_v48, %v1804_v42  ;;  %v2251_v52 = vmul.f32 %v2174_v50, %v1803_v43 }
 0x3a2   : > { %2761 = vst [vmem:[%s3977_s16 + $0x1d0] sm:$0xff] %v2697_v46 }
 0x3a3   : > { %v2700_v55 = vadd.f32 %v2636_v47, %v2252_v51  ;;  %v3290_v56 = vpack.c.bf16 %v2252_v51, %v2251_v52  ;;  %v2699_v57 = vadd.f32 %v2635_v49, %v2251_v52 }
 0x3a4   : > { %v2189_v59 = vpop.permute.xlu1 %2188  ;;  %v2184_v61 = vpop.permute.xlu0 %2183 }
 0x3a5   : > { %2764 = vst [vmem:[%s3977_s16 + $0x1e8] sm:$0xff] %v2700_v55  ;;  %3326 = vst [vmem:[%s3975_s29 + $0xf0] sm:$0xff] %v3290_v56   ;;  %v2254_v62 = vmul.f32 %v2189_v59, %v1806_v53  ;;  %v2253_v63 = vmul.f32 %v2184_v61, %v1805_v54 }
 0x3a6   : > { %2763 = vst [vmem:[%s3977_s16 + $0x1e0] sm:$0xff] %v2699_v57 }
 0x3a7   : > { %v2702_v0 = vadd.f32 %v2638_v58, %v2254_v62  ;;  %v3295_v1 = vpack.c.bf16 %v2254_v62, %v2253_v63  ;;  %v2701_v2 = vadd.f32 %v2637_v60, %v2253_v63 }
 0x3a9   : > { %2766 = vst [vmem:[%s3977_s16 + $0x1f8] sm:$0xff] %v2702_v0  ;;  %3327 = vst [vmem:[%s3975_s29 + $0xf8] sm:$0xff] %v3295_v1  }
 0x3aa   : > { %2765 = vst [vmem:[%s3977_s16 + $0x1f0] sm:$0xff] %v2701_v2 }
 0x3ab PF: > { %s3135_s23 = sshll.u32 %s3628_s24, 12  ;;  %s2786_s15 = sshll.u32 %s3975_s29, 4  ;;  %s4354_s15 = int_to_ptr.vmem [resolvable:$true] %s2786_s15 }
 0x3ac   : > { %s4351_s9 = scalar_lea.hbm %s4450_s4, %s3135_s23  ;;  %s2768_s21 = scalar_lea.sflag [#allocation6], %s3965_s7 }
 0x3ad   : > { %s3498_s20 = scalar_lea.vmem %s4354_s15, 4096  ;;  %p4478_p8 = scmp.ne.s32.totalorder %s4466_s13, 0 }
 0x3ae   : > { %p3499_p5 = scmp.ne.s32.totalorder %s4354_s15, %s3498_s20  ;;  %s3648_s30 = smov [#allocation7]  }
 0x3af   : > { %s3502_s14 = sshll.u32 %s3648_s30, 4  ;;  %s3503_s14 = int_to_ptr.vmem [resolvable:$false] %s3502_s14 }
 0x3b0   : > { %p3500_p13 = pnand %p3499_p5, %p4478_p8  ;;  %s3504_s10 = scalar_lea.vmem %s3503_s14, 8192 }
 0x3b1   : > { %p3505_p6 = scmp.lt.s32.totalorder %s4354_s15, %s3503_s14  ;;  %p3506_p7 = scmp.lt.s32.totalorder %s3504_s10, %s3498_s20 }
 0x3b2   : > { %p3501_p1 = pneg %p3500_p13 }
 0x3b3   : > { %p3507_p9 = por %p3506_p7, %p3505_p6 }
 0x3b5   : > { %p3508_p12 = pnand %p3507_p9, %p3501_p1 }
 0x3b7   : > { %3511 = shalt.err (!%p3508_p12)
}
 0x3b8   : > { %s3512_s29 = scalar_lea.hbm %s4351_s9, 4096  ;;  %s3516_s8 = scalar_lea.hbm %s4450_s4, 8192 }
 0x3b9   : > { %p3513_p10 = scmp.ne.s32.totalorder %s4351_s9, %s3512_s29  ;;  %p3517_p0 = scmp.lt.s32.totalorder %s4351_s9, %s4450_s4 }
 0x3ba   : > { %p3518_p2 = scmp.lt.s32.totalorder %s3516_s8, %s3512_s29 }
 0x3bb   : > { %p3514_p3 = pnand %p3513_p10, %p4478_p8 }
 0x3bc   : > { %p3519_p4 = por %p3518_p2, %p3517_p0 }
 0x3bd   : > { %p3515_p11 = pneg %p3514_p3 }
 0x3bf   : > { %p3520_p5 = pnand %p3519_p4, %p3515_p11 }
 0x3c1   : > { %3523 = shalt.err (!%p3520_p5)
}
 0x3c2   : > { %s3649_s23 = smov 64   ;;  %s3650_s28 = smov 4  }
 0x3c3   : > { %3330 = dma.vmem_to_hbm [thread:$0]  (%p4478_p8), %s4354_s15, 4096, %s4351_s9, %s2768_s21, %s3649_s23, %s3649_s23, %s3650_s28  }
 0x3c4   : > { %s4479_s12 = sshll.u32 %s3628_s24, 13  ;;  %s2802_s10 = sshll.u32 %s3977_s16, 4  ;;  %s4387_s10 = int_to_ptr.vmem [resolvable:$true] %s2802_s10 }
 0x3c5   : > { %s4384_s14 = scalar_lea.hbm %s4451_s5, %s4479_s12  ;;  %s2773_s29 = scalar_lea.sflag [#allocation9], %s3965_s7 }
 0x3c6   : > { %s3524_s11 = scalar_lea.vmem %s4387_s10, 8192  ;;  %s3651_s6 = smov [#allocation8]  }
 0x3c7   : > { %p3525_p13 = scmp.ne.s32.totalorder %s4387_s10, %s3524_s11  ;;  %s3528_s9 = sshll.u32 %s3651_s6, 4  ;;  %s3529_s9 = int_to_ptr.vmem [resolvable:$false] %s3528_s9 }
 0x3c8   : > { %s3530_s24 = scalar_lea.vmem %s3529_s9, 16384  ;;  %p3531_p7 = scmp.lt.s32.totalorder %s4387_s10, %s3529_s9 }
 0x3c9   : > { %p3526_p1 = pnand %p3525_p13, %p4478_p8  ;;  %p3532_p9 = scmp.lt.s32.totalorder %s3530_s24, %s3524_s11 }
 0x3cb   : > { %p3527_p6 = pneg %p3526_p1  ;;  %p3533_p12 = por %p3532_p9, %p3531_p7 }
 0x3cd   : > { %p3534_p10 = pnand %p3533_p12, %p3527_p6 }
 0x3cf   : > { %3537 = shalt.err (!%p3534_p10)
}
 0x3d0   : > { %s3538_s16 = scalar_lea.hbm %s4384_s14, 8192  ;;  %s3542_s8 = scalar_lea.hbm %s4451_s5, 16384 }
 0x3d1   : > { %p3539_p3 = scmp.ne.s32.totalorder %s4384_s14, %s3538_s16  ;;  %p3543_p2 = scmp.lt.s32.totalorder %s4384_s14, %s4451_s5 }
 0x3d2   : > { %p3544_p4 = scmp.lt.s32.totalorder %s3542_s8, %s3538_s16 }
 0x3d3   : > { %p3540_p11 = pnand %p3539_p3, %p4478_p8 }
 0x3d4   : > { %p3545_p5 = por %p3544_p4, %p3543_p2 }
 0x3d5   : > { %p3541_p0 = pneg %p3540_p11 }
 0x3d7   : > { %p3546_p13 = pnand %p3545_p5, %p3541_p0 }
 0x3d9   : > { %3549 = shalt.err (!%p3546_p13)
}
 0x3da   : > { %s3652_s23 = smov 128   ;;  %s3653_s28 = smov 8  }
 0x3db   : > { %3331 = dma.vmem_to_hbm [thread:$0]  (%p4478_p8), %s4387_s10, 8192, %s4384_s14, %s2773_s29, %s3652_s23, %s3652_s23, %s3653_s28  }
 0x3dc PF: > { %s4480_s12 = sld [smem:[#allocation18_spill]]  ;;  %p3345_p1 = scmp.ge.s32.totalorder %s3640_s27, 2 }
 0x3dd   : > { %s2817_s20 = sand.u32 1, %s3604_s18  }
 0x3de   : > { %s2818_s30 = scalar_lea.sflag [#allocation6], %s2817_s20 }
 0x3e2   : > { %p4481_p6 = scmp.ne.s32.totalorder %s4480_s12, 0 }
 0x3e4   : > { %p3339_p7 = pnand %p3345_p1, %p4481_p6 }
 0x3e6   : > { %p3340_p9 = pneg %p3339_p7 }
 0x3e8   : > { %3595 = dma.done.wait (%p3340_p9), %s2818_s30, 4096  }
 0x3e9   : > { %3597 = vsyncadd (%p3340_p9), %s2818_s30, 4294963200  ;;  %s2827_s11 = scalar_lea.sflag [#allocation9], %s2817_s20 }
 0x3ea   : > { %3599 = dma.done.wait (%p3340_p9), %s2827_s11, 8192  }
 0x3eb   : > { %3601 = vsyncadd (%p3340_p9), %s2827_s11, 4294959104  ;;  %s23_s27 = sadd.s32 1, %s3640_s27   ;;  %s4482_s13 = sld [smem:[#allocation13_spill]] }
 0x3ec   : > { %p20_p12 = scmp.ge.s32.totalorder %s23_s27, 6   ;;  %s4483_s20 = sld [smem:[#allocation16_spill]] }
 0x3ed   : > { %s4484_s7 = sld [smem:[#allocation17_spill]]  ;;  %s4487_s18 = smov %s3608_s19 }
 0x3ee   : > { %s4485_s14 = sld [smem:[#allocation14_spill]]  ;;  %s4489_s21 = smov %s3620_s22 }
 0x3ef   : > { %s4486_s10 = sld [smem:[#allocation15_spill]]  ;;  %s4491_s23 = smov %s3632_s25 }
 0x3f0   : > { %s4492_s24 = smov %s3636_s26 }
 0x3f1   : > { %s4488_s19 = smov %s4482_s13  ;;  %22 = sbr.rel (!%p20_p12) target bundleno = 11 (0xb), region = 134 }
 0x3f3   : > { %s4490_s22 = smov %s4484_s7 }
 0x3f4   : > { %s4493_s25 = smov %s4485_s14 }
 0x3f5   : > { %s4494_s26 = smov %s4486_s10 }
 0x3f6   :  { %2832 = vsyncpa [#allocation5], 1 }
 0x3f7   :  { %2834 = vsyncpa [#allocation5 + $0x1], 1 }
 0x3f8   :  { %2835 = vsyncpa [#allocation6], 1 }
 0x3f9   :  { %2837 = vsyncpa [#allocation6 + $0x1], 1 }
 0x3fa   :  { %2838 = vsyncpa [#allocation9], 1 }
 0x3fb   :  { %2840 = vsyncpa [#allocation9 + $0x1], 1 }

// kernel: tpu_custom_call.1
= control target key start
LH: loop header
LB: loop body
LE: loop exit
PB: predicated region body
PF: predicated region fallthrough
CT: control target
= control target key end

     0   :  { %s4522_s0 = inlined_call_operand.vmem [shape: s8[1024,1024], index: 0, kind: input, shape index: {}]   ;;  %s4523_s1 = inlined_call_operand.vmem [shape: f32[1024,1], index: 1, kind: input, shape index: {}]   ;;  %s4524_s2 = inlined_call_operand.vmem [shape: bf16[1024,128], index: 2, kind: input, shape index: {}]   ;;  %s4525_s3 = inlined_call_operand.hbm [shape: f32[1024,128], index: 3, kind: input, shape index: {}, may-alias: {3,5}]   ;;  %s4526_s4 = inlined_call_operand.hbm [shape: bf16[1024,128], index: 4, kind: output, shape index: {0}]   ;;  %s4527_s5 = inlined_call_operand.hbm [shape: f32[1024,128], index: 5, kind: output, shape index: {1}, may-alias: {3,5}]  }
   0x1   :  { %4532 = sst [smem:[#allocation18_spill]] %s4522_s0 }
   0x2   :  { %11 = vsyncpa [#allocation5], 0 }
   0x3   :  { %13 = vsyncpa [#allocation5 + $0x1], 0 }
   0x4   :  { %14 = vsyncpa [#allocation6], 0 }
   0x5   :  { %16 = vsyncpa [#allocation6 + $0x1], 0 }
   0x6   :  { %17 = vsyncpa [#allocation9], 0 }
   0x7   :  { %19 = vsyncpa [#allocation9 + $0x1], 0  ;;  %s3705_s18 = smov 0   ;;  %s3707_s19 = smov 0  }
   0x8   :  { %s3709_s20 = smov 0   ;;  %s3711_s21 = smov 0  }
   0x9   :  { %s3713_s22 = smov 0   ;;  %s3715_s23 = smov 0  }
   0xa   :  { %s3717_s24 = smov 0   ;;  %s3719_s25 = smov 0  }
   0xb   :  { %s3721_s26 = smov 0   ;;  %s3723_s27 = smov 0  }
   0xc LB: > { %4533 = sst [smem:[#allocation13_spill]] %s3641_s22  ;;  %s2970_s28 = sadd.s32 4294967295, %s3661_s27   ;;  %s3661_s27 = sphi %s3723_s27, %s25_s27   ;;  %s3657_s26 = sphi %s3721_s26, %s4553_s26   ;;  %s3653_s25 = sphi %s3719_s25, %s4547_s25   ;;  %s3649_s24 = sphi %s3717_s24, %s4552_s24   ;;  %s3645_s23 = sphi %s3715_s23, %s4546_s23   ;;  %s3641_s22 = sphi %s3713_s22, %s4545_s22   ;;  %s3637_s21 = sphi %s3711_s21, %s4544_s21   ;;  %s3633_s20 = sphi %s3709_s20, %s4551_s20   ;;  %s3629_s19 = sphi %s3707_s19, %s4550_s19   ;;  %s3625_s18 = sphi %s3705_s18, %s4549_s18  }
   0xd   : > { %4534 = sst [smem:[#allocation14_spill]] %s3653_s25  ;;  %s2971_s29 = sadd.s32 4294967294, %s3661_s27  }
   0xe   : > { %s34_s30 = sadd.s32 1, %s3653_s25  ;;  %s37_s6 = sadd.s32 1, %s3657_s26 }
   0xf   : > { %p35_p0 = scmp.ge.s32.totalorder %s34_s30, 2  ;;  %s46_s7 = sadd.s32 1, %s3641_s22 }
  0x10   : > { %p53_p1 = scmp.ne.s32.totalorder %s3641_s22, %s3637_s21  ;;  %p54_p2 = scmp.eq.s32.totalorder %s3661_s27, 0 }
  0x11   : > { %s4555_s30 = smov (%p35_p0, %s34_s30), 0  ;;  %s4557_s6 = smov (!%p35_p0, %s37_s6), %s3657_s26 }
  0x12   : > { %4535 = sst [smem:[#allocation15_spill]] %s4555_s30  ;;  %s42_s8 = ssub.s32 %s3653_s25, %s4555_s30 }
  0x13   : > { %p3768_p3 = por %p54_p2, %p53_p1  ;;  %p39_p4 = scmp.ge.s32.totalorder %s4557_s6, 2 }
  0x14   : > { %s119_s10 = sadd.s32 1, %s3633_s20  ;;  %p126_p5 = scmp.ne.s32.totalorder %s3633_s20, %s3629_s19 }
  0x15   : > { %p132_p6 = scmp.ne.s32.totalorder %s3629_s19, %s3625_s18  ;;  %s4559_s6 = smov (%p39_p4, %s4557_s6), 0 }
  0x16   : > { %4537 = sst [smem:[#allocation16_spill]] %s4559_s6  ;;  %p3782_p7 = por %p126_p5, %p54_p2 }
  0x17   : > { %p133_p8 = scmp.eq.s32.totalorder %s2970_s28, 0  ;;  %s41_s12 = ssub.s32 %s3657_s26, %s4559_s6 }
  0x18   : > { %p156_p9 = scmp.eq.s32.totalorder %s2970_s28, 3  ;;  %s43_s13 = sor.u32 %s42_s8, %s41_s12 }
  0x19   : > { %p117_p10 = scmp.eq.s32.totalorder %s41_s12, 0  ;;  %p44_p11 = scmp.eq.s32.totalorder %s43_s13, 0 }
  0x1a   : > { %p3791_p12 = por %p133_p8, %p132_p6  ;;  %p3804_p13 = por %p156_p9, %p126_p5 }
  0x1b   : > { %s3796_s15 = scalar_select %p117_p10, %s3633_s20, %s119_s10  }
  0x1c   : > { %s3799_s16 = scalar_select %p44_p11, %s3641_s22, %s46_s7  }
  0x1d   : > { %p162_p0 = scmp.eq.s32.totalorder %s2971_s29, 3  ;;  %p2973_p2 = scmp.ge.s32.totalorder %s3661_s27, 4 }
  0x1e   : > { %4540 = sst [smem:[#allocation17_spill]] %s3799_s16 }
  0x1f   : > { %p3811_p1 = por %p162_p0, %p132_p6  ;;  %207 = sbr.rel (%p2973_p2) target bundleno = 94 (0x5e), region = 20 }
  0x24   : > { %210 = sbr.rel (!%p3768_p3) target bundleno = 78 (0x4e), region = 24  ;;  %s212_s7 = sand.u32 (%p3768_p3), 1, %s3641_s22  }
  0x25   : > { %s2976_s8 = sshll.u32 (%p3768_p3), %s3653_s25, 2  ;;  %s2974_s10 = sshll.u32 (%p3768_p3), %s212_s7, 9 }
  0x26   : > { %s3097_s12 = sshll.u32 (%p3768_p3), %s3657_s26, 7  ;;  %s4543_s0 = sld [smem:[#allocation18_spill]] (%p3768_p3) }
  0x27   : > { %s218_s13 = sadd.s32 (%p3768_p3), %s3097_s12, %s2976_s8  ;;  %s3829_s9 = scalar_lea.vmem (%p3768_p3), [#allocation3], %s2974_s10 }
  0x28   : > { %s2978_s29 = sshll.u32 (%p3768_p3), %s218_s13, 3 }
  0x2c   : > { %s3824_s16 = scalar_lea.vmem %s4543_s0, %s2978_s29 }
  0x2d   : > { %v233_v0 = vld [vmem:[%s3824_s16] sm:$0xff]  ;;  %v235_v1 = vld [vmem:[%s3824_s16 + $0x8] sm:$0xff]  ;;  %v237_v2 = vld [vmem:[%s3824_s16 + $0x10] sm:$0xff] }
  0x2e   : > { %234 = vst [vmem:[%s3829_s9] sm:$0xff] %v233_v0  ;;  %236 = vst [vmem:[%s3829_s9 + $0x8] sm:$0xff] %v235_v1  ;;  %v239_v3 = vld [vmem:[%s3824_s16 + $0x18] sm:$0xff]  ;;  %v241_v4 = vld [vmem:[%s3824_s16 + $0x40] sm:$0xff] }
  0x2f   : > { %238 = vst [vmem:[%s3829_s9 + $0x10] sm:$0xff] %v237_v2  ;;  %v243_v5 = vld [vmem:[%s3824_s16 + $0x48] sm:$0xff]  ;;  %240 = vst [vmem:[%s3829_s9 + $0x18] sm:$0xff] %v239_v3  ;;  %v245_v6 = vld [vmem:[%s3824_s16 + $0x50] sm:$0xff] }
  0x30   : > { %242 = vst [vmem:[%s3829_s9 + $0x20] sm:$0xff] %v241_v4  ;;  %244 = vst [vmem:[%s3829_s9 + $0x28] sm:$0xff] %v243_v5  ;;  %v247_v7 = vld [vmem:[%s3824_s16 + $0x58] sm:$0xff]  ;;  %v249_v8 = vld [vmem:[%s3824_s16 + $0x80] sm:$0xff] }
  0x31   : > { %246 = vst [vmem:[%s3829_s9 + $0x30] sm:$0xff] %v245_v6  ;;  %248 = vst [vmem:[%s3829_s9 + $0x38] sm:$0xff] %v247_v7  ;;  %v251_v9 = vld [vmem:[%s3824_s16 + $0x88] sm:$0xff]  ;;  %v253_v10 = vld [vmem:[%s3824_s16 + $0x90] sm:$0xff] }
  0x32   : > { %250 = vst [vmem:[%s3829_s9 + $0x40] sm:$0xff] %v249_v8  ;;  %v255_v11 = vld [vmem:[%s3824_s16 + $0x98] sm:$0xff]  ;;  %252 = vst [vmem:[%s3829_s9 + $0x48] sm:$0xff] %v251_v9  ;;  %v257_v12 = vld [vmem:[%s3824_s16 + $0xc0] sm:$0xff] }
  0x33   : > { %254 = vst [vmem:[%s3829_s9 + $0x50] sm:$0xff] %v253_v10  ;;  %256 = vst [vmem:[%s3829_s9 + $0x58] sm:$0xff] %v255_v11  ;;  %v259_v13 = vld [vmem:[%s3824_s16 + $0xc8] sm:$0xff]  ;;  %v261_v14 = vld [vmem:[%s3824_s16 + $0xd0] sm:$0xff] }
  0x34   : > { %258 = vst [vmem:[%s3829_s9 + $0x60] sm:$0xff] %v257_v12  ;;  %260 = vst [vmem:[%s3829_s9 + $0x68] sm:$0xff] %v259_v13  ;;  %v263_v15 = vld [vmem:[%s3824_s16 + $0xd8] sm:$0xff]  ;;  %v265_v16 = vld [vmem:[%s3824_s16 + $0x100] sm:$0xff] }
  0x35   : > { %262 = vst [vmem:[%s3829_s9 + $0x70] sm:$0xff] %v261_v14  ;;  %v267_v17 = vld [vmem:[%s3824_s16 + $0x108] sm:$0xff]  ;;  %264 = vst [vmem:[%s3829_s9 + $0x78] sm:$0xff] %v263_v15  ;;  %v269_v18 = vld [vmem:[%s3824_s16 + $0x110] sm:$0xff] }
  0x36   : > { %266 = vst [vmem:[%s3829_s9 + $0x80] sm:$0xff] %v265_v16  ;;  %268 = vst [vmem:[%s3829_s9 + $0x88] sm:$0xff] %v267_v17  ;;  %v271_v19 = vld [vmem:[%s3824_s16 + $0x118] sm:$0xff]  ;;  %v273_v20 = vld [vmem:[%s3824_s16 + $0x140] sm:$0xff] }
  0x37   : > { %270 = vst [vmem:[%s3829_s9 + $0x90] sm:$0xff] %v269_v18  ;;  %272 = vst [vmem:[%s3829_s9 + $0x98] sm:$0xff] %v271_v19  ;;  %v275_v21 = vld [vmem:[%s3824_s16 + $0x148] sm:$0xff]  ;;  %v277_v22 = vld [vmem:[%s3824_s16 + $0x150] sm:$0xff] }
  0x38   : > { %274 = vst [vmem:[%s3829_s9 + $0xa0] sm:$0xff] %v273_v20  ;;  %v279_v23 = vld [vmem:[%s3824_s16 + $0x158] sm:$0xff]  ;;  %276 = vst [vmem:[%s3829_s9 + $0xa8] sm:$0xff] %v275_v21  ;;  %v281_v24 = vld [vmem:[%s3824_s16 + $0x180] sm:$0xff] }
  0x39   : > { %278 = vst [vmem:[%s3829_s9 + $0xb0] sm:$0xff] %v277_v22  ;;  %280 = vst [vmem:[%s3829_s9 + $0xb8] sm:$0xff] %v279_v23  ;;  %v283_v25 = vld [vmem:[%s3824_s16 + $0x188] sm:$0xff]  ;;  %v285_v26 = vld [vmem:[%s3824_s16 + $0x190] sm:$0xff] }
  0x3a   : > { %282 = vst [vmem:[%s3829_s9 + $0xc0] sm:$0xff] %v281_v24  ;;  %284 = vst [vmem:[%s3829_s9 + $0xc8] sm:$0xff] %v283_v25  ;;  %v287_v27 = vld [vmem:[%s3824_s16 + $0x198] sm:$0xff]  ;;  %v289_v28 = vld [vmem:[%s3824_s16 + $0x1c0] sm:$0xff] }
  0x3b   : > { %286 = vst [vmem:[%s3829_s9 + $0xd0] sm:$0xff] %v285_v26  ;;  %v291_v29 = vld [vmem:[%s3824_s16 + $0x1c8] sm:$0xff]  ;;  %288 = vst [vmem:[%s3829_s9 + $0xd8] sm:$0xff] %v287_v27  ;;  %v293_v30 = vld [vmem:[%s3824_s16 + $0x1d0] sm:$0xff] }
  0x3c   : > { %290 = vst [vmem:[%s3829_s9 + $0xe0] sm:$0xff] %v289_v28  ;;  %292 = vst [vmem:[%s3829_s9 + $0xe8] sm:$0xff] %v291_v29  ;;  %v295_v31 = vld [vmem:[%s3824_s16 + $0x1d8] sm:$0xff]  ;;  %v297_v32 = vld [vmem:[%s3824_s16 + $0x200] sm:$0xff] }
  0x3d   : > { %294 = vst [vmem:[%s3829_s9 + $0xf0] sm:$0xff] %v293_v30  ;;  %296 = vst [vmem:[%s3829_s9 + $0xf8] sm:$0xff] %v295_v31  ;;  %v299_v33 = vld [vmem:[%s3824_s16 + $0x208] sm:$0xff]  ;;  %v301_v34 = vld [vmem:[%s3824_s16 + $0x210] sm:$0xff] }
  0x3e   : > { %298 = vst [vmem:[%s3829_s9 + $0x100] sm:$0xff] %v297_v32  ;;  %v303_v35 = vld [vmem:[%s3824_s16 + $0x218] sm:$0xff]  ;;  %300 = vst [vmem:[%s3829_s9 + $0x108] sm:$0xff] %v299_v33  ;;  %v305_v36 = vld [vmem:[%s3824_s16 + $0x240] sm:$0xff] }
  0x3f   : > { %302 = vst [vmem:[%s3829_s9 + $0x110] sm:$0xff] %v301_v34  ;;  %304 = vst [vmem:[%s3829_s9 + $0x118] sm:$0xff] %v303_v35  ;;  %v307_v37 = vld [vmem:[%s3824_s16 + $0x248] sm:$0xff]  ;;  %v309_v38 = vld [vmem:[%s3824_s16 + $0x250] sm:$0xff] }
  0x40   : > { %306 = vst [vmem:[%s3829_s9 + $0x120] sm:$0xff] %v305_v36  ;;  %308 = vst [vmem:[%s3829_s9 + $0x128] sm:$0xff] %v307_v37  ;;  %v311_v39 = vld [vmem:[%s3824_s16 + $0x258] sm:$0xff]  ;;  %v313_v40 = vld [vmem:[%s3824_s16 + $0x280] sm:$0xff] }
  0x41   : > { %310 = vst [vmem:[%s3829_s9 + $0x130] sm:$0xff] %v309_v38  ;;  %v315_v41 = vld [vmem:[%s3824_s16 + $0x288] sm:$0xff]  ;;  %312 = vst [vmem:[%s3829_s9 + $0x138] sm:$0xff] %v311_v39  ;;  %v317_v42 = vld [vmem:[%s3824_s16 + $0x290] sm:$0xff] }
  0x42   : > { %314 = vst [vmem:[%s3829_s9 + $0x140] sm:$0xff] %v313_v40  ;;  %316 = vst [vmem:[%s3829_s9 + $0x148] sm:$0xff] %v315_v41  ;;  %v319_v43 = vld [vmem:[%s3824_s16 + $0x298] sm:$0xff]  ;;  %v321_v44 = vld [vmem:[%s3824_s16 + $0x2c0] sm:$0xff] }
  0x43   : > { %318 = vst [vmem:[%s3829_s9 + $0x150] sm:$0xff] %v317_v42  ;;  %320 = vst [vmem:[%s3829_s9 + $0x158] sm:$0xff] %v319_v43  ;;  %v323_v45 = vld [vmem:[%s3824_s16 + $0x2c8] sm:$0xff]  ;;  %v325_v46 = vld [vmem:[%s3824_s16 + $0x2d0] sm:$0xff] }
  0x44   : > { %322 = vst [vmem:[%s3829_s9 + $0x160] sm:$0xff] %v321_v44  ;;  %v327_v47 = vld [vmem:[%s3824_s16 + $0x2d8] sm:$0xff]  ;;  %324 = vst [vmem:[%s3829_s9 + $0x168] sm:$0xff] %v323_v45  ;;  %v329_v48 = vld [vmem:[%s3824_s16 + $0x300] sm:$0xff] }
  0x45   : > { %326 = vst [vmem:[%s3829_s9 + $0x170] sm:$0xff] %v325_v46  ;;  %328 = vst [vmem:[%s3829_s9 + $0x178] sm:$0xff] %v327_v47  ;;  %v331_v49 = vld [vmem:[%s3824_s16 + $0x308] sm:$0xff]  ;;  %v333_v50 = vld [vmem:[%s3824_s16 + $0x310] sm:$0xff] }
  0x46   : > { %330 = vst [vmem:[%s3829_s9 + $0x180] sm:$0xff] %v329_v48  ;;  %332 = vst [vmem:[%s3829_s9 + $0x188] sm:$0xff] %v331_v49  ;;  %v335_v51 = vld [vmem:[%s3824_s16 + $0x318] sm:$0xff]  ;;  %v337_v52 = vld [vmem:[%s3824_s16 + $0x340] sm:$0xff] }
  0x47   : > { %334 = vst [vmem:[%s3829_s9 + $0x190] sm:$0xff] %v333_v50  ;;  %v339_v53 = vld [vmem:[%s3824_s16 + $0x348] sm:$0xff]  ;;  %336 = vst [vmem:[%s3829_s9 + $0x198] sm:$0xff] %v335_v51  ;;  %v341_v54 = vld [vmem:[%s3824_s16 + $0x350] sm:$0xff] }
  0x48   : > { %338 = vst [vmem:[%s3829_s9 + $0x1a0] sm:$0xff] %v337_v52  ;;  %340 = vst [vmem:[%s3829_s9 + $0x1a8] sm:$0xff] %v339_v53  ;;  %v343_v55 = vld [vmem:[%s3824_s16 + $0x358] sm:$0xff]  ;;  %v345_v56 = vld [vmem:[%s3824_s16 + $0x380] sm:$0xff] }
  0x49   : > { %342 = vst [vmem:[%s3829_s9 + $0x1b0] sm:$0xff] %v341_v54  ;;  %344 = vst [vmem:[%s3829_s9 + $0x1b8] sm:$0xff] %v343_v55  ;;  %v347_v57 = vld [vmem:[%s3824_s16 + $0x388] sm:$0xff]  ;;  %v349_v58 = vld [vmem:[%s3824_s16 + $0x390] sm:$0xff] }
  0x4a   : > { %346 = vst [vmem:[%s3829_s9 + $0x1c0] sm:$0xff] %v345_v56  ;;  %v351_v59 = vld [vmem:[%s3824_s16 + $0x398] sm:$0xff]  ;;  %348 = vst [vmem:[%s3829_s9 + $0x1c8] sm:$0xff] %v347_v57  ;;  %v353_v60 = vld [vmem:[%s3824_s16 + $0x3c0] sm:$0xff] }
  0x4b   : > { %350 = vst [vmem:[%s3829_s9 + $0x1d0] sm:$0xff] %v349_v58  ;;  %352 = vst [vmem:[%s3829_s9 + $0x1d8] sm:$0xff] %v351_v59  ;;  %v355_v61 = vld [vmem:[%s3824_s16 + $0x3c8] sm:$0xff]  ;;  %v357_v62 = vld [vmem:[%s3824_s16 + $0x3d0] sm:$0xff] }
  0x4c   : > { %354 = vst [vmem:[%s3829_s9 + $0x1e0] sm:$0xff] %v353_v60  ;;  %356 = vst [vmem:[%s3829_s9 + $0x1e8] sm:$0xff] %v355_v61  ;;  %v359_v63 = vld [vmem:[%s3824_s16 + $0x3d8] sm:$0xff] }
  0x4d   : > { %358 = vst [vmem:[%s3829_s9 + $0x1f0] sm:$0xff] %v357_v62  ;;  %360 = vst [vmem:[%s3829_s9 + $0x1f8] sm:$0xff] %v359_v63 }
  0x4e PF: > { %s376_s30 = sand.u32 1, %s3633_s20   ;;  %s3098_s6 = sshll.u32 %s3657_s26, 13 }
  0x4f   : > { %s2979_s7 = sshll.u32 %s376_s30, 9  ;;  %s386_s12 = scalar_lea.hbm %s4525_s3, %s3098_s6 }
  0x50   : > { %s380_s13 = scalar_lea.vmem [#allocation4], %s2979_s7  ;;  %s377_s0 = scalar_lea.sflag [#allocation5], %s376_s30 }
  0x51   : > { %s387_s29 = sshll.u32 %s380_s13, 4  ;;  %s3663_s16 = smov [#allocation4]   ;;  %s388_s29 = int_to_ptr.vmem [resolvable:$true] %s387_s29 }
  0x52   : > { %s3505_s25 = scalar_lea.vmem %s388_s29, 8192  ;;  %s3509_s9 = sshll.u32 %s3663_s16, 4  ;;  %s3510_s9 = int_to_ptr.vmem [resolvable:$false] %s3509_s9 }
  0x53   : > { %p3506_p3 = scmp.ne.s32.totalorder %s388_s29, %s3505_s25  ;;  %s3511_s22 = scalar_lea.vmem %s3510_s9, 16384 }
  0x54   : > { %p3512_p6 = scmp.lt.s32.totalorder %s388_s29, %s3510_s9  ;;  %p3513_p8 = scmp.lt.s32.totalorder %s3511_s22, %s3505_s25 }
  0x55   : > { %p3507_p4 = pnand %p3506_p3, %p3782_p7 }
  0x56   : > { %p3514_p9 = por %p3513_p8, %p3512_p6 }
  0x57   : > { %p3508_p5 = pneg %p3507_p4 }
  0x59   : > { %p3515_p10 = pnand %p3514_p9, %p3508_p5 }
  0x5b   : > { %3518 = shalt.err (!%p3515_p10)
}
  0x5c   : > { %s3664_s8 = smov 128   ;;  %s3665_s6 = smov 8  }
  0x5d   : > { %3356 = dma.hbm_to_vmem [thread:$0]  (%p3782_p7), %s386_s12, 8192, %s388_s29, %s377_s0, %s3664_s8, %s3664_s8, %s3665_s6  }
  0x5e PF: > { %p2982_p11 = scmp.ge.s32.totalorder %s3661_s27, 1  ;;  %p395_p0 = scmp.lt.s32.totalorder %s3661_s27, 5 }
  0x60   : > { %p396_p2 = pnand %p2982_p11, %p395_p0 }
  0x61   : > { %s402_s30 = sand.u32 (!%p396_p2), 1, %s3637_s21   ;;  %s3969_s22 = sand.u32 (!%p396_p2), 1, %s3629_s19  }
  0x62   : > { %399 = sbr.rel (%p396_p2) target bundleno = 969 (0x3c9), region = 55  ;;  %s2983_s25 = sshll.u32 (!%p396_p2), %s402_s30, 9 }
  0x63   : > { %s2984_s7 = sshll.u32 (!%p396_p2), %s3969_s22, 9  ;;  %s3972_s10 = scalar_lea.vmem (!%p396_p2), [#allocation3], %s2983_s25 }
  0x64   : > { %s409_s0 = scalar_lea.sflag (!%p396_p2), [#allocation5], %s3969_s22  ;;  %s3975_s11 = scalar_lea.vmem (!%p396_p2), [#allocation4], %s2984_s7 }
  0x67   : > { %3612 = dma.done.wait (%p3791_p12), %s409_s0, 8192  }
  0x68   : > { %3614 = vsyncadd (%p3791_p12), %s409_s0, 4294959104  ;;  %s2985_s12 = sshll.u32 %s3969_s22, 8  ;;  %s2987_s21 = sshll.u32 %s3649_s24, 6 }
  0x69   : > { %p456_p7 = scmp.lt.s32.totalorder %s2987_s21, 127  ;;  %s3988_s8 = scalar_lea.vmem [#allocation7], %s2985_s12 }
  0x6a   : > { %s3990_s6 = scalar_lea.vmem [#allocation8], %s2984_s7  ;;  %p2989_p3 = scmp.ne.s32.totalorder %s3645_s23, 0 }
  0x6b   : > { %s4561_s21 = smov (!%p456_p7, %s2987_s21), 127 }
  0x6c   : > { %s2988_s13 = sshll.u32 %s4561_s21, 3  ;;  %468 = sbr.rel (%p2989_p3) target bundleno = 146 (0x92), region = 67 }
  0x6d   : > { %s3986_s9 = scalar_lea.vmem %s4523_s1, %s2988_s13 }
  0x71   : > { %v3666_v0 = vmov 0.0  }
  0x72   : > { %469 = vst [vmem:[#allocation2 + $0xb0] sm:$0xff] %v3666_v0  ;;  %470 = vst [vmem:[#allocation2 + $0x1b0] sm:$0xff] %v3666_v0 }
  0x73   : > { %471 = vst [vmem:[#allocation2 + $0xd8] sm:$0xff] %v3666_v0  ;;  %472 = vst [vmem:[#allocation2 + $0x18] sm:$0xff] %v3666_v0 }
  0x74   : > { %473 = vst [vmem:[#allocation2 + $0x50] sm:$0xff] %v3666_v0  ;;  %474 = vst [vmem:[#allocation2 + $0x168] sm:$0xff] %v3666_v0 }
  0x75   : > { %475 = vst [vmem:[#allocation2 + $0x130] sm:$0xff] %v3666_v0  ;;  %476 = vst [vmem:[#allocation2 + $0x48] sm:$0xff] %v3666_v0 }
  0x76   : > { %477 = vst [vmem:[#allocation2 + $0x180] sm:$0xff] %v3666_v0  ;;  %478 = vst [vmem:[#allocation2 + $0x110] sm:$0xff] %v3666_v0 }
  0x77   : > { %479 = vst [vmem:[#allocation2 + $0x118] sm:$0xff] %v3666_v0  ;;  %480 = vst [vmem:[#allocation2 + $0x98] sm:$0xff] %v3666_v0 }
  0x78   : > { %481 = vst [vmem:[#allocation2 + $0x120] sm:$0xff] %v3666_v0  ;;  %482 = vst [vmem:[#allocation2 + $0x150] sm:$0xff] %v3666_v0 }
  0x79   : > { %483 = vst [vmem:[#allocation2 + $0x108] sm:$0xff] %v3666_v0  ;;  %484 = vst [vmem:[#allocation2 + $0x60] sm:$0xff] %v3666_v0 }
  0x7a   : > { %485 = vst [vmem:[#allocation2 + $0xe0] sm:$0xff] %v3666_v0  ;;  %486 = vst [vmem:[#allocation2 + $0x188] sm:$0xff] %v3666_v0 }
  0x7b   : > { %487 = vst [vmem:[#allocation2 + $0x138] sm:$0xff] %v3666_v0  ;;  %488 = vst [vmem:[#allocation2 + $0x140] sm:$0xff] %v3666_v0 }
  0x7c   : > { %489 = vst [vmem:[#allocation2 + $0x80] sm:$0xff] %v3666_v0  ;;  %490 = vst [vmem:[#allocation2 + $0x1a8] sm:$0xff] %v3666_v0 }
  0x7d   : > { %491 = vst [vmem:[#allocation2 + $0x1b8] sm:$0xff] %v3666_v0  ;;  %492 = vst [vmem:[#allocation2 + $0x28] sm:$0xff] %v3666_v0 }
  0x7e   : > { %493 = vst [vmem:[#allocation2 + $0x1e8] sm:$0xff] %v3666_v0  ;;  %494 = vst [vmem:[#allocation2 + $0xf8] sm:$0xff] %v3666_v0 }
  0x7f   : > { %495 = vst [vmem:[#allocation2 + $0x160] sm:$0xff] %v3666_v0  ;;  %496 = vst [vmem:[#allocation2 + $0x30] sm:$0xff] %v3666_v0 }
  0x80   : > { %497 = vst [vmem:[#allocation2 + $0x1e0] sm:$0xff] %v3666_v0  ;;  %498 = vst [vmem:[#allocation2] sm:$0xff] %v3666_v0 }
  0x81   : > { %499 = vst [vmem:[#allocation2 + $0xf0] sm:$0xff] %v3666_v0  ;;  %500 = vst [vmem:[#allocation2 + $0x8] sm:$0xff] %v3666_v0 }
  0x82   : > { %501 = vst [vmem:[#allocation2 + $0x148] sm:$0xff] %v3666_v0  ;;  %502 = vst [vmem:[#allocation2 + $0x1d0] sm:$0xff] %v3666_v0 }
  0x83   : > { %503 = vst [vmem:[#allocation2 + $0x100] sm:$0xff] %v3666_v0  ;;  %504 = vst [vmem:[#allocation2 + $0xc8] sm:$0xff] %v3666_v0 }
  0x84   : > { %505 = vst [vmem:[#allocation2 + $0x40] sm:$0xff] %v3666_v0  ;;  %506 = vst [vmem:[#allocation2 + $0x1f8] sm:$0xff] %v3666_v0 }
  0x85   : > { %507 = vst [vmem:[#allocation2 + $0x20] sm:$0xff] %v3666_v0  ;;  %508 = vst [vmem:[#allocation2 + $0x128] sm:$0xff] %v3666_v0 }
  0x86   : > { %509 = vst [vmem:[#allocation2 + $0x1a0] sm:$0xff] %v3666_v0  ;;  %510 = vst [vmem:[#allocation2 + $0x1f0] sm:$0xff] %v3666_v0 }
  0x87   : > { %511 = vst [vmem:[#allocation2 + $0xe8] sm:$0xff] %v3666_v0  ;;  %512 = vst [vmem:[#allocation2 + $0x78] sm:$0xff] %v3666_v0 }
  0x88   : > { %513 = vst [vmem:[#allocation2 + $0x70] sm:$0xff] %v3666_v0  ;;  %514 = vst [vmem:[#allocation2 + $0x90] sm:$0xff] %v3666_v0 }
  0x89   : > { %515 = vst [vmem:[#allocation2 + $0x1d8] sm:$0xff] %v3666_v0  ;;  %516 = vst [vmem:[#allocation2 + $0xd0] sm:$0xff] %v3666_v0 }
  0x8a   : > { %517 = vst [vmem:[#allocation2 + $0xb8] sm:$0xff] %v3666_v0  ;;  %518 = vst [vmem:[#allocation2 + $0x88] sm:$0xff] %v3666_v0 }
  0x8b   : > { %519 = vst [vmem:[#allocation2 + $0xa8] sm:$0xff] %v3666_v0  ;;  %520 = vst [vmem:[#allocation2 + $0x1c8] sm:$0xff] %v3666_v0 }
  0x8c   : > { %521 = vst [vmem:[#allocation2 + $0x170] sm:$0xff] %v3666_v0  ;;  %522 = vst [vmem:[#allocation2 + $0x178] sm:$0xff] %v3666_v0 }
  0x8d   : > { %523 = vst [vmem:[#allocation2 + $0x68] sm:$0xff] %v3666_v0  ;;  %524 = vst [vmem:[#allocation2 + $0x190] sm:$0xff] %v3666_v0 }
  0x8e   : > { %525 = vst [vmem:[#allocation2 + $0x198] sm:$0xff] %v3666_v0  ;;  %526 = vst [vmem:[#allocation2 + $0x38] sm:$0xff] %v3666_v0 }
  0x8f   : > { %527 = vst [vmem:[#allocation2 + $0xc0] sm:$0xff] %v3666_v0  ;;  %528 = vst [vmem:[#allocation2 + $0x1c0] sm:$0xff] %v3666_v0 }
  0x90   : > { %529 = vst [vmem:[#allocation2 + $0x158] sm:$0xff] %v3666_v0  ;;  %530 = vst [vmem:[#allocation2 + $0x10] sm:$0xff] %v3666_v0 }
  0x91   : > { %531 = vst [vmem:[#allocation2 + $0x58] sm:$0xff] %v3666_v0  ;;  %532 = vst [vmem:[#allocation2 + $0xa0] sm:$0xff] %v3666_v0 }
  0x92 PF: > { %s2990_s14 = sshll.u32 %s3645_s23, 9  ;;  %v4059_v1 = vld [vmem:[%s3972_s10 + $0x8] sm:$0xff]  ;;  %v4062_v2 = vld [vmem:[%s3972_s10 + $0x18] sm:$0xff]  ;;  %v3667_v3 = vmov 0   ;;  %v533_v37 = vld [vmem:[%s3972_s10] sm:$0xff]  ;;  %p3024_p12 = scmp.ne.s32.totalorder %s3645_s23, 1 }
  0x93   : > { %1050 = vmatprep.subr.bf16.mxu0 %v3667_v3  ;;  %1339 = vmatprep.subr.bf16.mxu1 %v3667_v3  ;;  %s726_s30 = sshra.s32 %s2990_s14, 3  ;;  %v598_v4 = vunpack.c.l.s8.bf16 %v4059_v1  ;;  %v600_v5 = vunpack.c.l.s8.bf16 %v4062_v2  ;;  %v535_v39 = vld [vmem:[%s3972_s10 + $0x10] sm:$0xff]  ;;  %v597_v40 = vunpack.c.l.s8.bf16 %v533_v37  ;;  %v602_v41 = vunpack.c.h.s8.bf16 %v4059_v1  ;;  %v538_v44 = vld [vmem:[%s3972_s10 + $0x28] sm:$0xff]  ;;  %v540_v45 = vld [vmem:[%s3972_s10 + $0x38] sm:$0xff] }
  0x94   : > { %s2991_s25 = sshll.u32 %s726_s30, 2  ;;  %v599_v42 = vunpack.c.l.s8.bf16 %v535_v39  ;;  %v604_v43 = vunpack.c.h.s8.bf16 %v4062_v2  ;;  %v601_v46 = vunpack.c.h.s8.bf16 %v533_v37  ;;  %v603_v47 = vunpack.c.h.s8.bf16 %v535_v39  ;;  %v537_v50 = vld [vmem:[%s3972_s10 + $0x20] sm:$0xff]  ;;  %v539_v51 = vld [vmem:[%s3972_s10 + $0x30] sm:$0xff]  ;;  %v542_v56 = vld [vmem:[%s3972_s10 + $0x48] sm:$0xff] }
  0x95   : > { %s4071_s12 = scalar_lea.vmem %s4524_s2, %s2991_s25  ;;  %1082 = vmatprep.mubr.bf16.mxu0 %v598_v4  ;;  %1371 = vmatprep.mubr.bf16.mxu1 %v600_v5  ;;  %v606_v48 = vunpack.c.l.s8.bf16 %v538_v44  ;;  %v608_v49 = vunpack.c.l.s8.bf16 %v540_v45  ;;  %v605_v52 = vunpack.c.l.s8.bf16 %v537_v50  ;;  %v607_v53 = vunpack.c.l.s8.bf16 %v539_v51  ;;  %v544_v57 = vld [vmem:[%s3972_s10 + $0x58] sm:$0xff]  ;;  %v541_v62 = vld [vmem:[%s3972_s10 + $0x40] sm:$0xff]  ;;  %v543_v63 = vld [vmem:[%s3972_s10 + $0x50] sm:$0xff] }
  0x96   : > { %v3459_v6 = vld [vmem:[%s4071_s12 + $0x38] sm:$0xff]   ;;  %v3461_v8 = vld [vmem:[%s4071_s12 + $0x30] sm:$0xff]   ;;  %v3463_v10 = vld [vmem:[%s4071_s12 + $0x28] sm:$0xff]   ;;  %v610_v54 = vunpack.c.h.s8.bf16 %v538_v44  ;;  %v612_v55 = vunpack.c.h.s8.bf16 %v540_v45  ;;  %v609_v58 = vunpack.c.h.s8.bf16 %v537_v50  ;;  %v611_v59 = vunpack.c.h.s8.bf16 %v539_v51 }
  0x97   : > { %v3460_v7 = vld [vmem:[%s4071_s12 + $0xb8] sm:$0xff]   ;;  %1051 = vmatpush1.bf16.msra.mxu0 %v3459_v6  ;;  %v3462_v9 = vld [vmem:[%s4071_s12 + $0xb0] sm:$0xff]   ;;  %v3464_v11 = vld [vmem:[%s4071_s12 + $0xa8] sm:$0xff]   ;;  %v614_v60 = vunpack.c.l.s8.bf16 %v542_v56  ;;  %v616_v61 = vunpack.c.l.s8.bf16 %v544_v57  ;;  %v613_v0 = vunpack.c.l.s8.bf16 %v541_v62  ;;  %v615_v1 = vunpack.c.l.s8.bf16 %v543_v63 }
  0x98   : > { %1340 = vmatpush1.bf16.msra.mxu1 %v3460_v7  ;;  %1052 = vmatprep.subr.bf16.mxu0 %v3667_v3  ;;  %v3465_v12 = vld [vmem:[%s4071_s12 + $0x20] sm:$0xff]   ;;  %v3467_v14 = vld [vmem:[%s4071_s12 + $0x18] sm:$0xff]   ;;  %v3469_v16 = vld [vmem:[%s4071_s12 + $0x10] sm:$0xff]   ;;  %v618_v2 = vunpack.c.h.s8.bf16 %v542_v56  ;;  %v617_v6 = vunpack.c.h.s8.bf16 %v541_v62  ;;  %v619_v7 = vunpack.c.h.s8.bf16 %v543_v63 }
  0x99   : > { %1341 = vmatprep.subr.bf16.mxu1 %v3667_v3  ;;  %v3466_v13 = vld [vmem:[%s4071_s12 + $0xa0] sm:$0xff]   ;;  %v3468_v15 = vld [vmem:[%s4071_s12 + $0x98] sm:$0xff]   ;;  %v3470_v17 = vld [vmem:[%s4071_s12 + $0x90] sm:$0xff]  }
  0x9a   : > { %v3471_v18 = vld [vmem:[%s4071_s12 + $0x8] sm:$0xff]   ;;  %v3473_v20 = vld [vmem:[%s4071_s12] sm:$0xff]   ;;  %v3475_v22 = vld [vmem:[%s4071_s12 + $0x78] sm:$0xff]  }
  0x9b   : > { %1053 = vmatpush1.bf16.msra.mxu0 %v3461_v8  ;;  %v3472_v19 = vld [vmem:[%s4071_s12 + $0x88] sm:$0xff]   ;;  %v3474_v21 = vld [vmem:[%s4071_s12 + $0x80] sm:$0xff]   ;;  %v3476_v23 = vld [vmem:[%s4071_s12 + $0xf8] sm:$0xff]  }
  0x9c   : > { %1342 = vmatpush1.bf16.msra.mxu1 %v3462_v9  ;;  %1054 = vmatprep.subr.bf16.mxu0 %v3667_v3  ;;  %v3477_v24 = vld [vmem:[%s4071_s12 + $0x70] sm:$0xff]   ;;  %v3479_v26 = vld [vmem:[%s4071_s12 + $0x68] sm:$0xff]   ;;  %v3481_v28 = vld [vmem:[%s4071_s12 + $0x60] sm:$0xff]  }
  0x9d   : > { %1343 = vmatprep.subr.bf16.mxu1 %v3667_v3  ;;  %v3478_v25 = vld [vmem:[%s4071_s12 + $0xf0] sm:$0xff]   ;;  %v3480_v27 = vld [vmem:[%s4071_s12 + $0xe8] sm:$0xff]   ;;  %v3482_v29 = vld [vmem:[%s4071_s12 + $0xe0] sm:$0xff]  }
  0x9e   : > { %v3483_v30 = vld [vmem:[%s4071_s12 + $0x58] sm:$0xff]   ;;  %v3485_v32 = vld [vmem:[%s4071_s12 + $0x50] sm:$0xff]   ;;  %v3487_v34 = vld [vmem:[%s4071_s12 + $0x48] sm:$0xff]  }
  0x9f   : > { %1055 = vmatpush1.bf16.msra.mxu0 %v3463_v10  ;;  %v3484_v31 = vld [vmem:[%s4071_s12 + $0xd8] sm:$0xff]   ;;  %v3486_v33 = vld [vmem:[%s4071_s12 + $0xd0] sm:$0xff]   ;;  %v3488_v35 = vld [vmem:[%s4071_s12 + $0xc8] sm:$0xff]  }
  0xa0   : > { %1344 = vmatpush1.bf16.msra.mxu1 %v3464_v11  ;;  %1056 = vmatprep.subr.bf16.mxu0 %v3667_v3  ;;  %v3489_v36 = vld [vmem:[%s4071_s12 + $0x40] sm:$0xff]   ;;  %v546_v4 = vld [vmem:[%s3972_s10 + $0x68] sm:$0xff]  ;;  %v548_v5 = vld [vmem:[%s3972_s10 + $0x78] sm:$0xff] }
  0xa1   : > { %1345 = vmatprep.subr.bf16.mxu1 %v3667_v3  ;;  %v3490_v38 = vld [vmem:[%s4071_s12 + $0xc0] sm:$0xff]   ;;  %v622_v8 = vunpack.c.l.s8.bf16 %v546_v4  ;;  %v624_v9 = vunpack.c.l.s8.bf16 %v548_v5  ;;  %v547_v11 = vld [vmem:[%s3972_s10 + $0x70] sm:$0xff] }
  0xa2   : > { %v545_v10 = vld [vmem:[%s3972_s10 + $0x60] sm:$0xff] }
  0xa3   : > { %1057 = vmatpush1.bf16.msra.mxu0 %v3465_v12  ;;  %v621_v12 = vunpack.c.l.s8.bf16 %v545_v10 }
  0xa4   : > { %1346 = vmatpush1.bf16.msra.mxu1 %v3466_v13  ;;  %1058 = vmatprep.subr.bf16.mxu0 %v3667_v3  ;;  %v623_v13 = vunpack.c.l.s8.bf16 %v547_v11 }
  0xa5   : > { %1347 = vmatprep.subr.bf16.mxu1 %v3667_v3 }
  0xa7   : > { %1059 = vmatpush1.bf16.msra.mxu0 %v3467_v14  ;;  %v626_v14 = vunpack.c.h.s8.bf16 %v546_v4 }
  0xa8   : > { %1348 = vmatpush1.bf16.msra.mxu1 %v3468_v15  ;;  %1060 = vmatprep.subr.bf16.mxu0 %v3667_v3  ;;  %v628_v15 = vunpack.c.h.s8.bf16 %v548_v5 }
  0xa9   : > { %1349 = vmatprep.subr.bf16.mxu1 %v3667_v3 }
  0xab   : > { %1061 = vmatpush1.bf16.msra.mxu0 %v3469_v16  ;;  %v550_v16 = vld [vmem:[%s3972_s10 + $0x88] sm:$0xff] }
  0xac   : > { %1350 = vmatpush1.bf16.msra.mxu1 %v3470_v17  ;;  %1062 = vmatprep.subr.bf16.mxu0 %v3667_v3  ;;  %v552_v17 = vld [vmem:[%s3972_s10 + $0x98] sm:$0xff] }
  0xad   : > { %1351 = vmatprep.subr.bf16.mxu1 %v3667_v3 }
  0xaf   : > { %1063 = vmatpush1.bf16.msra.mxu0 %v3471_v18  ;;  %v625_v18 = vunpack.c.h.s8.bf16 %v545_v10 }
  0xb0   : > { %1352 = vmatpush1.bf16.msra.mxu1 %v3472_v19  ;;  %1064 = vmatprep.subr.bf16.mxu0 %v3667_v3  ;;  %v627_v19 = vunpack.c.h.s8.bf16 %v547_v11 }
  0xb1   : > { %1353 = vmatprep.subr.bf16.mxu1 %v3667_v3 }
  0xb3   : > { %1065 = vmatpush1.bf16.msra.mxu0 %v3473_v20  ;;  %v630_v20 = vunpack.c.l.s8.bf16 %v550_v16 }
  0xb4   : > { %1354 = vmatpush1.bf16.msra.mxu1 %v3474_v21  ;;  %1066 = vmatprep.subr.bf16.mxu0 %v3667_v3  ;;  %v632_v21 = vunpack.c.l.s8.bf16 %v552_v17 }
  0xb5   : > { %1355 = vmatprep.subr.bf16.mxu1 %v3667_v3 }
  0xb7   : > { %1067 = vmatpush2.bf16.msra.mxu0 %v3475_v22  ;;  %v549_v22 = vld [vmem:[%s3972_s10 + $0x80] sm:$0xff] }
  0xb8   : > { %1356 = vmatpush2.bf16.msra.mxu1 %v3476_v23  ;;  %1068 = vmatprep.subr.bf16.mxu0 %v3667_v3  ;;  %v551_v23 = vld [vmem:[%s3972_s10 + $0x90] sm:$0xff] }
  0xb9   : > { %1357 = vmatprep.subr.bf16.mxu1 %v3667_v3 }
  0xbb   : > { %1069 = vmatpush2.bf16.msra.mxu0 %v3477_v24  ;;  %v629_v24 = vunpack.c.l.s8.bf16 %v549_v22 }
  0xbc   : > { %1358 = vmatpush2.bf16.msra.mxu1 %v3478_v25  ;;  %1070 = vmatprep.subr.bf16.mxu0 %v3667_v3  ;;  %v631_v25 = vunpack.c.l.s8.bf16 %v551_v23 }
  0xbd   : > { %1359 = vmatprep.subr.bf16.mxu1 %v3667_v3 }
  0xbf   : > { %1071 = vmatpush2.bf16.msra.mxu0 %v3479_v26  ;;  %v634_v26 = vunpack.c.h.s8.bf16 %v550_v16 }
  0xc0   : > { %1360 = vmatpush2.bf16.msra.mxu1 %v3480_v27  ;;  %1072 = vmatprep.subr.bf16.mxu0 %v3667_v3  ;;  %v636_v27 = vunpack.c.h.s8.bf16 %v552_v17 }
  0xc1   : > { %1361 = vmatprep.subr.bf16.mxu1 %v3667_v3 }
  0xc3   : > { %1073 = vmatpush2.bf16.msra.mxu0 %v3481_v28  ;;  %v554_v28 = vld [vmem:[%s3972_s10 + $0xa8] sm:$0xff] }
  0xc4   : > { %1362 = vmatpush2.bf16.msra.mxu1 %v3482_v29  ;;  %1074 = vmatprep.subr.bf16.mxu0 %v3667_v3  ;;  %v556_v29 = vld [vmem:[%s3972_s10 + $0xb8] sm:$0xff] }
  0xc5   : > { %1363 = vmatprep.subr.bf16.mxu1 %v3667_v3  ;;  %v644_v39 = vunpack.c.h.s8.bf16 %v556_v29 }
  0xc7   : > { %1075 = vmatpush2.bf16.msra.mxu0 %v3483_v30  ;;  %v633_v30 = vunpack.c.h.s8.bf16 %v549_v22 }
  0xc8   : > { %1364 = vmatpush2.bf16.msra.mxu1 %v3484_v31  ;;  %1076 = vmatprep.subr.bf16.mxu0 %v3667_v3  ;;  %v635_v31 = vunpack.c.h.s8.bf16 %v551_v23 }
  0xc9   : > { %1365 = vmatprep.subr.bf16.mxu1 %v3667_v3 }
  0xcb   : > { %1077 = vmatpush2.bf16.msra.mxu0 %v3485_v32  ;;  %v638_v32 = vunpack.c.l.s8.bf16 %v554_v28 }
  0xcc   : > { %1366 = vmatpush2.bf16.msra.mxu1 %v3486_v33  ;;  %1078 = vmatprep.subr.bf16.mxu0 %v3667_v3  ;;  %v640_v33 = vunpack.c.l.s8.bf16 %v556_v29 }
  0xcd   : > { %1367 = vmatprep.subr.bf16.mxu1 %v3667_v3 }
  0xcf   : > { %1079 = vmatpush2.bf16.msra.mxu0 %v3487_v34  ;;  %v553_v34 = vld [vmem:[%s3972_s10 + $0xa0] sm:$0xff] }
  0xd0   : > { %1368 = vmatpush2.bf16.msra.mxu1 %v3488_v35  ;;  %1080 = vmatprep.subr.bf16.mxu0 %v3667_v3  ;;  %v555_v35 = vld [vmem:[%s3972_s10 + $0xb0] sm:$0xff] }
  0xd1   : > { %1369 = vmatprep.subr.bf16.mxu1 %v3667_v3  ;;  %v620_v3 = vunpack.c.h.s8.bf16 %v544_v57  ;;  %v639_v37 = vunpack.c.l.s8.bf16 %v555_v35 }
  0xd3   : > { %1081 = vmatpush2.bf16.msra.mxu0 %v3489_v36  ;;  %v637_v36 = vunpack.c.l.s8.bf16 %v553_v34 }
  0xd4   : > { %1370 = vmatpush2.bf16.msra.mxu1 %v3490_v38  ;;  %v642_v38 = vunpack.c.h.s8.bf16 %v554_v28 }
  0xd6   : > { %1083 = vmatmul.mubr.bf16.vlgmr.msra.gmra.mxu0 %v597_v40  ;;  %v558_v40 = vld [vmem:[%s3972_s10 + $0xc8] sm:$0xff] }
  0xd7   : > { %1372 = vmatmul.mubr.bf16.vlgmr.msra.gmra.mxu1 %v599_v42  ;;  %1090 = vmatprep.mubr.bf16.mxu0 %v602_v41  ;;  %v560_v41 = vld [vmem:[%s3972_s10 + $0xd8] sm:$0xff]  ;;  %v641_v42 = vunpack.c.h.s8.bf16 %v553_v34  ;;  %v646_v44 = vunpack.c.l.s8.bf16 %v558_v40  ;;  %v650_v50 = vunpack.c.h.s8.bf16 %v558_v40 }
  0xd8   : > { %1379 = vmatprep.mubr.bf16.mxu1 %v604_v43  ;;  %v643_v43 = vunpack.c.h.s8.bf16 %v555_v35  ;;  %v648_v45 = vunpack.c.l.s8.bf16 %v560_v41  ;;  %v652_v51 = vunpack.c.h.s8.bf16 %v560_v41 }
  0xde   : > { %1091 = vmatmul.mubr.bf16.gmra.mxu0 %v601_v46  ;;  %v557_v46 = vld [vmem:[%s3972_s10 + $0xc0] sm:$0xff] }
  0xdf   : > { %1380 = vmatmul.mubr.bf16.gmra.mxu1 %v603_v47  ;;  %1098 = vmatprep.mubr.bf16.mxu0 %v606_v48  ;;  %v559_v47 = vld [vmem:[%s3972_s10 + $0xd0] sm:$0xff]  ;;  %v645_v48 = vunpack.c.l.s8.bf16 %v557_v46 }
  0xe0   : > { %1387 = vmatprep.mubr.bf16.mxu1 %v608_v49  ;;  %v647_v49 = vunpack.c.l.s8.bf16 %v559_v47 }
  0xe6   : > { %1099 = vmatmul.mubr.bf16.gmra.mxu0 %v605_v52  ;;  %v562_v52 = vld [vmem:[%s3972_s10 + $0xe8] sm:$0xff] }
  0xe7   : > { %1388 = vmatmul.mubr.bf16.gmra.mxu1 %v607_v53  ;;  %1106 = vmatprep.mubr.bf16.mxu0 %v610_v54  ;;  %v564_v53 = vld [vmem:[%s3972_s10 + $0xf8] sm:$0xff]  ;;  %v649_v54 = vunpack.c.h.s8.bf16 %v557_v46  ;;  %v654_v56 = vunpack.c.l.s8.bf16 %v562_v52  ;;  %v658_v62 = vunpack.c.h.s8.bf16 %v562_v52 }
  0xe8   : > { %1395 = vmatprep.mubr.bf16.mxu1 %v612_v55  ;;  %v651_v55 = vunpack.c.h.s8.bf16 %v559_v47  ;;  %v656_v57 = vunpack.c.l.s8.bf16 %v564_v53  ;;  %v660_v63 = vunpack.c.h.s8.bf16 %v564_v53 }
  0xee   : > { %1107 = vmatmul.mubr.bf16.gmra.mxu0 %v609_v58  ;;  %v561_v58 = vld [vmem:[%s3972_s10 + $0xe0] sm:$0xff] }
  0xef   : > { %1396 = vmatmul.mubr.bf16.gmra.mxu1 %v611_v59  ;;  %1114 = vmatprep.mubr.bf16.mxu0 %v614_v60  ;;  %v563_v59 = vld [vmem:[%s3972_s10 + $0xf0] sm:$0xff]  ;;  %v653_v60 = vunpack.c.l.s8.bf16 %v561_v58 }
  0xf0   : > { %1403 = vmatprep.mubr.bf16.mxu1 %v616_v61  ;;  %v655_v61 = vunpack.c.l.s8.bf16 %v563_v59 }
  0xf6   : > { %1115 = vmatmul.mubr.bf16.gmra.mxu0 %v613_v0  ;;  %v566_v0 = vld [vmem:[%s3972_s10 + $0x108] sm:$0xff] }
  0xf7   : > { %1404 = vmatmul.mubr.bf16.gmra.mxu1 %v615_v1  ;;  %1122 = vmatprep.mubr.bf16.mxu0 %v618_v2  ;;  %v568_v1 = vld [vmem:[%s3972_s10 + $0x118] sm:$0xff]  ;;  %v657_v2 = vunpack.c.h.s8.bf16 %v561_v58  ;;  %v662_v4 = vunpack.c.l.s8.bf16 %v566_v0  ;;  %v666_v10 = vunpack.c.h.s8.bf16 %v566_v0 }
  0xf8   : > { %1411 = vmatprep.mubr.bf16.mxu1 %v620_v3  ;;  %v659_v3 = vunpack.c.h.s8.bf16 %v563_v59  ;;  %v664_v5 = vunpack.c.l.s8.bf16 %v568_v1  ;;  %v668_v11 = vunpack.c.h.s8.bf16 %v568_v1  ;;  %v586_v1 = vld [vmem:[%s3972_s10 + $0x1a8] sm:$0xff] }
  0xfe   : > { %1123 = vmatmul.mubr.bf16.gmra.mxu0 %v617_v6  ;;  %v565_v6 = vld [vmem:[%s3972_s10 + $0x100] sm:$0xff] }
  0xff   : > { %1412 = vmatmul.mubr.bf16.gmra.mxu1 %v619_v7  ;;  %1130 = vmatprep.mubr.bf16.mxu0 %v622_v8  ;;  %v567_v7 = vld [vmem:[%s3972_s10 + $0x110] sm:$0xff]  ;;  %v661_v8 = vunpack.c.l.s8.bf16 %v565_v6 }
 0x100   : > { %1419 = vmatprep.mubr.bf16.mxu1 %v624_v9  ;;  %v663_v9 = vunpack.c.l.s8.bf16 %v567_v7 }
 0x106   : > { %1131 = vmatmul.mubr.bf16.gmra.mxu0 %v621_v12  ;;  %v570_v12 = vld [vmem:[%s3972_s10 + $0x128] sm:$0xff] }
 0x107   : > { %1420 = vmatmul.mubr.bf16.gmra.mxu1 %v623_v13  ;;  %1138 = vmatprep.mubr.bf16.mxu0 %v626_v14  ;;  %v572_v13 = vld [vmem:[%s3972_s10 + $0x138] sm:$0xff]  ;;  %v665_v14 = vunpack.c.h.s8.bf16 %v565_v6  ;;  %v670_v16 = vunpack.c.l.s8.bf16 %v570_v12  ;;  %v674_v22 = vunpack.c.h.s8.bf16 %v570_v12 }
 0x108   : > { %1427 = vmatprep.mubr.bf16.mxu1 %v628_v15  ;;  %v667_v15 = vunpack.c.h.s8.bf16 %v567_v7  ;;  %v672_v17 = vunpack.c.l.s8.bf16 %v572_v13  ;;  %v676_v23 = vunpack.c.h.s8.bf16 %v572_v13  ;;  %v795_v7 = vld [vmem:[#allocation2 + $0x1b0] sm:$0xff] }
 0x10e   : > { %1139 = vmatmul.mubr.bf16.gmra.mxu0 %v625_v18  ;;  %v569_v18 = vld [vmem:[%s3972_s10 + $0x120] sm:$0xff] }
 0x10f   : > { %1428 = vmatmul.mubr.bf16.gmra.mxu1 %v627_v19  ;;  %1146 = vmatprep.mubr.bf16.mxu0 %v630_v20  ;;  %v571_v19 = vld [vmem:[%s3972_s10 + $0x130] sm:$0xff]  ;;  %v669_v20 = vunpack.c.l.s8.bf16 %v569_v18 }
 0x110   : > { %1435 = vmatprep.mubr.bf16.mxu1 %v632_v21  ;;  %v671_v21 = vunpack.c.l.s8.bf16 %v571_v19 }
 0x116   : > { %1147 = vmatmul.mubr.bf16.gmra.mxu0 %v629_v24  ;;  %v574_v24 = vld [vmem:[%s3972_s10 + $0x148] sm:$0xff] }
 0x117   : > { %1436 = vmatmul.mubr.bf16.gmra.mxu1 %v631_v25  ;;  %1154 = vmatprep.mubr.bf16.mxu0 %v634_v26  ;;  %v576_v25 = vld [vmem:[%s3972_s10 + $0x158] sm:$0xff]  ;;  %v673_v26 = vunpack.c.h.s8.bf16 %v569_v18  ;;  %v678_v28 = vunpack.c.l.s8.bf16 %v574_v24  ;;  %v682_v34 = vunpack.c.h.s8.bf16 %v574_v24 }
 0x118   : > { %1443 = vmatprep.mubr.bf16.mxu1 %v636_v27  ;;  %v675_v27 = vunpack.c.h.s8.bf16 %v571_v19  ;;  %v680_v29 = vunpack.c.l.s8.bf16 %v576_v25  ;;  %v684_v35 = vunpack.c.h.s8.bf16 %v576_v25  ;;  %v585_v19 = vld [vmem:[%s3972_s10 + $0x1a0] sm:$0xff] }
 0x11e   : > { %1155 = vmatmul.mubr.bf16.gmra.mxu0 %v633_v30  ;;  %v573_v30 = vld [vmem:[%s3972_s10 + $0x140] sm:$0xff] }
 0x11f   : > { %1444 = vmatmul.mubr.bf16.gmra.mxu1 %v635_v31  ;;  %1162 = vmatprep.mubr.bf16.mxu0 %v638_v32  ;;  %v575_v31 = vld [vmem:[%s3972_s10 + $0x150] sm:$0xff]  ;;  %v677_v32 = vunpack.c.l.s8.bf16 %v573_v30 }
 0x120   : > { %1451 = vmatprep.mubr.bf16.mxu1 %v640_v33  ;;  %v679_v33 = vunpack.c.l.s8.bf16 %v575_v31 }
 0x126   : > { %1163 = vmatmul.mubr.bf16.gmra.mxu0 %v637_v36  ;;  %v578_v36 = vld [vmem:[%s3972_s10 + $0x168] sm:$0xff] }
 0x127   : > { %1452 = vmatmul.mubr.bf16.gmra.mxu1 %v639_v37  ;;  %1170 = vmatprep.mubr.bf16.mxu0 %v642_v38  ;;  %v580_v37 = vld [vmem:[%s3972_s10 + $0x178] sm:$0xff]  ;;  %v681_v38 = vunpack.c.h.s8.bf16 %v573_v30  ;;  %v686_v40 = vunpack.c.l.s8.bf16 %v578_v36  ;;  %v690_v46 = vunpack.c.h.s8.bf16 %v578_v36  ;;  %v706_v30 = vunpack.c.h.s8.bf16 %v586_v1 }
 0x128   : > { %1459 = vmatprep.mubr.bf16.mxu1 %v644_v39  ;;  %v683_v39 = vunpack.c.h.s8.bf16 %v575_v31  ;;  %v688_v41 = vunpack.c.l.s8.bf16 %v580_v37  ;;  %v692_v47 = vunpack.c.h.s8.bf16 %v580_v37  ;;  %v798_v37 = vld [vmem:[#allocation2 + $0x50] sm:$0xff] }
 0x12e   : > { %1171 = vmatmul.mubr.bf16.gmra.mxu0 %v641_v42  ;;  %v577_v42 = vld [vmem:[%s3972_s10 + $0x160] sm:$0xff] }
 0x12f   : > { %1460 = vmatmul.mubr.bf16.gmra.mxu1 %v643_v43  ;;  %1178 = vmatprep.mubr.bf16.mxu0 %v646_v44  ;;  %v579_v43 = vld [vmem:[%s3972_s10 + $0x170] sm:$0xff]  ;;  %v685_v44 = vunpack.c.l.s8.bf16 %v577_v42 }
 0x130   : > { %1467 = vmatprep.mubr.bf16.mxu1 %v648_v45  ;;  %v687_v45 = vunpack.c.l.s8.bf16 %v579_v43 }
 0x136   : > { %1179 = vmatmul.mubr.bf16.gmra.mxu0 %v645_v48  ;;  %v582_v48 = vld [vmem:[%s3972_s10 + $0x188] sm:$0xff] }
 0x137   : > { %1468 = vmatmul.mubr.bf16.gmra.mxu1 %v647_v49  ;;  %1186 = vmatprep.mubr.bf16.mxu0 %v650_v50  ;;  %v584_v49 = vld [vmem:[%s3972_s10 + $0x198] sm:$0xff]  ;;  %v689_v50 = vunpack.c.h.s8.bf16 %v577_v42  ;;  %v694_v52 = vunpack.c.l.s8.bf16 %v582_v48  ;;  %v698_v58 = vunpack.c.h.s8.bf16 %v582_v48 }
 0x138   : > { %1475 = vmatprep.mubr.bf16.mxu1 %v652_v51  ;;  %v691_v51 = vunpack.c.h.s8.bf16 %v579_v43  ;;  %v696_v53 = vunpack.c.l.s8.bf16 %v584_v49  ;;  %v700_v59 = vunpack.c.h.s8.bf16 %v584_v49  ;;  %v592_v43 = vld [vmem:[%s3972_s10 + $0x1d8] sm:$0xff] }
 0x13e   : > { %1187 = vmatmul.mubr.bf16.gmra.mxu0 %v649_v54  ;;  %v581_v54 = vld [vmem:[%s3972_s10 + $0x180] sm:$0xff] }
 0x13f   : > { %1476 = vmatmul.mubr.bf16.gmra.mxu1 %v651_v55  ;;  %1194 = vmatprep.mubr.bf16.mxu0 %v654_v56  ;;  %v583_v55 = vld [vmem:[%s3972_s10 + $0x190] sm:$0xff]  ;;  %v693_v56 = vunpack.c.l.s8.bf16 %v581_v54  ;;  %v697_v6 = vunpack.c.h.s8.bf16 %v581_v54 }
 0x140   : > { %1483 = vmatprep.mubr.bf16.mxu1 %v656_v57  ;;  %v695_v57 = vunpack.c.l.s8.bf16 %v583_v55 }
 0x146   : > { %1195 = vmatmul.mubr.bf16.gmra.mxu0 %v653_v60 }
 0x147   : > { %1484 = vmatmul.mubr.bf16.gmra.mxu1 %v655_v61  ;;  %1202 = vmatprep.mubr.bf16.mxu0 %v658_v62  ;;  %v794_v61 = vld [vmem:[#allocation2 + $0xb0] sm:$0xff] }
 0x148   : > { %1491 = vmatprep.mubr.bf16.mxu1 %v660_v63 }
 0x14e   : > { %1203 = vmatmul.mubr.bf16.gmra.mxu0 %v657_v2 }
 0x14f   : > { %1492 = vmatmul.mubr.bf16.gmra.mxu1 %v659_v3  ;;  %1210 = vmatprep.mubr.bf16.mxu0 %v662_v4  ;;  %v588_v3 = vld [vmem:[%s3972_s10 + $0x1b8] sm:$0xff] }
 0x150   : > { %1499 = vmatprep.mubr.bf16.mxu1 %v664_v5  ;;  %v704_v13 = vunpack.c.l.s8.bf16 %v588_v3 }
 0x156   : > { %1211 = vmatmul.mubr.bf16.gmra.mxu0 %v661_v8 }
 0x157   : > { %1500 = vmatmul.mubr.bf16.gmra.mxu1 %v663_v9  ;;  %1218 = vmatprep.mubr.bf16.mxu0 %v666_v10  ;;  %v699_v9 = vunpack.c.h.s8.bf16 %v583_v55  ;;  %v702_v10 = vunpack.c.l.s8.bf16 %v586_v1 }
 0x158   : > { %1507 = vmatprep.mubr.bf16.mxu1 %v668_v11 }
 0x15e   : > { %1219 = vmatmul.mubr.bf16.gmra.mxu0 %v665_v14 }
 0x15f   : > { %1508 = vmatmul.mubr.bf16.gmra.mxu1 %v667_v15  ;;  %1226 = vmatprep.mubr.bf16.mxu0 %v670_v16 }
 0x160   : > { %1515 = vmatprep.mubr.bf16.mxu1 %v672_v17  ;;  %v796_v17 = vld [vmem:[#allocation2 + $0xd8] sm:$0xff] }
 0x166   : > { %1227 = vmatmul.mubr.bf16.gmra.mxu0 %v669_v20 }
 0x167   : > { %1516 = vmatmul.mubr.bf16.gmra.mxu1 %v671_v21  ;;  %1234 = vmatprep.mubr.bf16.mxu0 %v674_v22  ;;  %v587_v22 = vld [vmem:[%s3972_s10 + $0x1b0] sm:$0xff] }
 0x168   : > { %1523 = vmatprep.mubr.bf16.mxu1 %v676_v23  ;;  %v707_v49 = vunpack.c.h.s8.bf16 %v587_v22 }
 0x16e   : > { %1235 = vmatmul.mubr.bf16.gmra.mxu0 %v673_v26  ;;  %v701_v26 = vunpack.c.l.s8.bf16 %v585_v19 }
 0x16f   : > { %1524 = vmatmul.mubr.bf16.gmra.mxu1 %v675_v27  ;;  %1242 = vmatprep.mubr.bf16.mxu0 %v678_v28  ;;  %v797_v27 = vld [vmem:[#allocation2 + $0x18] sm:$0xff] }
 0x170   : > { %1531 = vmatprep.mubr.bf16.mxu1 %v680_v29  ;;  %v703_v29 = vunpack.c.l.s8.bf16 %v587_v22 }
 0x176   : > { %1243 = vmatmul.mubr.bf16.gmra.mxu0 %v677_v32 }
 0x177   : > { %1532 = vmatmul.mubr.bf16.gmra.mxu1 %v679_v33  ;;  %1250 = vmatprep.mubr.bf16.mxu0 %v682_v34  ;;  %v708_v33 = vunpack.c.h.s8.bf16 %v588_v3  ;;  %v801_v3 = vld [vmem:[#allocation2 + $0x48] sm:$0xff] }
 0x178   : > { %1539 = vmatprep.mubr.bf16.mxu1 %v684_v35 }
 0x17e   : > { %1251 = vmatmul.mubr.bf16.gmra.mxu0 %v681_v38 }
 0x17f   : > { %1540 = vmatmul.mubr.bf16.gmra.mxu1 %v683_v39  ;;  %1258 = vmatprep.mubr.bf16.mxu0 %v686_v40 }
 0x180   : > { %1547 = vmatprep.mubr.bf16.mxu1 %v688_v41  ;;  %v590_v41 = vld [vmem:[%s3972_s10 + $0x1c8] sm:$0xff] }
 0x186   : > { %1259 = vmatmul.mubr.bf16.gmra.mxu0 %v685_v44 }
 0x187   : > { %1548 = vmatmul.mubr.bf16.gmra.mxu1 %v687_v45  ;;  %1266 = vmatprep.mubr.bf16.mxu0 %v690_v46  ;;  %v705_v46 = vunpack.c.h.s8.bf16 %v585_v19  ;;  %v596_v19 = vld [vmem:[%s3972_s10 + $0x1f8] sm:$0xff] }
 0x188   : > { %1555 = vmatprep.mubr.bf16.mxu1 %v692_v47  ;;  %v799_v47 = vld [vmem:[#allocation2 + $0x168] sm:$0xff] }
 0x18e   : > { %1267 = vmatmul.mubr.bf16.gmra.mxu0 %v689_v50  ;;  %v710_v50 = vunpack.c.l.s8.bf16 %v590_v41 }
 0x18f   : > { %1556 = vmatmul.mubr.bf16.gmra.mxu1 %v691_v51  ;;  %1274 = vmatprep.mubr.bf16.mxu0 %v694_v52 }
 0x190   : > { %1563 = vmatprep.mubr.bf16.mxu1 %v696_v53  ;;  %v712_v53 = vunpack.c.l.s8.bf16 %v592_v43 }
 0x196   : > { %v1084_v60 = vpop.f32.mrf.mxu0  ;;  %1275 = vmatmul.mubr.bf16.gmra.mxu0 %v693_v56 }
 0x197   : > { %v1373_v62 = vpop.f32.mrf.mxu1  ;;  %1564 = vmatmul.mubr.bf16.gmra.mxu1 %v695_v57  ;;  %1282 = vmatprep.mubr.bf16.mxu0 %v698_v58  ;;  %v800_v57 = vld [vmem:[#allocation2 + $0x130] sm:$0xff] }
 0x198   : > { %v1374_v63 = vadd.f32 %v1373_v62, %v1084_v60  ;;  %v1086_v0 = vpop.f32.mrf.mxu0  ;;  %1571 = vmatprep.mubr.bf16.mxu1 %v700_v59  ;;  %v589_v59 = vld [vmem:[%s3972_s10 + $0x1c0] sm:$0xff]  ;;  %v591_v62 = vld [vmem:[%s3972_s10 + $0x1d0] sm:$0xff] }
 0x199   : > { %v1375_v2 = vpop.f32.mrf.mxu1  ;;  %v713_v22 = vunpack.c.h.s8.bf16 %v589_v59 }
 0x19a   : > { %v1628_v4 = vadd.f32 %v1374_v63, %v794_v61  ;;  %v1087_v5 = vpop.f32.mrf.mxu0  ;;  %v709_v2 = vunpack.c.l.s8.bf16 %v589_v59 }
 0x19b   : > { %v1376_v8 = vpop.f32.mrf.mxu1 }
 0x19c   : > { %1692 = vst [vmem:[#allocation2 + $0xb0] sm:$0xff] %v1628_v4  ;;  %v1377_v11 = vadd.f32 %v1376_v8, %v1087_v5  ;;  %v1089_v12 = vpop.f32.mrf.mxu0  ;;  %v711_v5 = vunpack.c.l.s8.bf16 %v591_v62 }
 0x19d   : > { %v1378_v14 = vpop.f32.mrf.mxu1 }
 0x19e   : > { %v1629_v15 = vadd.f32 %v1377_v11, %v795_v7  ;;  %v1092_v16 = vpop.f32.mrf.mxu0  ;;  %1283 = vmatmul.mubr.bf16.gmra.mxu0 %v697_v6  ;;  %v714_v6 = vunpack.c.h.s8.bf16 %v590_v41 }
 0x19f   : > { %v1381_v18 = vpop.f32.mrf.mxu1  ;;  %1572 = vmatmul.mubr.bf16.gmra.mxu1 %v699_v9  ;;  %1290 = vmatprep.mubr.bf16.mxu0 %v702_v10  ;;  %v716_v9 = vunpack.c.h.s8.bf16 %v592_v43  ;;  %v805_v43 = vld [vmem:[#allocation2 + $0x98] sm:$0xff] }
 0x1a0   : > { %1693 = vst [vmem:[#allocation2 + $0x1b0] sm:$0xff] %v1629_v15  ;;  %v1382_v20 = vadd.f32 %v1381_v18, %v1092_v16  ;;  %v1094_v21 = vpop.f32.mrf.mxu0  ;;  %1579 = vmatprep.mubr.bf16.mxu1 %v704_v13  ;;  %v802_v13 = vld [vmem:[#allocation2 + $0x180] sm:$0xff] }
 0x1a1   : > { %v1383_v23 = vpop.f32.mrf.mxu1 }
 0x1a2   : > { %v1630_v24 = vadd.f32 %v1382_v20, %v796_v17  ;;  %v1095_v25 = vpop.f32.mrf.mxu0  ;;  %v594_v17 = vld [vmem:[%s3972_s10 + $0x1e8] sm:$0xff]  ;;  %v803_v23 = vld [vmem:[#allocation2 + $0x110] sm:$0xff] }
 0x1a3   : > { %v1384_v28 = vpop.f32.mrf.mxu1 }
 0x1a4   : > { %1694 = vst [vmem:[#allocation2 + $0xd8] sm:$0xff] %v1630_v24  ;;  %v1385_v31 = vadd.f32 %v1384_v28, %v1095_v25  ;;  %v1097_v32 = vpop.f32.mrf.mxu0  ;;  %v715_v25 = vunpack.c.h.s8.bf16 %v591_v62 }
 0x1a5   : > { %v1386_v34 = vpop.f32.mrf.mxu1 }
 0x1a6   : > { %v1631_v35 = vadd.f32 %v1385_v31, %v797_v27  ;;  %v1100_v36 = vpop.f32.mrf.mxu0  ;;  %1291 = vmatmul.mubr.bf16.gmra.mxu0 %v701_v26  ;;  %v718_v26 = vunpack.c.l.s8.bf16 %v594_v17 }
 0x1a7   : > { %v1389_v38 = vpop.f32.mrf.mxu1  ;;  %1580 = vmatmul.mubr.bf16.gmra.mxu1 %v703_v29  ;;  %1298 = vmatprep.mubr.bf16.mxu0 %v706_v30  ;;  %v720_v29 = vunpack.c.l.s8.bf16 %v596_v19 }
 0x1a8   : > { %1695 = vst [vmem:[#allocation2 + $0x18] sm:$0xff] %v1631_v35  ;;  %v1390_v39 = vadd.f32 %v1389_v38, %v1100_v36  ;;  %v1102_v40 = vpop.f32.mrf.mxu0  ;;  %1587 = vmatprep.mubr.bf16.mxu1 %v708_v33  ;;  %v804_v33 = vld [vmem:[#allocation2 + $0x118] sm:$0xff]  ;;  %v593_v35 = vld [vmem:[%s3972_s10 + $0x1e0] sm:$0xff]  ;;  %v595_v38 = vld [vmem:[%s3972_s10 + $0x1f0] sm:$0xff] }
 0x1a9   : > { %v1391_v42 = vpop.f32.mrf.mxu1 }
 0x1aa   : > { %v1632_v44 = vadd.f32 %v1390_v39, %v798_v37  ;;  %v1103_v45 = vpop.f32.mrf.mxu0  ;;  %v717_v42 = vunpack.c.l.s8.bf16 %v593_v35 }
 0x1ab   : > { %v1392_v48 = vpop.f32.mrf.mxu1 }
 0x1ac   : > { %1696 = vst [vmem:[#allocation2 + $0x50] sm:$0xff] %v1632_v44  ;;  %v1393_v51 = vadd.f32 %v1392_v48, %v1103_v45  ;;  %v1105_v52 = vpop.f32.mrf.mxu0  ;;  %v719_v45 = vunpack.c.l.s8.bf16 %v595_v38 }
 0x1ad   : > { %v1394_v54 = vpop.f32.mrf.mxu1 }
 0x1ae   : > { %v1633_v55 = vadd.f32 %v1393_v51, %v799_v47  ;;  %v1108_v56 = vpop.f32.mrf.mxu0  ;;  %1299 = vmatmul.mubr.bf16.gmra.mxu0 %v705_v46  ;;  %v722_v46 = vunpack.c.h.s8.bf16 %v594_v17 }
 0x1af   : > { %v1397_v58 = vpop.f32.mrf.mxu1  ;;  %1588 = vmatmul.mubr.bf16.gmra.mxu1 %v707_v49  ;;  %1306 = vmatprep.mubr.bf16.mxu0 %v710_v50  ;;  %v724_v49 = vunpack.c.h.s8.bf16 %v596_v19  ;;  %v810_v19 = vld [vmem:[#allocation2 + $0xe0] sm:$0xff] }
 0x1b0   : > { %1697 = vst [vmem:[#allocation2 + $0x168] sm:$0xff] %v1633_v55  ;;  %v1398_v60 = vadd.f32 %v1397_v58, %v1108_v56  ;;  %v1110_v61 = vpop.f32.mrf.mxu0  ;;  %1595 = vmatprep.mubr.bf16.mxu1 %v712_v53  ;;  %v806_v53 = vld [vmem:[#allocation2 + $0x120] sm:$0xff] }
 0x1b1   : > { %v1399_v63 = vpop.f32.mrf.mxu1  ;;  %v807_v61 = vld [vmem:[#allocation2 + $0x150] sm:$0xff] }
 0x1b2   : > { %v1634_v0 = vadd.f32 %v1398_v60, %v800_v57  ;;  %v1111_v1 = vpop.f32.mrf.mxu0  ;;  %v721_v60 = vunpack.c.h.s8.bf16 %v593_v35  ;;  %v723_v63 = vunpack.c.h.s8.bf16 %v595_v38 }
 0x1b3   : > { %v1400_v4 = vpop.f32.mrf.mxu1 }
 0x1b4   : > { %1698 = vst [vmem:[#allocation2 + $0x130] sm:$0xff] %v1634_v0  ;;  %v1401_v7 = vadd.f32 %v1400_v4, %v1111_v1  ;;  %v1113_v8 = vpop.f32.mrf.mxu0 }
 0x1b5   : > { %v1402_v10 = vpop.f32.mrf.mxu1 }
 0x1b6   : > { %v1635_v11 = vadd.f32 %v1401_v7, %v801_v3  ;;  %v1116_v12 = vpop.f32.mrf.mxu0  ;;  %1307 = vmatmul.mubr.bf16.gmra.mxu0 %v709_v2 }
 0x1b7   : > { %v1405_v14 = vpop.f32.mrf.mxu1  ;;  %1596 = vmatmul.mubr.bf16.gmra.mxu1 %v711_v5  ;;  %1314 = vmatprep.mubr.bf16.mxu0 %v714_v6  ;;  %v808_v5 = vld [vmem:[#allocation2 + $0x108] sm:$0xff] }
 0x1b8   : > { %1699 = vst [vmem:[#allocation2 + $0x48] sm:$0xff] %v1635_v11  ;;  %v1406_v15 = vadd.f32 %v1405_v14, %v1116_v12  ;;  %v1118_v16 = vpop.f32.mrf.mxu0  ;;  %1603 = vmatprep.mubr.bf16.mxu1 %v716_v9  ;;  %v809_v12 = vld [vmem:[#allocation2 + $0x60] sm:$0xff] }
 0x1b9   : > { %v1407_v18 = vpop.f32.mrf.mxu1 }
 0x1ba   : > { %v1636_v20 = vadd.f32 %v1406_v15, %v802_v13  ;;  %v1119_v21 = vpop.f32.mrf.mxu0 }
 0x1bb   : > { %v1408_v24 = vpop.f32.mrf.mxu1 }
 0x1bc   : > { %1700 = vst [vmem:[#allocation2 + $0x180] sm:$0xff] %v1636_v20  ;;  %v1409_v27 = vadd.f32 %v1408_v24, %v1119_v21  ;;  %v1121_v28 = vpop.f32.mrf.mxu0 }
 0x1bd   : > { %v1410_v30 = vpop.f32.mrf.mxu1 }
 0x1be   : > { %v1637_v31 = vadd.f32 %v1409_v27, %v803_v23  ;;  %v1124_v32 = vpop.f32.mrf.mxu0  ;;  %1315 = vmatmul.mubr.bf16.gmra.mxu0 %v713_v22 }
 0x1bf   : > { %v1413_v34 = vpop.f32.mrf.mxu1  ;;  %1604 = vmatmul.mubr.bf16.gmra.mxu1 %v715_v25  ;;  %1322 = vmatprep.mubr.bf16.mxu0 %v718_v26  ;;  %v811_v26 = vld [vmem:[#allocation2 + $0x188] sm:$0xff] }
 0x1c0   : > { %1701 = vst [vmem:[#allocation2 + $0x110] sm:$0xff] %v1637_v31  ;;  %v1414_v36 = vadd.f32 %v1413_v34, %v1124_v32  ;;  %v1126_v37 = vpop.f32.mrf.mxu0  ;;  %1611 = vmatprep.mubr.bf16.mxu1 %v720_v29 }
 0x1c1   : > { %v1415_v39 = vpop.f32.mrf.mxu1 }
 0x1c2   : > { %v1638_v40 = vadd.f32 %v1414_v36, %v804_v33  ;;  %v1127_v41 = vpop.f32.mrf.mxu0  ;;  %v812_v33 = vld [vmem:[#allocation2 + $0x138] sm:$0xff] }
 0x1c3   : > { %v1416_v44 = vpop.f32.mrf.mxu1 }
 0x1c4   : > { %1702 = vst [vmem:[#allocation2 + $0x118] sm:$0xff] %v1638_v40  ;;  %v1417_v47 = vadd.f32 %v1416_v44, %v1127_v41  ;;  %v1129_v48 = vpop.f32.mrf.mxu0  ;;  %v813_v40 = vld [vmem:[#allocation2 + $0x140] sm:$0xff] }
 0x1c5   : > { %v1418_v50 = vpop.f32.mrf.mxu1 }
 0x1c6   : > { %v1639_v51 = vadd.f32 %v1417_v47, %v805_v43  ;;  %v1132_v52 = vpop.f32.mrf.mxu0  ;;  %1323 = vmatmul.mubr.bf16.gmra.mxu0 %v717_v42  ;;  %v814_v47 = vld [vmem:[#allocation2 + $0x80] sm:$0xff] }
 0x1c7   : > { %v1421_v54 = vpop.f32.mrf.mxu1  ;;  %1612 = vmatmul.mubr.bf16.gmra.mxu1 %v719_v45  ;;  %1330 = vmatprep.mubr.bf16.mxu0 %v722_v46 }
 0x1c8   : > { %1703 = vst [vmem:[#allocation2 + $0x98] sm:$0xff] %v1639_v51  ;;  %v1422_v55 = vadd.f32 %v1421_v54, %v1132_v52  ;;  %v1134_v56 = vpop.f32.mrf.mxu0  ;;  %1619 = vmatprep.mubr.bf16.mxu1 %v724_v49  ;;  %v815_v54 = vld [vmem:[#allocation2 + $0x1a8] sm:$0xff] }
 0x1c9   : > { %v1423_v57 = vpop.f32.mrf.mxu1 }
 0x1ca   : > { %v1640_v58 = vadd.f32 %v1422_v55, %v806_v53  ;;  %v1135_v59 = vpop.f32.mrf.mxu0 }
 0x1cb   : > { %v1424_v62 = vpop.f32.mrf.mxu1 }
 0x1cc   : > { %1704 = vst [vmem:[#allocation2 + $0x120] sm:$0xff] %v1640_v58  ;;  %v1425_v0 = vadd.f32 %v1424_v62, %v1135_v59  ;;  %v1137_v1 = vpop.f32.mrf.mxu0 }
 0x1cd   : > { %v1426_v2 = vpop.f32.mrf.mxu1 }
 0x1ce   : > { %v1641_v3 = vadd.f32 %v1425_v0, %v807_v61  ;;  %v1140_v4 = vpop.f32.mrf.mxu0  ;;  %1331 = vmatmul.mubr.bf16.gmra.mxu0 %v721_v60  ;;  %v816_v61 = vld [vmem:[#allocation2 + $0x1b8] sm:$0xff] }
 0x1cf   : > { %v1429_v6 = vpop.f32.mrf.mxu1  ;;  %1620 = vmatmul.mubr.bf16.gmra.mxu1 %v723_v63 }
 0x1d0   : > { %1705 = vst [vmem:[#allocation2 + $0x150] sm:$0xff] %v1641_v3  ;;  %v1430_v7 = vadd.f32 %v1429_v6, %v1140_v4  ;;  %v1142_v8 = vpop.f32.mrf.mxu0  ;;  %v817_v4 = vld [vmem:[#allocation2 + $0x28] sm:$0xff] }
 0x1d1   : > { %v1431_v9 = vpop.f32.mrf.mxu1 }
 0x1d2   : > { %v1642_v10 = vadd.f32 %v1430_v7, %v808_v5  ;;  %v1143_v11 = vpop.f32.mrf.mxu0 }
 0x1d3   : > { %v1432_v13 = vpop.f32.mrf.mxu1 }
 0x1d4   : > { %1706 = vst [vmem:[#allocation2 + $0x108] sm:$0xff] %v1642_v10  ;;  %v1433_v14 = vadd.f32 %v1432_v13, %v1143_v11  ;;  %v1145_v15 = vpop.f32.mrf.mxu0  ;;  %v818_v11 = vld [vmem:[#allocation2 + $0x1e8] sm:$0xff] }
 0x1d5   : > { %v1434_v16 = vpop.f32.mrf.mxu1 }
 0x1d6   : > { %v1643_v17 = vadd.f32 %v1433_v14, %v809_v12  ;;  %v1148_v18 = vpop.f32.mrf.mxu0 }
 0x1d7   : > { %v1437_v20 = vpop.f32.mrf.mxu1 }
 0x1d8   : > { %1707 = vst [vmem:[#allocation2 + $0x60] sm:$0xff] %v1643_v17  ;;  %v1438_v21 = vadd.f32 %v1437_v20, %v1148_v18  ;;  %v1150_v22 = vpop.f32.mrf.mxu0  ;;  %v819_v18 = vld [vmem:[#allocation2 + $0xf8] sm:$0xff] }
 0x1d9   : > { %v1439_v23 = vpop.f32.mrf.mxu1 }
 0x1da   : > { %v1644_v24 = vadd.f32 %v1438_v21, %v810_v19  ;;  %v1151_v25 = vpop.f32.mrf.mxu0 }
 0x1db   : > { %v1440_v27 = vpop.f32.mrf.mxu1 }
 0x1dc   : > { %1708 = vst [vmem:[#allocation2 + $0xe0] sm:$0xff] %v1644_v24  ;;  %v1441_v28 = vadd.f32 %v1440_v27, %v1151_v25  ;;  %v1153_v29 = vpop.f32.mrf.mxu0  ;;  %v820_v25 = vld [vmem:[#allocation2 + $0x160] sm:$0xff] }
 0x1dd   : > { %v1442_v30 = vpop.f32.mrf.mxu1 }
 0x1de   : > { %v1645_v31 = vadd.f32 %v1441_v28, %v811_v26  ;;  %v1156_v32 = vpop.f32.mrf.mxu0 }
 0x1df   : > { %v1445_v34 = vpop.f32.mrf.mxu1 }
 0x1e0   : > { %1709 = vst [vmem:[#allocation2 + $0x188] sm:$0xff] %v1645_v31  ;;  %v1446_v35 = vadd.f32 %v1445_v34, %v1156_v32  ;;  %v1158_v36 = vpop.f32.mrf.mxu0  ;;  %v821_v32 = vld [vmem:[#allocation2 + $0x30] sm:$0xff] }
 0x1e1   : > { %v1447_v37 = vpop.f32.mrf.mxu1 }
 0x1e2   : > { %v1646_v38 = vadd.f32 %v1446_v35, %v812_v33  ;;  %v1159_v39 = vpop.f32.mrf.mxu0 }
 0x1e3   : > { %v1448_v41 = vpop.f32.mrf.mxu1 }
 0x1e4   : > { %1710 = vst [vmem:[#allocation2 + $0x138] sm:$0xff] %v1646_v38  ;;  %v1449_v42 = vadd.f32 %v1448_v41, %v1159_v39  ;;  %v1161_v43 = vpop.f32.mrf.mxu0  ;;  %v822_v39 = vld [vmem:[#allocation2 + $0x1e0] sm:$0xff] }
 0x1e5   : > { %v1450_v44 = vpop.f32.mrf.mxu1 }
 0x1e6   : > { %v1647_v45 = vadd.f32 %v1449_v42, %v813_v40  ;;  %v1164_v46 = vpop.f32.mrf.mxu0 }
 0x1e7   : > { %v1453_v48 = vpop.f32.mrf.mxu1 }
 0x1e8   : > { %1711 = vst [vmem:[#allocation2 + $0x140] sm:$0xff] %v1647_v45  ;;  %v1454_v49 = vadd.f32 %v1453_v48, %v1164_v46  ;;  %v1166_v50 = vpop.f32.mrf.mxu0  ;;  %v823_v46 = vld [vmem:[#allocation2] sm:$0xff] }
 0x1e9   : > { %v1455_v51 = vpop.f32.mrf.mxu1 }
 0x1ea   : > { %v1648_v52 = vadd.f32 %v1454_v49, %v814_v47  ;;  %v1167_v53 = vpop.f32.mrf.mxu0 }
 0x1eb   : > { %v1456_v55 = vpop.f32.mrf.mxu1 }
 0x1ec   : > { %1712 = vst [vmem:[#allocation2 + $0x80] sm:$0xff] %v1648_v52  ;;  %v1457_v56 = vadd.f32 %v1456_v55, %v1167_v53  ;;  %v1169_v57 = vpop.f32.mrf.mxu0  ;;  %v824_v53 = vld [vmem:[#allocation2 + $0xf0] sm:$0xff] }
 0x1ed   : > { %v1458_v58 = vpop.f32.mrf.mxu1 }
 0x1ee   : > { %v1649_v59 = vadd.f32 %v1457_v56, %v815_v54  ;;  %v1172_v60 = vpop.f32.mrf.mxu0 }
 0x1ef   : > { %v1461_v62 = vpop.f32.mrf.mxu1 }
 0x1f0   : > { %1713 = vst [vmem:[#allocation2 + $0x1a8] sm:$0xff] %v1649_v59  ;;  %v1462_v63 = vadd.f32 %v1461_v62, %v1172_v60  ;;  %v1174_v0 = vpop.f32.mrf.mxu0  ;;  %v825_v60 = vld [vmem:[#allocation2 + $0x8] sm:$0xff] }
 0x1f1   : > { %v1463_v1 = vpop.f32.mrf.mxu1 }
 0x1f2   : > { %v1650_v2 = vadd.f32 %v1462_v63, %v816_v61  ;;  %v1175_v3 = vpop.f32.mrf.mxu0 }
 0x1f3   : > { %v1464_v5 = vpop.f32.mrf.mxu1 }
 0x1f4   : > { %1714 = vst [vmem:[#allocation2 + $0x1b8] sm:$0xff] %v1650_v2  ;;  %v1465_v6 = vadd.f32 %v1464_v5, %v1175_v3  ;;  %v1177_v7 = vpop.f32.mrf.mxu0  ;;  %v826_v3 = vld [vmem:[#allocation2 + $0x148] sm:$0xff] }
 0x1f5   : > { %v1466_v8 = vpop.f32.mrf.mxu1 }
 0x1f6   : > { %v1651_v9 = vadd.f32 %v1465_v6, %v817_v4  ;;  %v1180_v10 = vpop.f32.mrf.mxu0 }
 0x1f7   : > { %v1469_v12 = vpop.f32.mrf.mxu1 }
 0x1f8   : > { %1715 = vst [vmem:[#allocation2 + $0x28] sm:$0xff] %v1651_v9  ;;  %v1470_v13 = vadd.f32 %v1469_v12, %v1180_v10  ;;  %v1182_v14 = vpop.f32.mrf.mxu0  ;;  %v827_v10 = vld [vmem:[#allocation2 + $0x1d0] sm:$0xff] }
 0x1f9   : > { %v1471_v15 = vpop.f32.mrf.mxu1 }
 0x1fa   : > { %v1652_v16 = vadd.f32 %v1470_v13, %v818_v11  ;;  %v1183_v17 = vpop.f32.mrf.mxu0 }
 0x1fb   : > { %v1472_v19 = vpop.f32.mrf.mxu1 }
 0x1fc   : > { %1716 = vst [vmem:[#allocation2 + $0x1e8] sm:$0xff] %v1652_v16  ;;  %v1473_v20 = vadd.f32 %v1472_v19, %v1183_v17  ;;  %v1185_v21 = vpop.f32.mrf.mxu0  ;;  %v828_v17 = vld [vmem:[#allocation2 + $0x100] sm:$0xff] }
 0x1fd   : > { %v1474_v22 = vpop.f32.mrf.mxu1 }
 0x1fe   : > { %v1653_v23 = vadd.f32 %v1473_v20, %v819_v18  ;;  %v1188_v24 = vpop.f32.mrf.mxu0 }
 0x1ff   : > { %v1477_v26 = vpop.f32.mrf.mxu1 }
 0x200   : > { %1717 = vst [vmem:[#allocation2 + $0xf8] sm:$0xff] %v1653_v23  ;;  %v1478_v27 = vadd.f32 %v1477_v26, %v1188_v24  ;;  %v1190_v28 = vpop.f32.mrf.mxu0  ;;  %v829_v24 = vld [vmem:[#allocation2 + $0xc8] sm:$0xff] }
 0x201   : > { %v1479_v29 = vpop.f32.mrf.mxu1 }
 0x202   : > { %v1654_v30 = vadd.f32 %v1478_v27, %v820_v25  ;;  %v1191_v31 = vpop.f32.mrf.mxu0 }
 0x203   : > { %v1480_v33 = vpop.f32.mrf.mxu1 }
 0x204   : > { %1718 = vst [vmem:[#allocation2 + $0x160] sm:$0xff] %v1654_v30  ;;  %v1481_v34 = vadd.f32 %v1480_v33, %v1191_v31  ;;  %v1193_v35 = vpop.f32.mrf.mxu0  ;;  %v830_v31 = vld [vmem:[#allocation2 + $0x40] sm:$0xff] }
 0x205   : > { %v1482_v36 = vpop.f32.mrf.mxu1 }
 0x206   : > { %v1655_v37 = vadd.f32 %v1481_v34, %v821_v32  ;;  %v1196_v38 = vpop.f32.mrf.mxu0 }
 0x207   : > { %v1485_v40 = vpop.f32.mrf.mxu1 }
 0x208   : > { %1719 = vst [vmem:[#allocation2 + $0x30] sm:$0xff] %v1655_v37  ;;  %v1486_v41 = vadd.f32 %v1485_v40, %v1196_v38  ;;  %v1198_v42 = vpop.f32.mrf.mxu0  ;;  %v831_v38 = vld [vmem:[#allocation2 + $0x1f8] sm:$0xff] }
 0x209   : > { %v1487_v43 = vpop.f32.mrf.mxu1 }
 0x20a   : > { %v1656_v44 = vadd.f32 %v1486_v41, %v822_v39  ;;  %v1199_v45 = vpop.f32.mrf.mxu0 }
 0x20b   : > { %v1488_v47 = vpop.f32.mrf.mxu1 }
 0x20c   : > { %1720 = vst [vmem:[#allocation2 + $0x1e0] sm:$0xff] %v1656_v44  ;;  %v1489_v48 = vadd.f32 %v1488_v47, %v1199_v45  ;;  %v1201_v49 = vpop.f32.mrf.mxu0  ;;  %v832_v45 = vld [vmem:[#allocation2 + $0x20] sm:$0xff] }
 0x20d   : > { %v1490_v50 = vpop.f32.mrf.mxu1 }
 0x20e   : > { %v1657_v51 = vadd.f32 %v1489_v48, %v823_v46  ;;  %v1204_v52 = vpop.f32.mrf.mxu0 }
 0x20f   : > { %v1493_v54 = vpop.f32.mrf.mxu1 }
 0x210   : > { %1721 = vst [vmem:[#allocation2] sm:$0xff] %v1657_v51  ;;  %v1494_v55 = vadd.f32 %v1493_v54, %v1204_v52  ;;  %v1206_v56 = vpop.f32.mrf.mxu0  ;;  %v833_v52 = vld [vmem:[#allocation2 + $0x128] sm:$0xff] }
 0x211   : > { %v1495_v57 = vpop.f32.mrf.mxu1 }
 0x212   : > { %v1658_v58 = vadd.f32 %v1494_v55, %v824_v53  ;;  %v1207_v59 = vpop.f32.mrf.mxu0 }
 0x213   : > { %v1496_v61 = vpop.f32.mrf.mxu1 }
 0x214   : > { %1722 = vst [vmem:[#allocation2 + $0xf0] sm:$0xff] %v1658_v58  ;;  %v1497_v62 = vadd.f32 %v1496_v61, %v1207_v59  ;;  %v1209_v63 = vpop.f32.mrf.mxu0  ;;  %v834_v59 = vld [vmem:[#allocation2 + $0x1a0] sm:$0xff] }
 0x215   : > { %v1498_v0 = vpop.f32.mrf.mxu1 }
 0x216   : > { %v1659_v1 = vadd.f32 %v1497_v62, %v825_v60  ;;  %v1212_v2 = vpop.f32.mrf.mxu0 }
 0x217   : > { %v1501_v4 = vpop.f32.mrf.mxu1 }
 0x218   : > { %1723 = vst [vmem:[#allocation2 + $0x8] sm:$0xff] %v1659_v1  ;;  %v1502_v5 = vadd.f32 %v1501_v4, %v1212_v2  ;;  %v1214_v6 = vpop.f32.mrf.mxu0  ;;  %v835_v2 = vld [vmem:[#allocation2 + $0x1f0] sm:$0xff] }
 0x219   : > { %v1503_v7 = vpop.f32.mrf.mxu1 }
 0x21a   : > { %v1660_v8 = vadd.f32 %v1502_v5, %v826_v3  ;;  %v1215_v9 = vpop.f32.mrf.mxu0 }
 0x21b   : > { %v1504_v11 = vpop.f32.mrf.mxu1 }
 0x21c   : > { %1724 = vst [vmem:[#allocation2 + $0x148] sm:$0xff] %v1660_v8  ;;  %v1505_v12 = vadd.f32 %v1504_v11, %v1215_v9  ;;  %v1217_v13 = vpop.f32.mrf.mxu0  ;;  %v836_v9 = vld [vmem:[#allocation2 + $0xe8] sm:$0xff] }
 0x21d   : > { %v1506_v14 = vpop.f32.mrf.mxu1 }
 0x21e   : > { %v1661_v15 = vadd.f32 %v1505_v12, %v827_v10  ;;  %v1220_v16 = vpop.f32.mrf.mxu0 }
 0x21f   : > { %v1509_v18 = vpop.f32.mrf.mxu1 }
 0x220   : > { %1725 = vst [vmem:[#allocation2 + $0x1d0] sm:$0xff] %v1661_v15  ;;  %v1510_v19 = vadd.f32 %v1509_v18, %v1220_v16  ;;  %v1222_v20 = vpop.f32.mrf.mxu0  ;;  %v837_v16 = vld [vmem:[#allocation2 + $0x78] sm:$0xff] }
 0x221   : > { %v1511_v21 = vpop.f32.mrf.mxu1 }
 0x222   : > { %v1662_v22 = vadd.f32 %v1510_v19, %v828_v17  ;;  %v1223_v23 = vpop.f32.mrf.mxu0 }
 0x223   : > { %v1512_v25 = vpop.f32.mrf.mxu1 }
 0x224   : > { %1726 = vst [vmem:[#allocation2 + $0x100] sm:$0xff] %v1662_v22  ;;  %v1513_v26 = vadd.f32 %v1512_v25, %v1223_v23  ;;  %v1225_v27 = vpop.f32.mrf.mxu0  ;;  %v838_v23 = vld [vmem:[#allocation2 + $0x70] sm:$0xff] }
 0x225   : > { %v1514_v28 = vpop.f32.mrf.mxu1 }
 0x226   : > { %v1663_v29 = vadd.f32 %v1513_v26, %v829_v24  ;;  %v1228_v30 = vpop.f32.mrf.mxu0 }
 0x227   : > { %v1517_v32 = vpop.f32.mrf.mxu1 }
 0x228   : > { %1727 = vst [vmem:[#allocation2 + $0xc8] sm:$0xff] %v1663_v29  ;;  %v1518_v33 = vadd.f32 %v1517_v32, %v1228_v30  ;;  %v1230_v34 = vpop.f32.mrf.mxu0  ;;  %v839_v30 = vld [vmem:[#allocation2 + $0x90] sm:$0xff] }
 0x229   : > { %v1519_v35 = vpop.f32.mrf.mxu1 }
 0x22a   : > { %v1664_v36 = vadd.f32 %v1518_v33, %v830_v31  ;;  %v1231_v37 = vpop.f32.mrf.mxu0 }
 0x22b   : > { %v1520_v39 = vpop.f32.mrf.mxu1 }
 0x22c   : > { %1728 = vst [vmem:[#allocation2 + $0x40] sm:$0xff] %v1664_v36  ;;  %v1521_v40 = vadd.f32 %v1520_v39, %v1231_v37  ;;  %v1233_v41 = vpop.f32.mrf.mxu0  ;;  %v840_v37 = vld [vmem:[#allocation2 + $0x1d8] sm:$0xff] }
 0x22d   : > { %v1522_v42 = vpop.f32.mrf.mxu1 }
 0x22e   : > { %v1665_v43 = vadd.f32 %v1521_v40, %v831_v38  ;;  %v1236_v44 = vpop.f32.mrf.mxu0 }
 0x22f   : > { %v1525_v46 = vpop.f32.mrf.mxu1 }
 0x230   : > { %1729 = vst [vmem:[#allocation2 + $0x1f8] sm:$0xff] %v1665_v43  ;;  %v1526_v47 = vadd.f32 %v1525_v46, %v1236_v44  ;;  %v1238_v48 = vpop.f32.mrf.mxu0  ;;  %v841_v44 = vld [vmem:[#allocation2 + $0xd0] sm:$0xff] }
 0x231   : > { %v1527_v49 = vpop.f32.mrf.mxu1 }
 0x232   : > { %v1666_v50 = vadd.f32 %v1526_v47, %v832_v45  ;;  %v1239_v51 = vpop.f32.mrf.mxu0 }
 0x233   : > { %v1528_v53 = vpop.f32.mrf.mxu1 }
 0x234   : > { %1730 = vst [vmem:[#allocation2 + $0x20] sm:$0xff] %v1666_v50  ;;  %v1529_v54 = vadd.f32 %v1528_v53, %v1239_v51  ;;  %v1241_v55 = vpop.f32.mrf.mxu0  ;;  %v842_v51 = vld [vmem:[#allocation2 + $0xb8] sm:$0xff] }
 0x235   : > { %v1530_v56 = vpop.f32.mrf.mxu1 }
 0x236   : > { %v1667_v57 = vadd.f32 %v1529_v54, %v833_v52  ;;  %v1244_v58 = vpop.f32.mrf.mxu0 }
 0x237   : > { %v1533_v60 = vpop.f32.mrf.mxu1 }
 0x238   : > { %1731 = vst [vmem:[#allocation2 + $0x128] sm:$0xff] %v1667_v57  ;;  %v1534_v61 = vadd.f32 %v1533_v60, %v1244_v58  ;;  %v1246_v62 = vpop.f32.mrf.mxu0  ;;  %v843_v58 = vld [vmem:[#allocation2 + $0x88] sm:$0xff] }
 0x239   : > { %v1535_v63 = vpop.f32.mrf.mxu1 }
 0x23a   : > { %v1668_v0 = vadd.f32 %v1534_v61, %v834_v59  ;;  %v1247_v1 = vpop.f32.mrf.mxu0 }
 0x23b   : > { %v1536_v3 = vpop.f32.mrf.mxu1 }
 0x23c   : > { %1732 = vst [vmem:[#allocation2 + $0x1a0] sm:$0xff] %v1668_v0  ;;  %v1537_v4 = vadd.f32 %v1536_v3, %v1247_v1  ;;  %v1249_v5 = vpop.f32.mrf.mxu0  ;;  %v844_v1 = vld [vmem:[#allocation2 + $0xa8] sm:$0xff] }
 0x23d   : > { %v1538_v6 = vpop.f32.mrf.mxu1 }
 0x23e   : > { %v1669_v7 = vadd.f32 %v1537_v4, %v835_v2  ;;  %v1252_v8 = vpop.f32.mrf.mxu0 }
 0x23f   : > { %v1541_v10 = vpop.f32.mrf.mxu1 }
 0x240   : > { %1733 = vst [vmem:[#allocation2 + $0x1f0] sm:$0xff] %v1669_v7  ;;  %v1542_v11 = vadd.f32 %v1541_v10, %v1252_v8  ;;  %v1254_v12 = vpop.f32.mrf.mxu0  ;;  %v845_v8 = vld [vmem:[#allocation2 + $0x1c8] sm:$0xff] }
 0x241   : > { %v1543_v13 = vpop.f32.mrf.mxu1 }
 0x242   : > { %v1670_v14 = vadd.f32 %v1542_v11, %v836_v9  ;;  %v1255_v15 = vpop.f32.mrf.mxu0 }
 0x243   : > { %v1544_v17 = vpop.f32.mrf.mxu1 }
 0x244   : > { %1734 = vst [vmem:[#allocation2 + $0xe8] sm:$0xff] %v1670_v14  ;;  %v1545_v18 = vadd.f32 %v1544_v17, %v1255_v15  ;;  %v1257_v19 = vpop.f32.mrf.mxu0  ;;  %v846_v15 = vld [vmem:[#allocation2 + $0x170] sm:$0xff] }
 0x245   : > { %v1546_v20 = vpop.f32.mrf.mxu1 }
 0x246   : > { %v1671_v21 = vadd.f32 %v1545_v18, %v837_v16  ;;  %v1260_v22 = vpop.f32.mrf.mxu0 }
 0x247   : > { %v1549_v24 = vpop.f32.mrf.mxu1 }
 0x248   : > { %1735 = vst [vmem:[#allocation2 + $0x78] sm:$0xff] %v1671_v21  ;;  %v1550_v25 = vadd.f32 %v1549_v24, %v1260_v22  ;;  %v1262_v26 = vpop.f32.mrf.mxu0  ;;  %v847_v22 = vld [vmem:[#allocation2 + $0x178] sm:$0xff] }
 0x249   : > { %v1551_v27 = vpop.f32.mrf.mxu1 }
 0x24a   : > { %v1672_v28 = vadd.f32 %v1550_v25, %v838_v23  ;;  %v1263_v29 = vpop.f32.mrf.mxu0 }
 0x24b   : > { %v1552_v31 = vpop.f32.mrf.mxu1 }
 0x24c   : > { %1736 = vst [vmem:[#allocation2 + $0x70] sm:$0xff] %v1672_v28  ;;  %v1553_v32 = vadd.f32 %v1552_v31, %v1263_v29  ;;  %v1265_v33 = vpop.f32.mrf.mxu0  ;;  %v848_v29 = vld [vmem:[#allocation2 + $0x68] sm:$0xff] }
 0x24d   : > { %v1554_v34 = vpop.f32.mrf.mxu1 }
 0x24e   : > { %v1673_v35 = vadd.f32 %v1553_v32, %v839_v30  ;;  %v1268_v36 = vpop.f32.mrf.mxu0 }
 0x24f   : > { %v1557_v38 = vpop.f32.mrf.mxu1 }
 0x250   : > { %1737 = vst [vmem:[#allocation2 + $0x90] sm:$0xff] %v1673_v35  ;;  %v1558_v39 = vadd.f32 %v1557_v38, %v1268_v36  ;;  %v1270_v40 = vpop.f32.mrf.mxu0  ;;  %v849_v36 = vld [vmem:[#allocation2 + $0x190] sm:$0xff] }
 0x251   : > { %v1559_v41 = vpop.f32.mrf.mxu1 }
 0x252   : > { %v1674_v42 = vadd.f32 %v1558_v39, %v840_v37  ;;  %v1271_v43 = vpop.f32.mrf.mxu0 }
 0x253   : > { %v1560_v45 = vpop.f32.mrf.mxu1 }
 0x254   : > { %1738 = vst [vmem:[#allocation2 + $0x1d8] sm:$0xff] %v1674_v42  ;;  %v1561_v46 = vadd.f32 %v1560_v45, %v1271_v43  ;;  %v1273_v47 = vpop.f32.mrf.mxu0  ;;  %v850_v43 = vld [vmem:[#allocation2 + $0x198] sm:$0xff] }
 0x255   : > { %v1562_v48 = vpop.f32.mrf.mxu1 }
 0x256   : > { %v1675_v49 = vadd.f32 %v1561_v46, %v841_v44  ;;  %v1276_v50 = vpop.f32.mrf.mxu0 }
 0x257   : > { %v1565_v52 = vpop.f32.mrf.mxu1 }
 0x258   : > { %1739 = vst [vmem:[#allocation2 + $0xd0] sm:$0xff] %v1675_v49  ;;  %v1566_v53 = vadd.f32 %v1565_v52, %v1276_v50  ;;  %v1278_v54 = vpop.f32.mrf.mxu0  ;;  %v851_v50 = vld [vmem:[#allocation2 + $0x38] sm:$0xff] }
 0x259   : > { %v1567_v55 = vpop.f32.mrf.mxu1 }
 0x25a   : > { %v1676_v56 = vadd.f32 %v1566_v53, %v842_v51  ;;  %v1279_v57 = vpop.f32.mrf.mxu0 }
 0x25b   : > { %v1568_v59 = vpop.f32.mrf.mxu1 }
 0x25c   : > { %1740 = vst [vmem:[#allocation2 + $0xb8] sm:$0xff] %v1676_v56  ;;  %v1569_v60 = vadd.f32 %v1568_v59, %v1279_v57  ;;  %v1281_v61 = vpop.f32.mrf.mxu0  ;;  %v852_v57 = vld [vmem:[#allocation2 + $0xc0] sm:$0xff] }
 0x25d   : > { %v1570_v62 = vpop.f32.mrf.mxu1 }
 0x25e   : > { %v1677_v63 = vadd.f32 %v1569_v60, %v843_v58  ;;  %v1284_v0 = vpop.f32.mrf.mxu0 }
 0x25f   : > { %v1573_v2 = vpop.f32.mrf.mxu1 }
 0x260   : > { %1741 = vst [vmem:[#allocation2 + $0x88] sm:$0xff] %v1677_v63  ;;  %v1574_v3 = vadd.f32 %v1573_v2, %v1284_v0  ;;  %v1286_v4 = vpop.f32.mrf.mxu0  ;;  %v853_v0 = vld [vmem:[#allocation2 + $0x1c0] sm:$0xff] }
 0x261   : > { %v1575_v5 = vpop.f32.mrf.mxu1 }
 0x262   : > { %v1678_v6 = vadd.f32 %v1574_v3, %v844_v1  ;;  %v1287_v7 = vpop.f32.mrf.mxu0 }
 0x263   : > { %v1576_v9 = vpop.f32.mrf.mxu1 }
 0x264   : > { %1742 = vst [vmem:[#allocation2 + $0xa8] sm:$0xff] %v1678_v6  ;;  %v1577_v10 = vadd.f32 %v1576_v9, %v1287_v7  ;;  %v1289_v11 = vpop.f32.mrf.mxu0  ;;  %v854_v7 = vld [vmem:[#allocation2 + $0x158] sm:$0xff] }
 0x265   : > { %v1578_v12 = vpop.f32.mrf.mxu1 }
 0x266   : > { %v1679_v13 = vadd.f32 %v1577_v10, %v845_v8  ;;  %v1292_v14 = vpop.f32.mrf.mxu0 }
 0x267   : > { %v1581_v16 = vpop.f32.mrf.mxu1 }
 0x268   : > { %1743 = vst [vmem:[#allocation2 + $0x1c8] sm:$0xff] %v1679_v13  ;;  %v1582_v17 = vadd.f32 %v1581_v16, %v1292_v14  ;;  %v1294_v18 = vpop.f32.mrf.mxu0  ;;  %v855_v14 = vld [vmem:[#allocation2 + $0x10] sm:$0xff] }
 0x269   : > { %v1583_v19 = vpop.f32.mrf.mxu1 }
 0x26a   : > { %v1680_v20 = vadd.f32 %v1582_v17, %v846_v15  ;;  %v1295_v21 = vpop.f32.mrf.mxu0 }
 0x26b   : > { %v1584_v23 = vpop.f32.mrf.mxu1 }
 0x26c   : > { %1744 = vst [vmem:[#allocation2 + $0x170] sm:$0xff] %v1680_v20  ;;  %v1585_v24 = vadd.f32 %v1584_v23, %v1295_v21  ;;  %v1297_v25 = vpop.f32.mrf.mxu0  ;;  %v856_v21 = vld [vmem:[#allocation2 + $0x58] sm:$0xff] }
 0x26d   : > { %v1586_v26 = vpop.f32.mrf.mxu1 }
 0x26e   : > { %v1681_v27 = vadd.f32 %v1585_v24, %v847_v22  ;;  %v1300_v28 = vpop.f32.mrf.mxu0 }
 0x26f   : > { %v1589_v30 = vpop.f32.mrf.mxu1 }
 0x270   : > { %1745 = vst [vmem:[#allocation2 + $0x178] sm:$0xff] %v1681_v27  ;;  %v1590_v31 = vadd.f32 %v1589_v30, %v1300_v28  ;;  %v1302_v32 = vpop.f32.mrf.mxu0  ;;  %v857_v28 = vld [vmem:[#allocation2 + $0xa0] sm:$0xff] }
 0x271   : > { %v1591_v33 = vpop.f32.mrf.mxu1 }
 0x272   : > { %v1682_v34 = vadd.f32 %v1590_v31, %v848_v29  ;;  %v1303_v35 = vpop.f32.mrf.mxu0 }
 0x273   : > { %v1592_v37 = vpop.f32.mrf.mxu1 }
 0x274   : > { %1746 = vst [vmem:[#allocation2 + $0x68] sm:$0xff] %v1682_v34  ;;  %v1593_v38 = vadd.f32 %v1592_v37, %v1303_v35  ;;  %v1305_v39 = vpop.f32.mrf.mxu0 }
 0x275   : > { %v1594_v40 = vpop.f32.mrf.mxu1 }
 0x276   : > { %v1683_v41 = vadd.f32 %v1593_v38, %v849_v36  ;;  %v1308_v42 = vpop.f32.mrf.mxu0 }
 0x277   : > { %v1597_v44 = vpop.f32.mrf.mxu1 }
 0x278   : > { %1747 = vst [vmem:[#allocation2 + $0x190] sm:$0xff] %v1683_v41  ;;  %v1598_v45 = vadd.f32 %v1597_v44, %v1308_v42  ;;  %v1310_v46 = vpop.f32.mrf.mxu0 }
 0x279   : > { %v1599_v47 = vpop.f32.mrf.mxu1 }
 0x27a   : > { %v1684_v48 = vadd.f32 %v1598_v45, %v850_v43  ;;  %v1311_v49 = vpop.f32.mrf.mxu0 }
 0x27b   : > { %v1600_v51 = vpop.f32.mrf.mxu1 }
 0x27c   : > { %1748 = vst [vmem:[#allocation2 + $0x198] sm:$0xff] %v1684_v48  ;;  %v1601_v52 = vadd.f32 %v1600_v51, %v1311_v49  ;;  %v1313_v53 = vpop.f32.mrf.mxu0 }
 0x27d   : > { %v1602_v54 = vpop.f32.mrf.mxu1 }
 0x27e   : > { %v1685_v55 = vadd.f32 %v1601_v52, %v851_v50  ;;  %v1316_v56 = vpop.f32.mrf.mxu0 }
 0x27f   : > { %v1605_v58 = vpop.f32.mrf.mxu1 }
 0x280   : > { %1749 = vst [vmem:[#allocation2 + $0x38] sm:$0xff] %v1685_v55  ;;  %v1606_v59 = vadd.f32 %v1605_v58, %v1316_v56  ;;  %v1318_v60 = vpop.f32.mrf.mxu0 }
 0x281   : > { %v1607_v61 = vpop.f32.mrf.mxu1 }
 0x282   : > { %v1686_v62 = vadd.f32 %v1606_v59, %v852_v57  ;;  %v1319_v63 = vpop.f32.mrf.mxu0 }
 0x283   : > { %v1608_v1 = vpop.f32.mrf.mxu1 }
 0x284   : > { %1750 = vst [vmem:[#allocation2 + $0xc0] sm:$0xff] %v1686_v62  ;;  %v1609_v2 = vadd.f32 %v1608_v1, %v1319_v63  ;;  %v1321_v3 = vpop.f32.mrf.mxu0 }
 0x285   : > { %v1610_v4 = vpop.f32.mrf.mxu1 }
 0x286   : > { %v1687_v5 = vadd.f32 %v1609_v2, %v853_v0  ;;  %v1324_v6 = vpop.f32.mrf.mxu0 }
 0x287   : > { %v1613_v8 = vpop.f32.mrf.mxu1 }
 0x288   : > { %1751 = vst [vmem:[#allocation2 + $0x1c0] sm:$0xff] %v1687_v5  ;;  %v1614_v9 = vadd.f32 %v1613_v8, %v1324_v6  ;;  %v1326_v10 = vpop.f32.mrf.mxu0 }
 0x289   : > { %v1615_v11 = vpop.f32.mrf.mxu1 }
 0x28a   : > { %v1688_v12 = vadd.f32 %v1614_v9, %v854_v7  ;;  %v1327_v13 = vpop.f32.mrf.mxu0 }
 0x28b   : > { %v1616_v15 = vpop.f32.mrf.mxu1 }
 0x28c   : > { %1752 = vst [vmem:[#allocation2 + $0x158] sm:$0xff] %v1688_v12  ;;  %v1617_v16 = vadd.f32 %v1616_v15, %v1327_v13  ;;  %v1329_v17 = vpop.f32.mrf.mxu0 }
 0x28d   : > { %v1618_v18 = vpop.f32.mrf.mxu1 }
 0x28e   : > { %v1689_v19 = vadd.f32 %v1617_v16, %v855_v14  ;;  %v1332_v20 = vpop.f32.mrf.mxu0 }
 0x28f   : > { %v1621_v22 = vpop.f32.mrf.mxu1 }
 0x290   : > { %1753 = vst [vmem:[#allocation2 + $0x10] sm:$0xff] %v1689_v19  ;;  %v1622_v23 = vadd.f32 %v1621_v22, %v1332_v20  ;;  %v1334_v24 = vpop.f32.mrf.mxu0 }
 0x291   : > { %v1623_v25 = vpop.f32.mrf.mxu1 }
 0x292   : > { %v1690_v26 = vadd.f32 %v1622_v23, %v856_v21  ;;  %v1335_v27 = vpop.f32.mrf.mxu0 }
 0x293   : > { %v1624_v29 = vpop.f32.mrf.mxu1 }
 0x294   : > { %1754 = vst [vmem:[#allocation2 + $0x58] sm:$0xff] %v1690_v26  ;;  %v1625_v30 = vadd.f32 %v1624_v29, %v1335_v27  ;;  %v1337_v31 = vpop.f32.mrf.mxu0  ;;  %1759 = sbr.rel (%p3024_p12) target bundleno = 921 (0x399), region = 71 }
 0x295   : > { %v1626_v32 = vpop.f32.mrf.mxu1 }
 0x296   : > { %v1691_v33 = vadd.f32 %v1625_v30, %v857_v28 }
 0x298   : > { %1755 = vst [vmem:[#allocation2 + $0xa0] sm:$0xff] %v1691_v33 }
 0x299   : > { %v1826_v34 = vld [vmem:[%s3986_s9 + $0x10] sm:$0xff]  ;;  %v1824_v35 = vld [vmem:[%s3986_s9] sm:$0xff]  ;;  %v3668_v36 = vmov 0   ;;  %v1827_v37 = vld [vmem:[%s3986_s9 + $0x18] sm:$0xff] }
 0x29a   : > { %3492 = vset.pattern.permute.xlu1 %v3668_v36  ;;  %3491 = vset.pattern.permute.xlu0 %v3668_v36  ;;  %v1825_v38 = vld [vmem:[%s3986_s9 + $0x8] sm:$0xff]  ;;  %v1828_v40 = vld [vmem:[%s3986_s9 + $0x20] sm:$0xff]  ;;  %v1831_v41 = vld [vmem:[%s3986_s9 + $0x38] sm:$0xff] }
 0x29b   : > { %1900 = vperm.xlu1 %3492, %v1826_v34   ;;  %1890 = vperm.xlu0 %3491, %v1824_v35   ;;  %v1829_v39 = vld [vmem:[%s3986_s9 + $0x28] sm:$0xff]  ;;  %v1830_v42 = vld [vmem:[%s3986_s9 + $0x30] sm:$0xff]  ;;  %v1832_v44 = vld [vmem:[%s3986_s9 + $0x40] sm:$0xff] }
 0x29c   : > { %v1833_v43 = vld [vmem:[%s3986_s9 + $0x48] sm:$0xff]  ;;  %v1835_v45 = vld [vmem:[%s3986_s9 + $0x58] sm:$0xff]  ;;  %v1834_v46 = vld [vmem:[%s3986_s9 + $0x50] sm:$0xff] }
 0x29d   : > { %v1837_v47 = vld [vmem:[%s3986_s9 + $0x68] sm:$0xff]  ;;  %v1836_v48 = vld [vmem:[%s3986_s9 + $0x60] sm:$0xff]  ;;  %v1839_v49 = vld [vmem:[%s3986_s9 + $0x78] sm:$0xff] }
 0x29e   : > { %v1838_v50 = vld [vmem:[%s3986_s9 + $0x70] sm:$0xff]  ;;  %v1841_v51 = vld [vmem:[%s3986_s9 + $0x88] sm:$0xff]  ;;  %v1840_v52 = vld [vmem:[%s3986_s9 + $0x80] sm:$0xff] }
 0x29f   : > { %1905 = vperm.xlu1 %3492, %v1827_v37   ;;  %1895 = vperm.xlu0 %3491, %v1825_v38   ;;  %v1843_v53 = vld [vmem:[%s3986_s9 + $0x98] sm:$0xff]  ;;  %v1842_v54 = vld [vmem:[%s3986_s9 + $0x90] sm:$0xff]  ;;  %v1845_v55 = vld [vmem:[%s3986_s9 + $0xa8] sm:$0xff] }
 0x2a0   : > { %v1844_v56 = vld [vmem:[%s3986_s9 + $0xa0] sm:$0xff]  ;;  %v1847_v57 = vld [vmem:[%s3986_s9 + $0xb8] sm:$0xff]  ;;  %v1846_v58 = vld [vmem:[%s3986_s9 + $0xb0] sm:$0xff] }
 0x2a1   : > { %v1849_v59 = vld [vmem:[%s3986_s9 + $0xc8] sm:$0xff]  ;;  %v1848_v60 = vld [vmem:[%s3986_s9 + $0xc0] sm:$0xff]  ;;  %v1851_v61 = vld [vmem:[%s3986_s9 + $0xd8] sm:$0xff] }
 0x2a2   : > { %v1850_v62 = vld [vmem:[%s3986_s9 + $0xd0] sm:$0xff]  ;;  %v1853_v63 = vld [vmem:[%s3986_s9 + $0xe8] sm:$0xff]  ;;  %v1852_v0 = vld [vmem:[%s3986_s9 + $0xe0] sm:$0xff] }
 0x2a3   : > { %1915 = vperm.xlu1 %3492, %v1829_v39   ;;  %1910 = vperm.xlu0 %3491, %v1828_v40   ;;  %v1855_v1 = vld [vmem:[%s3986_s9 + $0xf8] sm:$0xff]  ;;  %v1854_v2 = vld [vmem:[%s3986_s9 + $0xf0] sm:$0xff]  ;;  %v1857_v3 = vld [vmem:[%s3986_s9 + $0x108] sm:$0xff] }
 0x2a4   : > { %v1856_v4 = vld [vmem:[%s3986_s9 + $0x100] sm:$0xff]  ;;  %v1859_v5 = vld [vmem:[%s3986_s9 + $0x118] sm:$0xff]  ;;  %v1858_v6 = vld [vmem:[%s3986_s9 + $0x110] sm:$0xff] }
 0x2a5   : > { %v1861_v7 = vld [vmem:[%s3986_s9 + $0x128] sm:$0xff]  ;;  %v1860_v8 = vld [vmem:[%s3986_s9 + $0x120] sm:$0xff]  ;;  %v1863_v9 = vld [vmem:[%s3986_s9 + $0x138] sm:$0xff] }
 0x2a6   : > { %v1862_v10 = vld [vmem:[%s3986_s9 + $0x130] sm:$0xff]  ;;  %v1865_v11 = vld [vmem:[%s3986_s9 + $0x148] sm:$0xff]  ;;  %v1864_v12 = vld [vmem:[%s3986_s9 + $0x140] sm:$0xff] }
 0x2a7   : > { %1925 = vperm.xlu1 %3492, %v1831_v41   ;;  %1920 = vperm.xlu0 %3491, %v1830_v42   ;;  %v1867_v13 = vld [vmem:[%s3986_s9 + $0x158] sm:$0xff]  ;;  %v1866_v14 = vld [vmem:[%s3986_s9 + $0x150] sm:$0xff]  ;;  %v1869_v15 = vld [vmem:[%s3986_s9 + $0x168] sm:$0xff] }
 0x2a8   : > { %v1868_v16 = vld [vmem:[%s3986_s9 + $0x160] sm:$0xff]  ;;  %v1871_v17 = vld [vmem:[%s3986_s9 + $0x178] sm:$0xff]  ;;  %v1870_v18 = vld [vmem:[%s3986_s9 + $0x170] sm:$0xff] }
 0x2a9   : > { %v1873_v19 = vld [vmem:[%s3986_s9 + $0x188] sm:$0xff]  ;;  %v1872_v20 = vld [vmem:[%s3986_s9 + $0x180] sm:$0xff]  ;;  %v1875_v21 = vld [vmem:[%s3986_s9 + $0x198] sm:$0xff] }
 0x2aa   : > { %v1874_v22 = vld [vmem:[%s3986_s9 + $0x190] sm:$0xff]  ;;  %v1877_v23 = vld [vmem:[%s3986_s9 + $0x1a8] sm:$0xff]  ;;  %v1876_v24 = vld [vmem:[%s3986_s9 + $0x1a0] sm:$0xff] }
 0x2ab   : > { %1935 = vperm.xlu1 %3492, %v1833_v43   ;;  %1930 = vperm.xlu0 %3491, %v1832_v44   ;;  %v1879_v25 = vld [vmem:[%s3986_s9 + $0x1b8] sm:$0xff]  ;;  %v1878_v26 = vld [vmem:[%s3986_s9 + $0x1b0] sm:$0xff]  ;;  %v1881_v27 = vld [vmem:[%s3986_s9 + $0x1c8] sm:$0xff] }
 0x2ac   : > { %v1880_v28 = vld [vmem:[%s3986_s9 + $0x1c0] sm:$0xff]  ;;  %v1883_v29 = vld [vmem:[%s3986_s9 + $0x1d8] sm:$0xff]  ;;  %v1882_v30 = vld [vmem:[%s3986_s9 + $0x1d0] sm:$0xff] }
 0x2ad   : > { %v1885_v31 = vld [vmem:[%s3986_s9 + $0x1e8] sm:$0xff]  ;;  %v1884_v32 = vld [vmem:[%s3986_s9 + $0x1e0] sm:$0xff]  ;;  %v1762_v33 = vld [vmem:[#allocation2 + $0xd8] sm:$0xff] }
 0x2ae   : > { %v1760_v34 = vld [vmem:[#allocation2 + $0xb0] sm:$0xff]  ;;  %v1887_v35 = vld [vmem:[%s3986_s9 + $0x1f8] sm:$0xff]  ;;  %v2592_v39 = vld [vmem:[%s3975_s11] sm:$0xff] }
 0x2af   : > { %1945 = vperm.xlu1 %3492, %v1835_v45   ;;  %1940 = vperm.xlu0 %3491, %v1834_v46   ;;  %v1886_v36 = vld [vmem:[%s3986_s9 + $0x1f0] sm:$0xff]  ;;  %v1763_v43 = vld [vmem:[#allocation2 + $0x18] sm:$0xff] }
 0x2b0   : > { %v2594_v37 = vld [vmem:[%s3975_s11 + $0x10] sm:$0xff] }
 0x2b1   : > { %v1761_v44 = vld [vmem:[#allocation2 + $0x1b0] sm:$0xff] }
 0x2b3   : > { %1955 = vperm.xlu1 %3492, %v1837_v47   ;;  %1950 = vperm.xlu0 %3491, %v1836_v48   ;;  %v2595_v47 = vld [vmem:[%s3975_s11 + $0x18] sm:$0xff] }
 0x2b7   : > { %1965 = vperm.xlu1 %3492, %v1839_v49   ;;  %1960 = vperm.xlu0 %3491, %v1838_v50   ;;  %v2593_v49 = vld [vmem:[%s3975_s11 + $0x8] sm:$0xff] }
 0x2bb   : > { %1975 = vperm.xlu1 %3492, %v1841_v51   ;;  %1970 = vperm.xlu0 %3491, %v1840_v52  }
 0x2bf   : > { %1985 = vperm.xlu1 %3492, %v1843_v53   ;;  %1980 = vperm.xlu0 %3491, %v1842_v54   ;;  %v1765_v53 = vld [vmem:[#allocation2 + $0x168] sm:$0xff]  ;;  %v1764_v54 = vld [vmem:[#allocation2 + $0x50] sm:$0xff] }
 0x2c3   : > { %1995 = vperm.xlu1 %3492, %v1845_v55   ;;  %1990 = vperm.xlu0 %3491, %v1844_v56  }
 0x2c7   : > { %2005 = vperm.xlu1 %3492, %v1847_v57   ;;  %2000 = vperm.xlu0 %3491, %v1846_v58  }
 0x2cb   : > { %2015 = vperm.xlu1 %3492, %v1849_v59   ;;  %2010 = vperm.xlu0 %3491, %v1848_v60   ;;  %v2597_v59 = vld [vmem:[%s3975_s11 + $0x28] sm:$0xff] }
 0x2cf   : > { %2025 = vperm.xlu1 %3492, %v1851_v61   ;;  %2020 = vperm.xlu0 %3491, %v1850_v62   ;;  %v2596_v61 = vld [vmem:[%s3975_s11 + $0x20] sm:$0xff] }
 0x2d3   : > { %2035 = vperm.xlu1 %3492, %v1853_v63   ;;  %2030 = vperm.xlu0 %3491, %v1852_v0  }
 0x2d7   : > { %2045 = vperm.xlu1 %3492, %v1855_v1   ;;  %2040 = vperm.xlu0 %3491, %v1854_v2   ;;  %v1767_v1 = vld [vmem:[#allocation2 + $0x48] sm:$0xff]  ;;  %v1766_v2 = vld [vmem:[#allocation2 + $0x130] sm:$0xff] }
 0x2db   : > { %2055 = vperm.xlu1 %3492, %v1857_v3   ;;  %2050 = vperm.xlu0 %3491, %v1856_v4  }
 0x2df   : > { %2065 = vperm.xlu1 %3492, %v1859_v5   ;;  %2060 = vperm.xlu0 %3491, %v1858_v6   ;;  %v2599_v6 = vld [vmem:[%s3975_s11 + $0x38] sm:$0xff] }
 0x2e3   : > { %2075 = vperm.xlu1 %3492, %v1861_v7   ;;  %2070 = vperm.xlu0 %3491, %v1860_v8   ;;  %v2598_v8 = vld [vmem:[%s3975_s11 + $0x30] sm:$0xff] }
 0x2e7   : > { %2085 = vperm.xlu1 %3492, %v1863_v9   ;;  %2080 = vperm.xlu0 %3491, %v1862_v10  }
 0x2eb   : > { %2095 = vperm.xlu1 %3492, %v1865_v11   ;;  %2090 = vperm.xlu0 %3491, %v1864_v12   ;;  %v1769_v12 = vld [vmem:[#allocation2 + $0x110] sm:$0xff] }
 0x2ef   : > { %2105 = vperm.xlu1 %3492, %v1867_v13   ;;  %2100 = vperm.xlu0 %3491, %v1866_v14   ;;  %v1768_v13 = vld [vmem:[#allocation2 + $0x180] sm:$0xff] }
 0x2f3   : > { %2115 = vperm.xlu1 %3492, %v1869_v15   ;;  %2110 = vperm.xlu0 %3491, %v1868_v16  }
 0x2f7   : > { %2125 = vperm.xlu1 %3492, %v1871_v17   ;;  %2120 = vperm.xlu0 %3491, %v1870_v18   ;;  %v2601_v17 = vld [vmem:[%s3975_s11 + $0x48] sm:$0xff] }
 0x2fb   : > { %2135 = vperm.xlu1 %3492, %v1873_v19   ;;  %2130 = vperm.xlu0 %3491, %v1872_v20   ;;  %v2600_v19 = vld [vmem:[%s3975_s11 + $0x40] sm:$0xff] }
 0x2ff   : > { %2145 = vperm.xlu1 %3492, %v1875_v21   ;;  %2140 = vperm.xlu0 %3491, %v1874_v22  }
 0x303   : > { %2155 = vperm.xlu1 %3492, %v1877_v23   ;;  %2150 = vperm.xlu0 %3491, %v1876_v24   ;;  %v1771_v23 = vld [vmem:[#allocation2 + $0x98] sm:$0xff] }
 0x304   : > { %v1770_v24 = vld [vmem:[#allocation2 + $0x118] sm:$0xff] }
 0x307   : > { %2165 = vperm.xlu1 %3492, %v1879_v25   ;;  %2160 = vperm.xlu0 %3491, %v1878_v26  }
 0x30b   : > { %2175 = vperm.xlu1 %3492, %v1881_v27   ;;  %2170 = vperm.xlu0 %3491, %v1880_v28   ;;  %v2603_v28 = vld [vmem:[%s3975_s11 + $0x58] sm:$0xff] }
 0x30f   : > { %2185 = vperm.xlu1 %3492, %v1883_v29   ;;  %2180 = vperm.xlu0 %3491, %v1882_v30   ;;  %v2602_v30 = vld [vmem:[%s3975_s11 + $0x50] sm:$0xff] }
 0x313   : > { %2195 = vperm.xlu1 %3492, %v1885_v31   ;;  %2190 = vperm.xlu0 %3491, %v1884_v32  }
 0x316   : > { %v1901_v38 = vpop.permute.xlu1 %1900  ;;  %v1891_v40 = vpop.permute.xlu0 %1890 }
 0x317   : > { %v2210_v41 = vmul.f32 %v1901_v38, %v1762_v33  ;;  %v2208_v42 = vmul.f32 %v1891_v40, %v1760_v34  ;;  %2205 = vperm.xlu1 %3492, %v1887_v35   ;;  %2200 = vperm.xlu0 %3491, %v1886_v36   ;;  %v1773_v34 = vld [vmem:[#allocation2 + $0x150] sm:$0xff]  ;;  %v1772_v35 = vld [vmem:[#allocation2 + $0x120] sm:$0xff] }
 0x319   : > { %v2658_v45 = vadd.f32 %v2594_v37, %v2210_v41  ;;  %v2656_v46 = vadd.f32 %v2592_v39, %v2208_v42  ;;  %v2605_v39 = vld [vmem:[%s3975_s11 + $0x68] sm:$0xff] }
 0x31a   : > { %v1906_v48 = vpop.permute.xlu1 %1905  ;;  %v1896_v50 = vpop.permute.xlu0 %1895 }
 0x31b   : > { %2722 = vst [vmem:[%s3990_s6 + $0x10] sm:$0xff] %v2658_v45  ;;  %2720 = vst [vmem:[%s3990_s6] sm:$0xff] %v2656_v46  ;;  %v2211_v51 = vmul.f32 %v1906_v48, %v1763_v43  ;;  %v2209_v52 = vmul.f32 %v1896_v50, %v1761_v44  ;;  %v1775_v45 = vld [vmem:[#allocation2 + $0x60] sm:$0xff]  ;;  %v1774_v46 = vld [vmem:[#allocation2 + $0x108] sm:$0xff] }
 0x31c   : > { %v2607_v50 = vld [vmem:[%s3975_s11 + $0x78] sm:$0xff] }
 0x31d   : > { %v3173_v55 = vpack.c.bf16 %v2211_v51, %v2210_v41  ;;  %v2659_v56 = vadd.f32 %v2595_v47, %v2211_v51  ;;  %v3168_v57 = vpack.c.bf16 %v2209_v52, %v2208_v42  ;;  %v2657_v58 = vadd.f32 %v2593_v49, %v2209_v52  ;;  %v2604_v41 = vld [vmem:[%s3975_s11 + $0x60] sm:$0xff]  ;;  %v2606_v52 = vld [vmem:[%s3975_s11 + $0x70] sm:$0xff] }
 0x31e   : > { %v1916_v60 = vpop.permute.xlu1 %1915  ;;  %v1911_v62 = vpop.permute.xlu0 %1910 }
 0x31f   : > { %3325 = vst [vmem:[%s3988_s8 + $0x8] sm:$0xff] %v3173_v55   ;;  %2723 = vst [vmem:[%s3990_s6 + $0x18] sm:$0xff] %v2659_v56  ;;  %v2213_v63 = vmul.f32 %v1916_v60, %v1765_v53  ;;  %v2212_v0 = vmul.f32 %v1911_v62, %v1764_v54  ;;  %v1777_v56 = vld [vmem:[#allocation2 + $0x188] sm:$0xff] }
 0x320   : > { %3169 = vst [vmem:[%s3988_s8] sm:$0xff] %v3168_v57   ;;  %2721 = vst [vmem:[%s3990_s6 + $0x8] sm:$0xff] %v2657_v58  ;;  %v1776_v57 = vld [vmem:[#allocation2 + $0xe0] sm:$0xff] }
 0x321   : > { %v2661_v3 = vadd.f32 %v2597_v59, %v2213_v63  ;;  %v3178_v4 = vpack.c.bf16 %v2213_v63, %v2212_v0  ;;  %v2660_v5 = vadd.f32 %v2596_v61, %v2212_v0  ;;  %v2609_v61 = vld [vmem:[%s3975_s11 + $0x88] sm:$0xff]  ;;  %v2608_v63 = vld [vmem:[%s3975_s11 + $0x80] sm:$0xff] }
 0x322   : > { %v1926_v7 = vpop.permute.xlu1 %1925  ;;  %v1921_v9 = vpop.permute.xlu0 %1920 }
 0x323   : > { %2725 = vst [vmem:[%s3990_s6 + $0x28] sm:$0xff] %v2661_v3  ;;  %3326 = vst [vmem:[%s3988_s8 + $0x10] sm:$0xff] %v3178_v4   ;;  %v2215_v10 = vmul.f32 %v1926_v7, %v1767_v1  ;;  %v2214_v11 = vmul.f32 %v1921_v9, %v1766_v2  ;;  %v1779_v3 = vld [vmem:[#allocation2 + $0x140] sm:$0xff]  ;;  %v1778_v4 = vld [vmem:[#allocation2 + $0x138] sm:$0xff] }
 0x324   : > { %2724 = vst [vmem:[%s3990_s6 + $0x20] sm:$0xff] %v2660_v5 }
 0x325   : > { %v2663_v14 = vadd.f32 %v2599_v6, %v2215_v10  ;;  %v3183_v15 = vpack.c.bf16 %v2215_v10, %v2214_v11  ;;  %v2662_v16 = vadd.f32 %v2598_v8, %v2214_v11  ;;  %v2611_v8 = vld [vmem:[%s3975_s11 + $0x98] sm:$0xff]  ;;  %v2610_v10 = vld [vmem:[%s3975_s11 + $0x90] sm:$0xff] }
 0x326   : > { %v1936_v18 = vpop.permute.xlu1 %1935  ;;  %v1931_v20 = vpop.permute.xlu0 %1930 }
 0x327   : > { %2727 = vst [vmem:[%s3990_s6 + $0x38] sm:$0xff] %v2663_v14  ;;  %3327 = vst [vmem:[%s3988_s8 + $0x18] sm:$0xff] %v3183_v15   ;;  %v2217_v21 = vmul.f32 %v1936_v18, %v1769_v12  ;;  %v2216_v22 = vmul.f32 %v1931_v20, %v1768_v13  ;;  %v1781_v14 = vld [vmem:[#allocation2 + $0x1a8] sm:$0xff]  ;;  %v1780_v15 = vld [vmem:[#allocation2 + $0x80] sm:$0xff] }
 0x328   : > { %2726 = vst [vmem:[%s3990_s6 + $0x30] sm:$0xff] %v2662_v16 }
 0x329   : > { %v2665_v25 = vadd.f32 %v2601_v17, %v2217_v21  ;;  %v3188_v26 = vpack.c.bf16 %v2217_v21, %v2216_v22  ;;  %v2664_v27 = vadd.f32 %v2600_v19, %v2216_v22  ;;  %v2613_v19 = vld [vmem:[%s3975_s11 + $0xa8] sm:$0xff]  ;;  %v2612_v21 = vld [vmem:[%s3975_s11 + $0xa0] sm:$0xff] }
 0x32a   : > { %v1946_v29 = vpop.permute.xlu1 %1945  ;;  %v1941_v31 = vpop.permute.xlu0 %1940 }
 0x32b   : > { %2729 = vst [vmem:[%s3990_s6 + $0x48] sm:$0xff] %v2665_v25  ;;  %3328 = vst [vmem:[%s3988_s8 + $0x20] sm:$0xff] %v3188_v26   ;;  %v2219_v32 = vmul.f32 %v1946_v29, %v1771_v23  ;;  %v2218_v33 = vmul.f32 %v1941_v31, %v1770_v24  ;;  %v1783_v25 = vld [vmem:[#allocation2 + $0x28] sm:$0xff]  ;;  %v1782_v26 = vld [vmem:[#allocation2 + $0x1b8] sm:$0xff] }
 0x32c   : > { %2728 = vst [vmem:[%s3990_s6 + $0x40] sm:$0xff] %v2664_v27 }
 0x32d   : > { %v2667_v36 = vadd.f32 %v2603_v28, %v2219_v32  ;;  %v3193_v37 = vpack.c.bf16 %v2219_v32, %v2218_v33  ;;  %v2666_v38 = vadd.f32 %v2602_v30, %v2218_v33  ;;  %v2615_v30 = vld [vmem:[%s3975_s11 + $0xb8] sm:$0xff]  ;;  %v2614_v32 = vld [vmem:[%s3975_s11 + $0xb0] sm:$0xff] }
 0x32e   : > { %v1956_v40 = vpop.permute.xlu1 %1955  ;;  %v1951_v42 = vpop.permute.xlu0 %1950 }
 0x32f   : > { %2731 = vst [vmem:[%s3990_s6 + $0x58] sm:$0xff] %v2667_v36  ;;  %3329 = vst [vmem:[%s3988_s8 + $0x28] sm:$0xff] %v3193_v37   ;;  %v2221_v43 = vmul.f32 %v1956_v40, %v1773_v34  ;;  %v2220_v44 = vmul.f32 %v1951_v42, %v1772_v35  ;;  %v1785_v36 = vld [vmem:[#allocation2 + $0xf8] sm:$0xff]  ;;  %v1784_v37 = vld [vmem:[#allocation2 + $0x1e8] sm:$0xff] }
 0x330   : > { %2730 = vst [vmem:[%s3990_s6 + $0x50] sm:$0xff] %v2666_v38 }
 0x331   : > { %v2669_v47 = vadd.f32 %v2605_v39, %v2221_v43  ;;  %v3198_v48 = vpack.c.bf16 %v2221_v43, %v2220_v44  ;;  %v2668_v49 = vadd.f32 %v2604_v41, %v2220_v44  ;;  %v2617_v41 = vld [vmem:[%s3975_s11 + $0xc8] sm:$0xff]  ;;  %v2616_v43 = vld [vmem:[%s3975_s11 + $0xc0] sm:$0xff] }
 0x332   : > { %v1966_v51 = vpop.permute.xlu1 %1965  ;;  %v1961_v53 = vpop.permute.xlu0 %1960 }
 0x333   : > { %2733 = vst [vmem:[%s3990_s6 + $0x68] sm:$0xff] %v2669_v47  ;;  %3330 = vst [vmem:[%s3988_s8 + $0x30] sm:$0xff] %v3198_v48   ;;  %v2223_v54 = vmul.f32 %v1966_v51, %v1775_v45  ;;  %v2222_v55 = vmul.f32 %v1961_v53, %v1774_v46  ;;  %v1787_v47 = vld [vmem:[#allocation2 + $0x30] sm:$0xff]  ;;  %v1786_v48 = vld [vmem:[#allocation2 + $0x160] sm:$0xff] }
 0x334   : > { %2732 = vst [vmem:[%s3990_s6 + $0x60] sm:$0xff] %v2668_v49 }
 0x335   : > { %v2671_v58 = vadd.f32 %v2607_v50, %v2223_v54  ;;  %v3203_v59 = vpack.c.bf16 %v2223_v54, %v2222_v55  ;;  %v2670_v60 = vadd.f32 %v2606_v52, %v2222_v55  ;;  %v2619_v52 = vld [vmem:[%s3975_s11 + $0xd8] sm:$0xff]  ;;  %v2618_v54 = vld [vmem:[%s3975_s11 + $0xd0] sm:$0xff] }
 0x336   : > { %v1976_v62 = vpop.permute.xlu1 %1975  ;;  %v1971_v0 = vpop.permute.xlu0 %1970 }
 0x337   : > { %2735 = vst [vmem:[%s3990_s6 + $0x78] sm:$0xff] %v2671_v58  ;;  %3331 = vst [vmem:[%s3988_s8 + $0x38] sm:$0xff] %v3203_v59   ;;  %v2225_v1 = vmul.f32 %v1976_v62, %v1777_v56  ;;  %v2224_v2 = vmul.f32 %v1971_v0, %v1776_v57  ;;  %v1789_v58 = vld [vmem:[#allocation2] sm:$0xff] }
 0x338   : > { %2734 = vst [vmem:[%s3990_s6 + $0x70] sm:$0xff] %v2670_v60  ;;  %v1788_v59 = vld [vmem:[#allocation2 + $0x1e0] sm:$0xff] }
 0x339   : > { %v2673_v5 = vadd.f32 %v2609_v61, %v2225_v1  ;;  %v3208_v6 = vpack.c.bf16 %v2225_v1, %v2224_v2  ;;  %v2672_v7 = vadd.f32 %v2608_v63, %v2224_v2  ;;  %v2621_v63 = vld [vmem:[%s3975_s11 + $0xe8] sm:$0xff]  ;;  %v2620_v1 = vld [vmem:[%s3975_s11 + $0xe0] sm:$0xff] }
 0x33a   : > { %v1986_v9 = vpop.permute.xlu1 %1985  ;;  %v1981_v11 = vpop.permute.xlu0 %1980 }
 0x33b   : > { %2737 = vst [vmem:[%s3990_s6 + $0x88] sm:$0xff] %v2673_v5  ;;  %3332 = vst [vmem:[%s3988_s8 + $0x40] sm:$0xff] %v3208_v6   ;;  %v2227_v12 = vmul.f32 %v1986_v9, %v1779_v3  ;;  %v2226_v13 = vmul.f32 %v1981_v11, %v1778_v4  ;;  %v1791_v5 = vld [vmem:[#allocation2 + $0x8] sm:$0xff]  ;;  %v1790_v6 = vld [vmem:[#allocation2 + $0xf0] sm:$0xff] }
 0x33c   : > { %2736 = vst [vmem:[%s3990_s6 + $0x80] sm:$0xff] %v2672_v7 }
 0x33d   : > { %v2675_v16 = vadd.f32 %v2611_v8, %v2227_v12  ;;  %v3213_v17 = vpack.c.bf16 %v2227_v12, %v2226_v13  ;;  %v2674_v18 = vadd.f32 %v2610_v10, %v2226_v13  ;;  %v2623_v10 = vld [vmem:[%s3975_s11 + $0xf8] sm:$0xff]  ;;  %v2622_v12 = vld [vmem:[%s3975_s11 + $0xf0] sm:$0xff] }
 0x33e   : > { %v1996_v20 = vpop.permute.xlu1 %1995  ;;  %v1991_v22 = vpop.permute.xlu0 %1990 }
 0x33f   : > { %2739 = vst [vmem:[%s3990_s6 + $0x98] sm:$0xff] %v2675_v16  ;;  %3333 = vst [vmem:[%s3988_s8 + $0x48] sm:$0xff] %v3213_v17   ;;  %v2229_v23 = vmul.f32 %v1996_v20, %v1781_v14  ;;  %v2228_v24 = vmul.f32 %v1991_v22, %v1780_v15  ;;  %v1793_v16 = vld [vmem:[#allocation2 + $0x1d0] sm:$0xff]  ;;  %v1792_v17 = vld [vmem:[#allocation2 + $0x148] sm:$0xff] }
 0x340   : > { %2738 = vst [vmem:[%s3990_s6 + $0x90] sm:$0xff] %v2674_v18 }
 0x341   : > { %v2677_v27 = vadd.f32 %v2613_v19, %v2229_v23  ;;  %v3218_v28 = vpack.c.bf16 %v2229_v23, %v2228_v24  ;;  %v2676_v29 = vadd.f32 %v2612_v21, %v2228_v24  ;;  %v2625_v21 = vld [vmem:[%s3975_s11 + $0x108] sm:$0xff]  ;;  %v2624_v23 = vld [vmem:[%s3975_s11 + $0x100] sm:$0xff] }
 0x342   : > { %v2006_v31 = vpop.permute.xlu1 %2005  ;;  %v2001_v33 = vpop.permute.xlu0 %2000 }
 0x343   : > { %2741 = vst [vmem:[%s3990_s6 + $0xa8] sm:$0xff] %v2677_v27  ;;  %3334 = vst [vmem:[%s3988_s8 + $0x50] sm:$0xff] %v3218_v28   ;;  %v2231_v34 = vmul.f32 %v2006_v31, %v1783_v25  ;;  %v2230_v35 = vmul.f32 %v2001_v33, %v1782_v26  ;;  %v1795_v27 = vld [vmem:[#allocation2 + $0xc8] sm:$0xff]  ;;  %v1794_v28 = vld [vmem:[#allocation2 + $0x100] sm:$0xff] }
 0x344   : > { %2740 = vst [vmem:[%s3990_s6 + $0xa0] sm:$0xff] %v2676_v29 }
 0x345   : > { %v2679_v38 = vadd.f32 %v2615_v30, %v2231_v34  ;;  %v3223_v39 = vpack.c.bf16 %v2231_v34, %v2230_v35  ;;  %v2678_v40 = vadd.f32 %v2614_v32, %v2230_v35  ;;  %v2627_v32 = vld [vmem:[%s3975_s11 + $0x118] sm:$0xff]  ;;  %v2626_v34 = vld [vmem:[%s3975_s11 + $0x110] sm:$0xff] }
 0x346   : > { %v2016_v42 = vpop.permute.xlu1 %2015  ;;  %v2011_v44 = vpop.permute.xlu0 %2010 }
 0x347   : > { %2743 = vst [vmem:[%s3990_s6 + $0xb8] sm:$0xff] %v2679_v38  ;;  %3335 = vst [vmem:[%s3988_s8 + $0x58] sm:$0xff] %v3223_v39   ;;  %v2233_v45 = vmul.f32 %v2016_v42, %v1785_v36  ;;  %v2232_v46 = vmul.f32 %v2011_v44, %v1784_v37  ;;  %v1797_v38 = vld [vmem:[#allocation2 + $0x1f8] sm:$0xff]  ;;  %v1796_v39 = vld [vmem:[#allocation2 + $0x40] sm:$0xff] }
 0x348   : > { %2742 = vst [vmem:[%s3990_s6 + $0xb0] sm:$0xff] %v2678_v40 }
 0x349   : > { %v2681_v49 = vadd.f32 %v2617_v41, %v2233_v45  ;;  %v3228_v50 = vpack.c.bf16 %v2233_v45, %v2232_v46  ;;  %v2680_v51 = vadd.f32 %v2616_v43, %v2232_v46  ;;  %v2629_v43 = vld [vmem:[%s3975_s11 + $0x128] sm:$0xff]  ;;  %v2628_v45 = vld [vmem:[%s3975_s11 + $0x120] sm:$0xff] }
 0x34a   : > { %v2026_v53 = vpop.permute.xlu1 %2025  ;;  %v2021_v55 = vpop.permute.xlu0 %2020 }
 0x34b   : > { %2745 = vst [vmem:[%s3990_s6 + $0xc8] sm:$0xff] %v2681_v49  ;;  %3336 = vst [vmem:[%s3988_s8 + $0x60] sm:$0xff] %v3228_v50   ;;  %v2235_v56 = vmul.f32 %v2026_v53, %v1787_v47  ;;  %v2234_v57 = vmul.f32 %v2021_v55, %v1786_v48  ;;  %v1799_v49 = vld [vmem:[#allocation2 + $0x128] sm:$0xff]  ;;  %v1798_v50 = vld [vmem:[#allocation2 + $0x20] sm:$0xff] }
 0x34c   : > { %2744 = vst [vmem:[%s3990_s6 + $0xc0] sm:$0xff] %v2680_v51 }
 0x34d   : > { %v2683_v60 = vadd.f32 %v2619_v52, %v2235_v56  ;;  %v3233_v61 = vpack.c.bf16 %v2235_v56, %v2234_v57  ;;  %v2682_v62 = vadd.f32 %v2618_v54, %v2234_v57  ;;  %v2631_v54 = vld [vmem:[%s3975_s11 + $0x138] sm:$0xff]  ;;  %v2630_v56 = vld [vmem:[%s3975_s11 + $0x130] sm:$0xff] }
 0x34e   : > { %v2036_v0 = vpop.permute.xlu1 %2035  ;;  %v2031_v2 = vpop.permute.xlu0 %2030 }
 0x34f   : > { %2747 = vst [vmem:[%s3990_s6 + $0xd8] sm:$0xff] %v2683_v60  ;;  %3337 = vst [vmem:[%s3988_s8 + $0x68] sm:$0xff] %v3233_v61   ;;  %v2237_v3 = vmul.f32 %v2036_v0, %v1789_v58  ;;  %v2236_v4 = vmul.f32 %v2031_v2, %v1788_v59  ;;  %v1801_v60 = vld [vmem:[#allocation2 + $0x1f0] sm:$0xff]  ;;  %v1800_v61 = vld [vmem:[#allocation2 + $0x1a0] sm:$0xff] }
 0x350   : > { %2746 = vst [vmem:[%s3990_s6 + $0xd0] sm:$0xff] %v2682_v62 }
 0x351   : > { %v2685_v7 = vadd.f32 %v2621_v63, %v2237_v3  ;;  %v3238_v8 = vpack.c.bf16 %v2237_v3, %v2236_v4  ;;  %v2684_v9 = vadd.f32 %v2620_v1, %v2236_v4  ;;  %v2633_v1 = vld [vmem:[%s3975_s11 + $0x148] sm:$0xff]  ;;  %v2632_v3 = vld [vmem:[%s3975_s11 + $0x140] sm:$0xff] }
 0x352   : > { %v2046_v11 = vpop.permute.xlu1 %2045  ;;  %v2041_v13 = vpop.permute.xlu0 %2040 }
 0x353   : > { %2749 = vst [vmem:[%s3990_s6 + $0xe8] sm:$0xff] %v2685_v7  ;;  %3338 = vst [vmem:[%s3988_s8 + $0x70] sm:$0xff] %v3238_v8   ;;  %v2239_v14 = vmul.f32 %v2046_v11, %v1791_v5  ;;  %v2238_v15 = vmul.f32 %v2041_v13, %v1790_v6  ;;  %v1803_v7 = vld [vmem:[#allocation2 + $0x78] sm:$0xff]  ;;  %v1802_v8 = vld [vmem:[#allocation2 + $0xe8] sm:$0xff] }
 0x354   : > { %2748 = vst [vmem:[%s3990_s6 + $0xe0] sm:$0xff] %v2684_v9 }
 0x355   : > { %v2687_v18 = vadd.f32 %v2623_v10, %v2239_v14  ;;  %v3243_v19 = vpack.c.bf16 %v2239_v14, %v2238_v15  ;;  %v2686_v20 = vadd.f32 %v2622_v12, %v2238_v15  ;;  %v2635_v12 = vld [vmem:[%s3975_s11 + $0x158] sm:$0xff]  ;;  %v2634_v14 = vld [vmem:[%s3975_s11 + $0x150] sm:$0xff] }
 0x356   : > { %v2056_v22 = vpop.permute.xlu1 %2055  ;;  %v2051_v24 = vpop.permute.xlu0 %2050 }
 0x357   : > { %2751 = vst [vmem:[%s3990_s6 + $0xf8] sm:$0xff] %v2687_v18  ;;  %3339 = vst [vmem:[%s3988_s8 + $0x78] sm:$0xff] %v3243_v19   ;;  %v2241_v25 = vmul.f32 %v2056_v22, %v1793_v16  ;;  %v2240_v26 = vmul.f32 %v2051_v24, %v1792_v17  ;;  %v1805_v18 = vld [vmem:[#allocation2 + $0x90] sm:$0xff] }
 0x358   : > { %2750 = vst [vmem:[%s3990_s6 + $0xf0] sm:$0xff] %v2686_v20  ;;  %v1804_v19 = vld [vmem:[#allocation2 + $0x70] sm:$0xff] }
 0x359   : > { %v2689_v29 = vadd.f32 %v2625_v21, %v2241_v25  ;;  %v3248_v30 = vpack.c.bf16 %v2241_v25, %v2240_v26  ;;  %v2688_v31 = vadd.f32 %v2624_v23, %v2240_v26  ;;  %v2637_v23 = vld [vmem:[%s3975_s11 + $0x168] sm:$0xff]  ;;  %v2636_v25 = vld [vmem:[%s3975_s11 + $0x160] sm:$0xff] }
 0x35a   : > { %v2066_v33 = vpop.permute.xlu1 %2065  ;;  %v2061_v35 = vpop.permute.xlu0 %2060 }
 0x35b   : > { %2753 = vst [vmem:[%s3990_s6 + $0x108] sm:$0xff] %v2689_v29  ;;  %3340 = vst [vmem:[%s3988_s8 + $0x80] sm:$0xff] %v3248_v30   ;;  %v2243_v36 = vmul.f32 %v2066_v33, %v1795_v27  ;;  %v2242_v37 = vmul.f32 %v2061_v35, %v1794_v28  ;;  %v1807_v29 = vld [vmem:[#allocation2 + $0xd0] sm:$0xff]  ;;  %v1806_v30 = vld [vmem:[#allocation2 + $0x1d8] sm:$0xff] }
 0x35c   : > { %2752 = vst [vmem:[%s3990_s6 + $0x100] sm:$0xff] %v2688_v31 }
 0x35d   : > { %v2691_v40 = vadd.f32 %v2627_v32, %v2243_v36  ;;  %v3253_v41 = vpack.c.bf16 %v2243_v36, %v2242_v37  ;;  %v2690_v42 = vadd.f32 %v2626_v34, %v2242_v37  ;;  %v2639_v34 = vld [vmem:[%s3975_s11 + $0x178] sm:$0xff]  ;;  %v2638_v36 = vld [vmem:[%s3975_s11 + $0x170] sm:$0xff] }
 0x35e   : > { %v2076_v44 = vpop.permute.xlu1 %2075  ;;  %v2071_v46 = vpop.permute.xlu0 %2070 }
 0x35f   : > { %2755 = vst [vmem:[%s3990_s6 + $0x118] sm:$0xff] %v2691_v40  ;;  %3341 = vst [vmem:[%s3988_s8 + $0x88] sm:$0xff] %v3253_v41   ;;  %v2245_v47 = vmul.f32 %v2076_v44, %v1797_v38  ;;  %v2244_v48 = vmul.f32 %v2071_v46, %v1796_v39  ;;  %v1809_v40 = vld [vmem:[#allocation2 + $0x88] sm:$0xff]  ;;  %v1808_v41 = vld [vmem:[#allocation2 + $0xb8] sm:$0xff] }
 0x360   : > { %2754 = vst [vmem:[%s3990_s6 + $0x110] sm:$0xff] %v2690_v42 }
 0x361   : > { %v2693_v51 = vadd.f32 %v2629_v43, %v2245_v47  ;;  %v3258_v52 = vpack.c.bf16 %v2245_v47, %v2244_v48  ;;  %v2692_v53 = vadd.f32 %v2628_v45, %v2244_v48  ;;  %v2641_v45 = vld [vmem:[%s3975_s11 + $0x188] sm:$0xff]  ;;  %v2640_v47 = vld [vmem:[%s3975_s11 + $0x180] sm:$0xff] }
 0x362   : > { %v2086_v55 = vpop.permute.xlu1 %2085  ;;  %v2081_v57 = vpop.permute.xlu0 %2080 }
 0x363   : > { %2757 = vst [vmem:[%s3990_s6 + $0x128] sm:$0xff] %v2693_v51  ;;  %3342 = vst [vmem:[%s3988_s8 + $0x90] sm:$0xff] %v3258_v52   ;;  %v2247_v58 = vmul.f32 %v2086_v55, %v1799_v49  ;;  %v2246_v59 = vmul.f32 %v2081_v57, %v1798_v50  ;;  %v1811_v51 = vld [vmem:[#allocation2 + $0x1c8] sm:$0xff] }
 0x364   : > { %2756 = vst [vmem:[%s3990_s6 + $0x120] sm:$0xff] %v2692_v53  ;;  %v1810_v52 = vld [vmem:[#allocation2 + $0xa8] sm:$0xff] }
 0x365   : > { %v2695_v62 = vadd.f32 %v2631_v54, %v2247_v58  ;;  %v3263_v63 = vpack.c.bf16 %v2247_v58, %v2246_v59  ;;  %v2694_v0 = vadd.f32 %v2630_v56, %v2246_v59  ;;  %v2643_v56 = vld [vmem:[%s3975_s11 + $0x198] sm:$0xff]  ;;  %v2642_v58 = vld [vmem:[%s3975_s11 + $0x190] sm:$0xff] }
 0x366   : > { %v2096_v2 = vpop.permute.xlu1 %2095  ;;  %v2091_v4 = vpop.permute.xlu0 %2090 }
 0x367   : > { %2759 = vst [vmem:[%s3990_s6 + $0x138] sm:$0xff] %v2695_v62  ;;  %3343 = vst [vmem:[%s3988_s8 + $0x98] sm:$0xff] %v3263_v63   ;;  %v2249_v5 = vmul.f32 %v2096_v2, %v1801_v60  ;;  %v2248_v6 = vmul.f32 %v2091_v4, %v1800_v61  ;;  %v1813_v62 = vld [vmem:[#allocation2 + $0x178] sm:$0xff]  ;;  %v1812_v63 = vld [vmem:[#allocation2 + $0x170] sm:$0xff] }
 0x368   : > { %2758 = vst [vmem:[%s3990_s6 + $0x130] sm:$0xff] %v2694_v0 }
 0x369   : > { %v2697_v9 = vadd.f32 %v2633_v1, %v2249_v5  ;;  %v3268_v10 = vpack.c.bf16 %v2249_v5, %v2248_v6  ;;  %v2696_v11 = vadd.f32 %v2632_v3, %v2248_v6  ;;  %v2645_v3 = vld [vmem:[%s3975_s11 + $0x1a8] sm:$0xff]  ;;  %v2644_v5 = vld [vmem:[%s3975_s11 + $0x1a0] sm:$0xff] }
 0x36a   : > { %v2106_v13 = vpop.permute.xlu1 %2105  ;;  %v2101_v15 = vpop.permute.xlu0 %2100 }
 0x36b   : > { %2761 = vst [vmem:[%s3990_s6 + $0x148] sm:$0xff] %v2697_v9  ;;  %3344 = vst [vmem:[%s3988_s8 + $0xa0] sm:$0xff] %v3268_v10   ;;  %v2251_v16 = vmul.f32 %v2106_v13, %v1803_v7  ;;  %v2250_v17 = vmul.f32 %v2101_v15, %v1802_v8  ;;  %v1815_v9 = vld [vmem:[#allocation2 + $0x190] sm:$0xff]  ;;  %v1814_v10 = vld [vmem:[#allocation2 + $0x68] sm:$0xff] }
 0x36c   : > { %2760 = vst [vmem:[%s3990_s6 + $0x140] sm:$0xff] %v2696_v11 }
 0x36d   : > { %v2699_v20 = vadd.f32 %v2635_v12, %v2251_v16  ;;  %v3273_v21 = vpack.c.bf16 %v2251_v16, %v2250_v17  ;;  %v2698_v22 = vadd.f32 %v2634_v14, %v2250_v17  ;;  %v2647_v14 = vld [vmem:[%s3975_s11 + $0x1b8] sm:$0xff]  ;;  %v2646_v16 = vld [vmem:[%s3975_s11 + $0x1b0] sm:$0xff] }
 0x36e   : > { %v2116_v24 = vpop.permute.xlu1 %2115  ;;  %v2111_v26 = vpop.permute.xlu0 %2110 }
 0x36f   : > { %2763 = vst [vmem:[%s3990_s6 + $0x158] sm:$0xff] %v2699_v20  ;;  %3345 = vst [vmem:[%s3988_s8 + $0xa8] sm:$0xff] %v3273_v21   ;;  %v2253_v27 = vmul.f32 %v2116_v24, %v1805_v18  ;;  %v2252_v28 = vmul.f32 %v2111_v26, %v1804_v19  ;;  %v1817_v20 = vld [vmem:[#allocation2 + $0x38] sm:$0xff] }
 0x370   : > { %2762 = vst [vmem:[%s3990_s6 + $0x150] sm:$0xff] %v2698_v22  ;;  %v1816_v21 = vld [vmem:[#allocation2 + $0x198] sm:$0xff] }
 0x371   : > { %v2701_v31 = vadd.f32 %v2637_v23, %v2253_v27  ;;  %v3278_v32 = vpack.c.bf16 %v2253_v27, %v2252_v28  ;;  %v2700_v33 = vadd.f32 %v2636_v25, %v2252_v28  ;;  %v2649_v25 = vld [vmem:[%s3975_s11 + $0x1c8] sm:$0xff]  ;;  %v2648_v27 = vld [vmem:[%s3975_s11 + $0x1c0] sm:$0xff] }
 0x372   : > { %v2126_v35 = vpop.permute.xlu1 %2125  ;;  %v2121_v37 = vpop.permute.xlu0 %2120 }
 0x373   : > { %2765 = vst [vmem:[%s3990_s6 + $0x168] sm:$0xff] %v2701_v31  ;;  %3346 = vst [vmem:[%s3988_s8 + $0xb0] sm:$0xff] %v3278_v32   ;;  %v2255_v38 = vmul.f32 %v2126_v35, %v1807_v29  ;;  %v2254_v39 = vmul.f32 %v2121_v37, %v1806_v30  ;;  %v1819_v31 = vld [vmem:[#allocation2 + $0x1c0] sm:$0xff] }
 0x374   : > { %2764 = vst [vmem:[%s3990_s6 + $0x160] sm:$0xff] %v2700_v33  ;;  %v1818_v32 = vld [vmem:[#allocation2 + $0xc0] sm:$0xff] }
 0x375   : > { %v2703_v42 = vadd.f32 %v2639_v34, %v2255_v38  ;;  %v3283_v43 = vpack.c.bf16 %v2255_v38, %v2254_v39  ;;  %v2702_v44 = vadd.f32 %v2638_v36, %v2254_v39  ;;  %v2651_v36 = vld [vmem:[%s3975_s11 + $0x1d8] sm:$0xff]  ;;  %v2650_v38 = vld [vmem:[%s3975_s11 + $0x1d0] sm:$0xff] }
 0x376   : > { %v2136_v46 = vpop.permute.xlu1 %2135  ;;  %v2131_v48 = vpop.permute.xlu0 %2130 }
 0x377   : > { %2767 = vst [vmem:[%s3990_s6 + $0x178] sm:$0xff] %v2703_v42  ;;  %3347 = vst [vmem:[%s3988_s8 + $0xb8] sm:$0xff] %v3283_v43   ;;  %v2257_v49 = vmul.f32 %v2136_v46, %v1809_v40  ;;  %v2256_v50 = vmul.f32 %v2131_v48, %v1808_v41  ;;  %v1821_v42 = vld [vmem:[#allocation2 + $0x10] sm:$0xff]  ;;  %v1820_v43 = vld [vmem:[#allocation2 + $0x158] sm:$0xff] }
 0x378   : > { %2766 = vst [vmem:[%s3990_s6 + $0x170] sm:$0xff] %v2702_v44 }
 0x379   : > { %v2705_v53 = vadd.f32 %v2641_v45, %v2257_v49  ;;  %v3288_v54 = vpack.c.bf16 %v2257_v49, %v2256_v50  ;;  %v2704_v55 = vadd.f32 %v2640_v47, %v2256_v50  ;;  %v2653_v47 = vld [vmem:[%s3975_s11 + $0x1e8] sm:$0xff]  ;;  %v2652_v49 = vld [vmem:[%s3975_s11 + $0x1e0] sm:$0xff] }
 0x37a   : > { %v2146_v57 = vpop.permute.xlu1 %2145  ;;  %v2141_v59 = vpop.permute.xlu0 %2140 }
 0x37b   : > { %2769 = vst [vmem:[%s3990_s6 + $0x188] sm:$0xff] %v2705_v53  ;;  %3348 = vst [vmem:[%s3988_s8 + $0xc0] sm:$0xff] %v3288_v54   ;;  %v2259_v60 = vmul.f32 %v2146_v57, %v1811_v51  ;;  %v2258_v61 = vmul.f32 %v2141_v59, %v1810_v52  ;;  %v1823_v53 = vld [vmem:[#allocation2 + $0xa0] sm:$0xff]  ;;  %v1822_v54 = vld [vmem:[#allocation2 + $0x58] sm:$0xff] }
 0x37c   : > { %2768 = vst [vmem:[%s3990_s6 + $0x180] sm:$0xff] %v2704_v55 }
 0x37d   : > { %v2707_v0 = vadd.f32 %v2643_v56, %v2259_v60  ;;  %v3293_v1 = vpack.c.bf16 %v2259_v60, %v2258_v61  ;;  %v2706_v2 = vadd.f32 %v2642_v58, %v2258_v61  ;;  %v2655_v58 = vld [vmem:[%s3975_s11 + $0x1f8] sm:$0xff]  ;;  %v2654_v60 = vld [vmem:[%s3975_s11 + $0x1f0] sm:$0xff] }
 0x37e   : > { %v2156_v4 = vpop.permute.xlu1 %2155  ;;  %v2151_v6 = vpop.permute.xlu0 %2150 }
 0x37f   : > { %2771 = vst [vmem:[%s3990_s6 + $0x198] sm:$0xff] %v2707_v0  ;;  %3349 = vst [vmem:[%s3988_s8 + $0xc8] sm:$0xff] %v3293_v1   ;;  %v2261_v7 = vmul.f32 %v2156_v4, %v1813_v62  ;;  %v2260_v8 = vmul.f32 %v2151_v6, %v1812_v63 }
 0x380   : > { %2770 = vst [vmem:[%s3990_s6 + $0x190] sm:$0xff] %v2706_v2 }
 0x381   : > { %v2709_v11 = vadd.f32 %v2645_v3, %v2261_v7  ;;  %v3298_v12 = vpack.c.bf16 %v2261_v7, %v2260_v8  ;;  %v2708_v13 = vadd.f32 %v2644_v5, %v2260_v8 }
 0x382   : > { %v2166_v15 = vpop.permute.xlu1 %2165  ;;  %v2161_v17 = vpop.permute.xlu0 %2160 }
 0x383   : > { %2773 = vst [vmem:[%s3990_s6 + $0x1a8] sm:$0xff] %v2709_v11  ;;  %3350 = vst [vmem:[%s3988_s8 + $0xd0] sm:$0xff] %v3298_v12   ;;  %v2263_v18 = vmul.f32 %v2166_v15, %v1815_v9  ;;  %v2262_v19 = vmul.f32 %v2161_v17, %v1814_v10 }
 0x384   : > { %2772 = vst [vmem:[%s3990_s6 + $0x1a0] sm:$0xff] %v2708_v13 }
 0x385   : > { %v2711_v22 = vadd.f32 %v2647_v14, %v2263_v18  ;;  %v3303_v23 = vpack.c.bf16 %v2263_v18, %v2262_v19  ;;  %v2710_v24 = vadd.f32 %v2646_v16, %v2262_v19 }
 0x386   : > { %v2176_v26 = vpop.permute.xlu1 %2175  ;;  %v2171_v28 = vpop.permute.xlu0 %2170 }
 0x387   : > { %2775 = vst [vmem:[%s3990_s6 + $0x1b8] sm:$0xff] %v2711_v22  ;;  %3351 = vst [vmem:[%s3988_s8 + $0xd8] sm:$0xff] %v3303_v23   ;;  %v2265_v29 = vmul.f32 %v2176_v26, %v1817_v20  ;;  %v2264_v30 = vmul.f32 %v2171_v28, %v1816_v21 }
 0x388   : > { %2774 = vst [vmem:[%s3990_s6 + $0x1b0] sm:$0xff] %v2710_v24 }
 0x389   : > { %v2713_v33 = vadd.f32 %v2649_v25, %v2265_v29  ;;  %v3308_v34 = vpack.c.bf16 %v2265_v29, %v2264_v30  ;;  %v2712_v35 = vadd.f32 %v2648_v27, %v2264_v30 }
 0x38a   : > { %v2186_v37 = vpop.permute.xlu1 %2185  ;;  %v2181_v39 = vpop.permute.xlu0 %2180 }
 0x38b   : > { %2777 = vst [vmem:[%s3990_s6 + $0x1c8] sm:$0xff] %v2713_v33  ;;  %3352 = vst [vmem:[%s3988_s8 + $0xe0] sm:$0xff] %v3308_v34   ;;  %v2267_v40 = vmul.f32 %v2186_v37, %v1819_v31  ;;  %v2266_v41 = vmul.f32 %v2181_v39, %v1818_v32 }
 0x38c   : > { %2776 = vst [vmem:[%s3990_s6 + $0x1c0] sm:$0xff] %v2712_v35 }
 0x38d   : > { %v2715_v44 = vadd.f32 %v2651_v36, %v2267_v40  ;;  %v3313_v45 = vpack.c.bf16 %v2267_v40, %v2266_v41  ;;  %v2714_v46 = vadd.f32 %v2650_v38, %v2266_v41 }
 0x38e   : > { %v2196_v48 = vpop.permute.xlu1 %2195  ;;  %v2191_v50 = vpop.permute.xlu0 %2190 }
 0x38f   : > { %2779 = vst [vmem:[%s3990_s6 + $0x1d8] sm:$0xff] %v2715_v44  ;;  %3353 = vst [vmem:[%s3988_s8 + $0xe8] sm:$0xff] %v3313_v45   ;;  %v2269_v51 = vmul.f32 %v2196_v48, %v1821_v42  ;;  %v2268_v52 = vmul.f32 %v2191_v50, %v1820_v43 }
 0x390   : > { %2778 = vst [vmem:[%s3990_s6 + $0x1d0] sm:$0xff] %v2714_v46 }
 0x391   : > { %v2717_v55 = vadd.f32 %v2653_v47, %v2269_v51  ;;  %v3318_v56 = vpack.c.bf16 %v2269_v51, %v2268_v52  ;;  %v2716_v57 = vadd.f32 %v2652_v49, %v2268_v52 }
 0x392   : > { %v2206_v59 = vpop.permute.xlu1 %2205  ;;  %v2201_v61 = vpop.permute.xlu0 %2200 }
 0x393   : > { %2781 = vst [vmem:[%s3990_s6 + $0x1e8] sm:$0xff] %v2717_v55  ;;  %3354 = vst [vmem:[%s3988_s8 + $0xf0] sm:$0xff] %v3318_v56   ;;  %v2271_v62 = vmul.f32 %v2206_v59, %v1823_v53  ;;  %v2270_v63 = vmul.f32 %v2201_v61, %v1822_v54 }
 0x394   : > { %2780 = vst [vmem:[%s3990_s6 + $0x1e0] sm:$0xff] %v2716_v57 }
 0x395   : > { %v2719_v0 = vadd.f32 %v2655_v58, %v2271_v62  ;;  %v3323_v1 = vpack.c.bf16 %v2271_v62, %v2270_v63  ;;  %v2718_v2 = vadd.f32 %v2654_v60, %v2270_v63 }
 0x397   : > { %2783 = vst [vmem:[%s3990_s6 + $0x1f8] sm:$0xff] %v2719_v0  ;;  %3355 = vst [vmem:[%s3988_s8 + $0xf8] sm:$0xff] %v3323_v1  }
 0x398   : > { %2782 = vst [vmem:[%s3990_s6 + $0x1f0] sm:$0xff] %v2718_v2 }
 0x399 PF: > { %s3163_s23 = sshll.u32 %s3649_s24, 12  ;;  %s2803_s13 = sshll.u32 %s3988_s8, 4  ;;  %s4431_s13 = int_to_ptr.vmem [resolvable:$true] %s2803_s13 }
 0x39a   : > { %s4428_s21 = scalar_lea.hbm %s4526_s4, %s3163_s23  ;;  %s2785_s29 = scalar_lea.sflag [#allocation6], %s3969_s22 }
 0x39b   : > { %s3519_s16 = scalar_lea.vmem %s4431_s13, 4096  ;;  %s3669_s9 = smov [#allocation7]  }
 0x39c   : > { %p3520_p4 = scmp.ne.s32.totalorder %s4431_s13, %s3519_s16  ;;  %s3523_s14 = sshll.u32 %s3669_s9, 4  ;;  %s3524_s14 = int_to_ptr.vmem [resolvable:$false] %s3523_s14 }
 0x39d   : > { %s3525_s30 = scalar_lea.vmem %s3524_s14, 8192  ;;  %p3526_p8 = scmp.lt.s32.totalorder %s4431_s13, %s3524_s14 }
 0x39e   : > { %p3521_p5 = pnand %p3520_p4, %p3804_p13  ;;  %p3527_p9 = scmp.lt.s32.totalorder %s3525_s30, %s3519_s16 }
 0x3a0   : > { %p3522_p6 = pneg %p3521_p5  ;;  %p3528_p10 = por %p3527_p9, %p3526_p8 }
 0x3a2   : > { %p3529_p11 = pnand %p3528_p10, %p3522_p6 }
 0x3a4   : > { %3532 = shalt.err (!%p3529_p11)
}
 0x3a5   : > { %s3533_s8 = scalar_lea.hbm %s4428_s21, 4096  ;;  %s3537_s0 = scalar_lea.hbm %s4526_s4, 8192 }
 0x3a6   : > { %p3534_p0 = scmp.ne.s32.totalorder %s4428_s21, %s3533_s8  ;;  %p3538_p3 = scmp.lt.s32.totalorder %s4428_s21, %s4526_s4 }
 0x3a7   : > { %p3539_p12 = scmp.lt.s32.totalorder %s3537_s0, %s3533_s8 }
 0x3a8   : > { %p3535_p2 = pnand %p3534_p0, %p3804_p13 }
 0x3a9   : > { %p3540_p4 = por %p3539_p12, %p3538_p3 }
 0x3aa   : > { %p3536_p7 = pneg %p3535_p2 }
 0x3ac   : > { %p3541_p5 = pnand %p3540_p4, %p3536_p7 }
 0x3ae   : > { %3544 = shalt.err (!%p3541_p5)
}
 0x3af   : > { %s3670_s10 = smov 64   ;;  %s3671_s11 = smov 4  }
 0x3b0   : > { %3358 = dma.vmem_to_hbm [thread:$0]  (%p3804_p13), %s4431_s13, 4096, %s4428_s21, %s2785_s29, %s3670_s10, %s3670_s10, %s3671_s11  }
 0x3b1   : > { %s3164_s16 = sshll.u32 %s3649_s24, 13  ;;  %s2819_s9 = sshll.u32 %s3990_s6, 4  ;;  %s4463_s9 = int_to_ptr.vmem [resolvable:$true] %s2819_s9 }
 0x3b2   : > { %s4461_s8 = scalar_lea.hbm %s4527_s5, %s3164_s16  ;;  %s2790_s25 = scalar_lea.sflag [#allocation9], %s3969_s22 }
 0x3b3   : > { %s3545_s7 = scalar_lea.vmem %s4463_s9, 8192  ;;  %s3672_s0 = smov [#allocation8]  }
 0x3b4   : > { %p3546_p6 = scmp.ne.s32.totalorder %s4463_s9, %s3545_s7  ;;  %s3549_s21 = sshll.u32 %s3672_s0, 4  ;;  %s3550_s21 = int_to_ptr.vmem [resolvable:$false] %s3549_s21 }
 0x3b5   : > { %s3551_s24 = scalar_lea.vmem %s3550_s21, 16384  ;;  %p3552_p10 = scmp.lt.s32.totalorder %s4463_s9, %s3550_s21 }
 0x3b6   : > { %p3547_p8 = pnand %p3546_p6, %p3804_p13  ;;  %p3553_p11 = scmp.lt.s32.totalorder %s3551_s24, %s3545_s7 }
 0x3b8   : > { %p3548_p9 = pneg %p3547_p8  ;;  %p3554_p0 = por %p3553_p11, %p3552_p10 }
 0x3ba   : > { %p3555_p2 = pnand %p3554_p0, %p3548_p9 }
 0x3bc   : > { %3558 = shalt.err (!%p3555_p2)
}
 0x3bd   : > { %s3559_s6 = scalar_lea.hbm %s4461_s8, 8192  ;;  %s3563_s12 = scalar_lea.hbm %s4527_s5, 16384 }
 0x3be   : > { %p3560_p7 = scmp.ne.s32.totalorder %s4461_s8, %s3559_s6  ;;  %p3564_p4 = scmp.lt.s32.totalorder %s4461_s8, %s4527_s5 }
 0x3bf   : > { %p3565_p5 = scmp.lt.s32.totalorder %s3563_s12, %s3559_s6 }
 0x3c0   : > { %p3561_p3 = pnand %p3560_p7, %p3804_p13 }
 0x3c1   : > { %p3566_p6 = por %p3565_p5, %p3564_p4 }
 0x3c2   : > { %p3562_p12 = pneg %p3561_p3 }
 0x3c4   : > { %p3567_p8 = pnand %p3566_p6, %p3562_p12 }
 0x3c6   : > { %3570 = shalt.err (!%p3567_p8)
}
 0x3c7   : > { %s3673_s11 = smov 128   ;;  %s3674_s16 = smov 8  }
 0x3c8   : > { %3359 = dma.vmem_to_hbm [thread:$0]  (%p3804_p13), %s4463_s9, 8192, %s4461_s8, %s2790_s25, %s3673_s11, %s3673_s11, %s3674_s16  }
 0x3c9 PF: > { %p3369_p9 = scmp.ge.s32.totalorder %s3661_s27, 2  ;;  %s2834_s14 = sand.u32 1, %s3625_s18  }
 0x3ca   : > { %s2835_s30 = scalar_lea.sflag [#allocation6], %s2834_s14 }
 0x3cb   : > { %p3363_p10 = pnand %p3369_p9, %p3811_p1 }
 0x3cd   : > { %p3364_p11 = pneg %p3363_p10 }
 0x3cf   : > { %3616 = dma.done.wait (%p3364_p11), %s2835_s30, 4096  }
 0x3d0   : > { %3618 = vsyncadd (%p3364_p11), %s2835_s30, 4294963200  ;;  %s2844_s7 = scalar_lea.sflag [#allocation9], %s2834_s14 }
 0x3d1   : > { %3620 = dma.done.wait (%p3364_p11), %s2844_s7, 8192  }
 0x3d2   : > { %3622 = vsyncadd (%p3364_p11), %s2844_s7, 4294959104  ;;  %s25_s27 = sadd.s32 1, %s3661_s27   ;;  %s4544_s21 = sld [smem:[#allocation13_spill]] }
 0x3d3   : > { %p22_p0 = scmp.ge.s32.totalorder %s25_s27, 6   ;;  %s4545_s22 = sld [smem:[#allocation17_spill]] }
 0x3d4   : > { %s4546_s23 = sld [smem:[#allocation14_spill]]  ;;  %s4549_s18 = smov %s3629_s19 }
 0x3d5   : > { %s4547_s25 = sld [smem:[#allocation15_spill]]  ;;  %s4550_s19 = smov %s3633_s20 }
 0x3d6   : > { %s4548_s17 = sld [smem:[#allocation16_spill]]  ;;  %s4551_s20 = smov %s3796_s15 }
 0x3d7   : > { %s4552_s24 = smov %s3657_s26 }
 0x3d8   :  { %24 = sbr.rel (!%p22_p0) target bundleno = 12 (0xc), region = 141 }
 0x3dc   : > { %s4553_s26 = smov %s4548_s17 }
 0x3dd   :  { %2849 = vsyncpa [#allocation5], 1 }
 0x3de   :  { %2851 = vsyncpa [#allocation5 + $0x1], 1 }
 0x3df   :  { %2852 = vsyncpa [#allocation6], 1 }
 0x3e0   :  { %2854 = vsyncpa [#allocation6 + $0x1], 1 }
 0x3e1   :  { %2855 = vsyncpa [#allocation9], 1 }
 0x3e2   :  { %2857 = vsyncpa [#allocation9 + $0x1], 1 }

</bundles_post_ra>
